<compile_context>
chip_gen: v5e
topology: v5e:2x2
jax: 0.10.0
libtpu: 0.0.40
codegen_flags: <defaults>
</compile_context>

<pallas_src>
import jax
import jax.numpy as jnp
from jax import lax
from jax.experimental import pallas as pl
from jax.experimental.pallas import tpu as pltpu


# ----------------------------------------------------------------------------
# Fused kernel: layer0 (bi) -> layer1 (bi) -> Linear(2H,1) -> sigmoid
# ----------------------------------------------------------------------------
def _bilstm_fused_kernel(x2d_ref,
                         wih0_ref, whh0_ref, b0_ref,
                         wih1_ref, whh1_ref, b1_ref,
                         wcls_ref, bcls_ref,
                         out_ref,
                         g_ref, staged1_ref):
    # Shapes derived from the resident scratch buffers.
    S, B2, FH = g_ref.shape          # g_ref: (S, 2B, 4H) staged gate pre-activations
    H = FH // 4
    B = B2 // 2

    # Loop-invariant row mask: rows [0,B) = forward dir, rows [B,2B) = reverse dir
    # (reverse rows are already time-reversed in the staged layouts).
    is_fwd = lax.broadcasted_iota(jnp.int32, (B2, 1), 0) < B          # (2B, 1)

    def select_dir(gall):
        # gall: (rows, 8H) = [result-with-fwd-weights | result-with-rev-weights].
        # 4H = lane-aligned boundary -> both slices are free vreg picks; one vselect.
        return jnp.where(is_fwd, gall[:, :FH], gall[:, FH:])

    # ---------------- layer 0: hoisted input projection ----------------
    # One (S*2B, Din) @ (Din, 8H) matmul for both directions, then static
    # full-tile (2B, 4H) stores into the staging scratch. No concats.
    gall0 = jnp.dot(x2d_ref[...], wih0_ref[...],
                    preferred_element_type=jnp.float32) + b0_ref[...]  # (S*2B, 8H)
    for t in range(S):
        g_ref[t] = select_dir(gall0[t * B2:(t + 1) * B2])

    # ---------------- batch-stacked bidirectional recurrence ----------------
    def run_layer(whh_ref, store_hidden):
        whh = whh_ref[...]                       # (H, 8H) = [W_hh_fwd | W_hh_rev]

        def step(t, carry):
            h, c = carry                                             # (2B, H)
            # One wide MXU push serves both directions; direction picked by vselect.
            ga = jnp.dot(h, whh, preferred_element_type=jnp.float32)  # (2B, 8H)
            gates = g_ref[t] + select_dir(ga)                         # (2B, 4H)
            # Single EUP sigmoid pass over the full 128-lane gate vreg.
            sg = jax.nn.sigmoid(gates)
            i_g = sg[:, 0 * H:1 * H]
            f_g = sg[:, 1 * H:2 * H]
            # g pre-activation was pre-scaled by 2 at init: tanh(z) = 2*sigmoid(2z)-1.
            g_g = 2.0 * sg[:, 2 * H:3 * H] - 1.0
            o_g = sg[:, 3 * H:4 * H]
            c_new = f_g * c + i_g * g_g
            h_new = o_g * jnp.tanh(c_new)
            if store_hidden:
                # Scatter h directly into the layer-1 staged layout:
                #   staged1[t', :B] = [h_fwd[t'] | h_rev[t']]        (natural time)
                #   staged1[t', B:] = [h_fwd[S-1-t'] | h_rev[S-1-t']] (time-reversed)
                # These stores are off the recurrence dependency chain.
                hf = h_new[:B]                   # forward h at time t
                hr = h_new[B:]                   # reverse h at original time S-1-t
                staged1_ref[t, :B, :H] = hf
                staged1_ref[S - 1 - t, B:, :H] = hf
                staged1_ref[S - 1 - t, :B, H:] = hr
                staged1_ref[t, B:, H:] = hr
            return h_new, c_new

        zeros = jnp.zeros((B2, H), jnp.float32)
        return lax.fori_loop(0, S, step, (zeros, zeros), unroll=True)

    run_layer(whh0_ref, store_hidden=True)

    # ---------------- layer 1: hoisted input projection ----------------
    # staged1 already holds the exact staged input -> per-t matmul + select + store,
    # no flips, no concats, no reshapes.
    wih1 = wih1_ref[...]                          # (2H, 8H)
    b1 = b1_ref[...]                              # (1, 8H)
    for t in range(S):
        gall1 = jnp.dot(staged1_ref[t], wih1,
                        preferred_element_type=jnp.float32) + b1       # (2B, 8H)
        g_ref[t] = select_dir(gall1)

    _, c_fin = run_layer(whh1_ref, store_hidden=False)

    # ---- classifier head: cat([c_fwd, c_rev], 1) -> Linear -> sigmoid (matches
    #      the PyTorch module, which feeds c_n of the last layer to the head). ----
    interim = jnp.concatenate([c_fin[:B], c_fin[B:]], axis=1)          # (B, 2H)
    logits = jnp.dot(interim, wcls_ref[...],
                     preferred_element_type=jnp.float32) + bcls_ref[...]
    out_ref[...] = jax.nn.sigmoid(logits)


# ----------------------------------------------------------------------------
# Wrapper
# ----------------------------------------------------------------------------
@jax.jit
def bilstm_forward(poses, params):
    """poses: (batch, seq, input_dim). Returns (sigmoid(logits) (B,1), zeros (1,3))."""
    B, S, D = poses.shape
    H = params["whh_l0"].shape[0]                  # whh packed as (H, 8H)

    # (batch, seq, feat) -> time-major, then stack [natural ; time-reversed] on the
    # batch axis so the kernel never flips anything: rows [:B] = fwd, [B:] = rev.
    xt = jnp.transpose(poses, (1, 0, 2))           # (S, B, D)
    x_stk = jnp.concatenate([xt, xt[::-1]], axis=1)  # (S, 2B, D)
    x2d = x_stk.reshape(S * 2 * B, D)              # row = t*2B + b

    out = pl.pallas_call(
        _bilstm_fused_kernel,
        out_shape=jax.ShapeDtypeStruct((B, 1), jnp.float32),
        scratch_shapes=[
            pltpu.VMEM((S, 2 * B, 4 * H), jnp.float32),   # staged gate pre-activations
            pltpu.VMEM((S, 2 * B, 2 * H), jnp.float32),   # layer-1 staged input
        ],
    )(x2d,
      params["wih_l0"], params["whh_l0"], params["b_l0"],
      params["wih_l1"], params["whh_l1"], params["b_l1"],
      params["w_cls"], params["b_cls"])

    # Second return value mirrors torch.Tensor([[0, 0, 0]]).
    return out, jnp.zeros((1, 3), dtype=jnp.float32)


# ----------------------------------------------------------------------------
# Parameter construction (PyTorch-like uniform init).
# Returns (kernel_params, ref_params):
#   kernel_params: direction-packed along N (Din,8H)/(H,8H), fused biases (1,8H),
#                  with the 2x tanh-from-sigmoid scale folded into the g-gate
#                  columns of W_ih, W_hh and the bias.
#   ref_params:    plain per-direction transposed weights for the pure-JAX check.
# ----------------------------------------------------------------------------
def init_params(key, input_dim, hidden_dim, num_layers=2):
    assert num_layers == 2
    H = hidden_dim
    k = 1.0 / jnp.sqrt(jnp.float32(H))

    def u(key, shape):
        return jax.random.uniform(key, shape, jnp.float32, -k, k)

    # Fold tanh(z) = 2*sigmoid(2z) - 1 : scale the g-gate (columns 2H:3H) by 2.
    gscale = jnp.concatenate([jnp.ones((2 * H,), jnp.float32),
                              2.0 * jnp.ones((H,), jnp.float32),
                              jnp.ones((H,), jnp.float32)])             # (4H,)

    kparams, rparams = {}, {}
    for layer, name in enumerate(["l0", "l1"]):
        in_dim = input_dim if layer == 0 else 2 * H
        wih_dirs, whh_dirs, b_dirs = [], [], []
        for dname in ("f", "r"):
            key, k1, k2, k3, k4 = jax.random.split(key, 5)
            w_ih = u(k1, (4 * H, in_dim))          # PyTorch gate order: i, f, g, o
            w_hh = u(k2, (4 * H, H))
            b_ih = u(k3, (4 * H,))
            b_hh = u(k4, (4 * H,))
            rparams[f"wih_{name}_{dname}"] = w_ih.T
            rparams[f"whh_{name}_{dname}"] = w_hh.T
            rparams[f"b_{name}_{dname}"] = (b_ih + b_hh).reshape(1, 4 * H)
            wih_dirs.append(w_ih.T * gscale)                            # (Din, 4H)
            whh_dirs.append(w_hh.T * gscale)                            # (H, 4H)
            b_dirs.append((b_ih + b_hh) * gscale)                       # (4H,)
        kparams[f"wih_{name}"] = jnp.concatenate(wih_dirs, axis=1)      # (Din, 8H)
        kparams[f"whh_{name}"] = jnp.concatenate(whh_dirs, axis=1)      # (H, 8H)
        kparams[f"b_{name}"] = jnp.concatenate(b_dirs).reshape(1, 8 * H)

    key, k1, k2 = jax.random.split(key, 3)
    kc = 1.0 / jnp.sqrt(jnp.float32(2 * H))
    w_cls = jax.random.uniform(k1, (1, 2 * H), jnp.float32, -kc, kc)
    b_cls = jax.random.uniform(k2, (1,), jnp.float32, -kc, kc)
    kparams["w_cls"] = w_cls.T                                          # (2H, 1)
    kparams["b_cls"] = b_cls.reshape(1, 1)
    rparams["w_cls"] = w_cls.T
    rparams["b_cls"] = b_cls.reshape(1, 1)
    return kparams, rparams


# ----------------------------------------------------------------------------
# Pure-JAX reference (mirrors nn.LSTM / BiLSTM.forward), unscaled weights,
# standard tanh — also validates the tanh-from-sigmoid folding numerically.
# ----------------------------------------------------------------------------
def _lstm_direction_ref(xs, w_ih_t, w_hh_t, b, H):
    def step(carry, x_t):
        h, c = carry
        g = x_t @ w_ih_t + h @ w_hh_t + b
        i = jax.nn.sigmoid(g[:, 0 * H:1 * H])
        f = jax.nn.sigmoid(g[:, 1 * H:2 * H])
        gg = jnp.tanh(g[:, 2 * H:3 * H])
        o = jax.nn.sigmoid(g[:, 3 * H:4 * H])
        c = f * c + i * gg
        h = o * jnp.tanh(c)
        return (h, c), h

    Bsz = xs.shape[1]
    init = (jnp.zeros((Bsz, H), jnp.float32), jnp.zeros((Bsz, H), jnp.float32))
    (h, c), hs = lax.scan(step, init, xs)
    return hs, c


def bilstm_reference(poses, rp):
    x = jnp.transpose(poses, (1, 0, 2))
    H = rp["whh_l0_f"].shape[0]

    def bidir(x, name):
        hf, cf = _lstm_direction_ref(x, rp[f"wih_{name}_f"], rp[f"whh_{name}_f"],
                                     rp[f"b_{name}_f"], H)
        hr, cr = _lstm_direction_ref(x[::-1], rp[f"wih_{name}_r"], rp[f"whh_{name}_r"],
                                     rp[f"b_{name}_r"], H)
        return jnp.concatenate([hf, hr[::-1]], axis=-1), cf, cr

    x1, _, _ = bidir(x, "l0")
    _, cf, cr = bidir(x1, "l1")
    interim = jnp.concatenate([cf, cr], axis=1)
    return jax.nn.sigmoid(interim @ rp["w_cls"] + rp["b_cls"])


if __name__ == "__main__":
    BATCH, SEQ, INPUT_DIM, HIDDEN = 4, 8, 16, 32   # 4H = 128 -> full lane width

    key = jax.random.PRNGKey(0)
    key, pkey, xkey = jax.random.split(key, 3)
    kernel_params, ref_params = init_params(pkey, INPUT_DIM, HIDDEN, num_layers=2)
    poses = jax.random.normal(xkey, (BATCH, SEQ, INPUT_DIM), dtype=jnp.float32)

    out, zeros = bilstm_forward(poses, kernel_params)
    jax.block_until_ready((out, zeros))

    assert out.shape == (BATCH, 1)
    assert zeros.shape == (1, 3)

    ref = bilstm_reference(poses, ref_params)
    assert jnp.allclose(out, ref, atol=2e-4, rtol=2e-4), (out, ref)
    print("KERNEL_OK")
</pallas_src>

<mosaic_0001>
module attributes {stable_mosaic.version = 11 : i64} {
  func.func @_bilstm_fused_kernel(%arg0: memref<64x16xf32, #tpu.memory_space<vmem>>, %arg1: memref<16x256xf32, #tpu.memory_space<vmem>>, %arg2: memref<32x256xf32, #tpu.memory_space<vmem>>, %arg3: memref<1x256xf32, #tpu.memory_space<vmem>>, %arg4: memref<64x256xf32, #tpu.memory_space<vmem>>, %arg5: memref<32x256xf32, #tpu.memory_space<vmem>>, %arg6: memref<1x256xf32, #tpu.memory_space<vmem>>, %arg7: memref<64x1xf32, #tpu.memory_space<vmem>>, %arg8: memref<1x1xf32, #tpu.memory_space<vmem>>, %arg9: memref<4x1xf32, #tpu.memory_space<vmem>>, %arg10: memref<8x8x128xf32, #tpu.memory_space<vmem>>, %arg11: memref<8x8x64xf32, #tpu.memory_space<vmem>>) attributes {dimension_semantics = [], scalar_prefetch = 0 : i64, scratch_operands = 2 : i64, tpu.core_type = #tpu.core_type<tc>} {
    %0 = tpu.iota {dimensions = array<i32: 0>} : vector<8x1xi32>
    %c4_i32 = arith.constant 4 : i32
    %1 = vector.broadcast %c4_i32 : i32 to vector<8x1xi32>
    %2 = arith.cmpi slt, %0, %1 : vector<8x1xi32>
    %c0 = arith.constant 0 : index
    %c0_0 = arith.constant 0 : index
    %3 = vector.load %arg0[%c0, %c0_0] : memref<64x16xf32, #tpu.memory_space<vmem>>, vector<64x16xf32>
    %c0_1 = arith.constant 0 : index
    %c0_2 = arith.constant 0 : index
    %4 = vector.load %arg1[%c0_1, %c0_2] : memref<16x256xf32, #tpu.memory_space<vmem>>, vector<16x256xf32>
    %cst = arith.constant dense<0.000000e+00> : vector<64x256xf32>
    %5 = tpu.matmul %3, %4, %cst {dimension_numbers = #tpu.dot_dimension_numbers<[1], [0], [0], [1], [0, 0, 1, 1], [], []>} : vector<64x16xf32>, vector<16x256xf32>, vector<64x256xf32> -> vector<64x256xf32>
    %c0_3 = arith.constant 0 : index
    %c0_4 = arith.constant 0 : index
    %6 = vector.load %arg3[%c0_3, %c0_4] : memref<1x256xf32, #tpu.memory_space<vmem>>, vector<1x256xf32>
    %7 = vector.broadcast %6 : vector<1x256xf32> to vector<64x256xf32>
    %8 = arith.addf %5, %7 : vector<64x256xf32>
    %9 = vector.extract_strided_slice %8 {offsets = [0, 0], sizes = [8, 256], strides = [1, 1]} : vector<64x256xf32> to vector<8x256xf32>
    %10 = vector.extract_strided_slice %9 {offsets = [0, 0], sizes = [8, 128], strides = [1, 1]} : vector<8x256xf32> to vector<8x128xf32>
    %11 = vector.extract_strided_slice %9 {offsets = [0, 128], sizes = [8, 128], strides = [1, 1]} : vector<8x256xf32> to vector<8x128xf32>
    %12 = vector.shape_cast %2 : vector<8x1xi1> to vector<8x1xi1>
    %13 = vector.broadcast %12 : vector<8x1xi1> to vector<8x128xi1>
    %14 = arith.select %13, %10, %11 : vector<8x128xi1>, vector<8x128xf32>
    %c0_5 = arith.constant 0 : index
    %c0_6 = arith.constant 0 : index
    %c0_7 = arith.constant 0 : index
    %15 = vector.load %arg10[%c0_5, %c0_6, %c0_7] : memref<8x8x128xf32, #tpu.memory_space<vmem>>, vector<1x8x128xf32>
    %16 = vector.shape_cast %15 : vector<1x8x128xf32> to vector<8x128xf32>
    %17 = vector.shape_cast %14 : vector<8x128xf32> to vector<1x8x128xf32>
    tpu.vector_store %arg10[%c0_5, %c0_6, %c0_7], %17 {strides = array<i32>} : memref<8x8x128xf32, #tpu.memory_space<vmem>>, vector<1x8x128xf32>,
    %18 = vector.extract_strided_slice %8 {offsets = [8, 0], sizes = [8, 256], strides = [1, 1]} : vector<64x256xf32> to vector<8x256xf32>
    %19 = vector.extract_strided_slice %18 {offsets = [0, 0], sizes = [8, 128], strides = [1, 1]} : vector<8x256xf32> to vector<8x128xf32>
    %20 = vector.extract_strided_slice %18 {offsets = [0, 128], sizes = [8, 128], strides = [1, 1]} : vector<8x256xf32> to vector<8x128xf32>
    %21 = vector.shape_cast %2 : vector<8x1xi1> to vector<8x1xi1>
    %22 = vector.broadcast %21 : vector<8x1xi1> to vector<8x128xi1>
    %23 = arith.select %22, %19, %20 : vector<8x128xi1>, vector<8x128xf32>
    %c1 = arith.constant 1 : index
    %c0_8 = arith.constant 0 : index
    %c0_9 = arith.constant 0 : index
    %24 = vector.load %arg10[%c1, %c0_8, %c0_9] : memref<8x8x128xf32, #tpu.memory_space<vmem>>, vector<1x8x128xf32>
    %25 = vector.shape_cast %24 : vector<1x8x128xf32> to vector<8x128xf32>
    %26 = vector.shape_cast %23 : vector<8x128xf32> to vector<1x8x128xf32>
    tpu.vector_store %arg10[%c1, %c0_8, %c0_9], %26 {strides = array<i32>} : memref<8x8x128xf32, #tpu.memory_space<vmem>>, vector<1x8x128xf32>,
    %27 = vector.extract_strided_slice %8 {offsets = [16, 0], sizes = [8, 256], strides = [1, 1]} : vector<64x256xf32> to vector<8x256xf32>
    %28 = vector.extract_strided_slice %27 {offsets = [0, 0], sizes = [8, 128], strides = [1, 1]} : vector<8x256xf32> to vector<8x128xf32>
    %29 = vector.extract_strided_slice %27 {offsets = [0, 128], sizes = [8, 128], strides = [1, 1]} : vector<8x256xf32> to vector<8x128xf32>
    %30 = vector.shape_cast %2 : vector<8x1xi1> to vector<8x1xi1>
    %31 = vector.broadcast %30 : vector<8x1xi1> to vector<8x128xi1>
    %32 = arith.select %31, %28, %29 : vector<8x128xi1>, vector<8x128xf32>
    %c2 = arith.constant 2 : index
    %c0_10 = arith.constant 0 : index
    %c0_11 = arith.constant 0 : index
    %33 = vector.load %arg10[%c2, %c0_10, %c0_11] : memref<8x8x128xf32, #tpu.memory_space<vmem>>, vector<1x8x128xf32>
    %34 = vector.shape_cast %33 : vector<1x8x128xf32> to vector<8x128xf32>
    %35 = vector.shape_cast %32 : vector<8x128xf32> to vector<1x8x128xf32>
    tpu.vector_store %arg10[%c2, %c0_10, %c0_11], %35 {strides = array<i32>} : memref<8x8x128xf32, #tpu.memory_space<vmem>>, vector<1x8x128xf32>,
    %36 = vector.extract_strided_slice %8 {offsets = [24, 0], sizes = [8, 256], strides = [1, 1]} : vector<64x256xf32> to vector<8x256xf32>
    %37 = vector.extract_strided_slice %36 {offsets = [0, 0], sizes = [8, 128], strides = [1, 1]} : vector<8x256xf32> to vector<8x128xf32>
    %38 = vector.extract_strided_slice %36 {offsets = [0, 128], sizes = [8, 128], strides = [1, 1]} : vector<8x256xf32> to vector<8x128xf32>
    %39 = vector.shape_cast %2 : vector<8x1xi1> to vector<8x1xi1>
    %40 = vector.broadcast %39 : vector<8x1xi1> to vector<8x128xi1>
    %41 = arith.select %40, %37, %38 : vector<8x128xi1>, vector<8x128xf32>
    %c3 = arith.constant 3 : index
    %c0_12 = arith.constant 0 : index
    %c0_13 = arith.constant 0 : index
    %42 = vector.load %arg10[%c3, %c0_12, %c0_13] : memref<8x8x128xf32, #tpu.memory_space<vmem>>, vector<1x8x128xf32>
    %43 = vector.shape_cast %42 : vector<1x8x128xf32> to vector<8x128xf32>
    %44 = vector.shape_cast %41 : vector<8x128xf32> to vector<1x8x128xf32>
    tpu.vector_store %arg10[%c3, %c0_12, %c0_13], %44 {strides = array<i32>} : memref<8x8x128xf32, #tpu.memory_space<vmem>>, vector<1x8x128xf32>,
    %45 = vector.extract_strided_slice %8 {offsets = [32, 0], sizes = [8, 256], strides = [1, 1]} : vector<64x256xf32> to vector<8x256xf32>
    %46 = vector.extract_strided_slice %45 {offsets = [0, 0], sizes = [8, 128], strides = [1, 1]} : vector<8x256xf32> to vector<8x128xf32>
    %47 = vector.extract_strided_slice %45 {offsets = [0, 128], sizes = [8, 128], strides = [1, 1]} : vector<8x256xf32> to vector<8x128xf32>
    %48 = vector.shape_cast %2 : vector<8x1xi1> to vector<8x1xi1>
    %49 = vector.broadcast %48 : vector<8x1xi1> to vector<8x128xi1>
    %50 = arith.select %49, %46, %47 : vector<8x128xi1>, vector<8x128xf32>
    %c4 = arith.constant 4 : index
    %c0_14 = arith.constant 0 : index
    %c0_15 = arith.constant 0 : index
    %51 = vector.load %arg10[%c4, %c0_14, %c0_15] : memref<8x8x128xf32, #tpu.memory_space<vmem>>, vector<1x8x128xf32>
    %52 = vector.shape_cast %51 : vector<1x8x128xf32> to vector<8x128xf32>
    %53 = vector.shape_cast %50 : vector<8x128xf32> to vector<1x8x128xf32>
    tpu.vector_store %arg10[%c4, %c0_14, %c0_15], %53 {strides = array<i32>} : memref<8x8x128xf32, #tpu.memory_space<vmem>>, vector<1x8x128xf32>,
    %54 = vector.extract_strided_slice %8 {offsets = [40, 0], sizes = [8, 256], strides = [1, 1]} : vector<64x256xf32> to vector<8x256xf32>
    %55 = vector.extract_strided_slice %54 {offsets = [0, 0], sizes = [8, 128], strides = [1, 1]} : vector<8x256xf32> to vector<8x128xf32>
    %56 = vector.extract_strided_slice %54 {offsets = [0, 128], sizes = [8, 128], strides = [1, 1]} : vector<8x256xf32> to vector<8x128xf32>
    %57 = vector.shape_cast %2 : vector<8x1xi1> to vector<8x1xi1>
    %58 = vector.broadcast %57 : vector<8x1xi1> to vector<8x128xi1>
    %59 = arith.select %58, %55, %56 : vector<8x128xi1>, vector<8x128xf32>
    %c5 = arith.constant 5 : index
    %c0_16 = arith.constant 0 : index
    %c0_17 = arith.constant 0 : index
    %60 = vector.load %arg10[%c5, %c0_16, %c0_17] : memref<8x8x128xf32, #tpu.memory_space<vmem>>, vector<1x8x128xf32>
    %61 = vector.shape_cast %60 : vector<1x8x128xf32> to vector<8x128xf32>
    %62 = vector.shape_cast %59 : vector<8x128xf32> to vector<1x8x128xf32>
    tpu.vector_store %arg10[%c5, %c0_16, %c0_17], %62 {strides = array<i32>} : memref<8x8x128xf32, #tpu.memory_space<vmem>>, vector<1x8x128xf32>,
    %63 = vector.extract_strided_slice %8 {offsets = [48, 0], sizes = [8, 256], strides = [1, 1]} : vector<64x256xf32> to vector<8x256xf32>
    %64 = vector.extract_strided_slice %63 {offsets = [0, 0], sizes = [8, 128], strides = [1, 1]} : vector<8x256xf32> to vector<8x128xf32>
    %65 = vector.extract_strided_slice %63 {offsets = [0, 128], sizes = [8, 128], strides = [1, 1]} : vector<8x256xf32> to vector<8x128xf32>
    %66 = vector.shape_cast %2 : vector<8x1xi1> to vector<8x1xi1>
    %67 = vector.broadcast %66 : vector<8x1xi1> to vector<8x128xi1>
    %68 = arith.select %67, %64, %65 : vector<8x128xi1>, vector<8x128xf32>
    %c6 = arith.constant 6 : index
    %c0_18 = arith.constant 0 : index
    %c0_19 = arith.constant 0 : index
    %69 = vector.load %arg10[%c6, %c0_18, %c0_19] : memref<8x8x128xf32, #tpu.memory_space<vmem>>, vector<1x8x128xf32>
    %70 = vector.shape_cast %69 : vector<1x8x128xf32> to vector<8x128xf32>
    %71 = vector.shape_cast %68 : vector<8x128xf32> to vector<1x8x128xf32>
    tpu.vector_store %arg10[%c6, %c0_18, %c0_19], %71 {strides = array<i32>} : memref<8x8x128xf32, #tpu.memory_space<vmem>>, vector<1x8x128xf32>,
    %72 = vector.extract_strided_slice %8 {offsets = [56, 0], sizes = [8, 256], strides = [1, 1]} : vector<64x256xf32> to vector<8x256xf32>
    %73 = vector.extract_strided_slice %72 {offsets = [0, 0], sizes = [8, 128], strides = [1, 1]} : vector<8x256xf32> to vector<8x128xf32>
    %74 = vector.extract_strided_slice %72 {offsets = [0, 128], sizes = [8, 128], strides = [1, 1]} : vector<8x256xf32> to vector<8x128xf32>
    %75 = vector.shape_cast %2 : vector<8x1xi1> to vector<8x1xi1>
    %76 = vector.broadcast %75 : vector<8x1xi1> to vector<8x128xi1>
    %77 = arith.select %76, %73, %74 : vector<8x128xi1>, vector<8x128xf32>
    %c7 = arith.constant 7 : index
    %c0_20 = arith.constant 0 : index
    %c0_21 = arith.constant 0 : index
    %78 = vector.load %arg10[%c7, %c0_20, %c0_21] : memref<8x8x128xf32, #tpu.memory_space<vmem>>, vector<1x8x128xf32>
    %79 = vector.shape_cast %78 : vector<1x8x128xf32> to vector<8x128xf32>
    %80 = vector.shape_cast %77 : vector<8x128xf32> to vector<1x8x128xf32>
    tpu.vector_store %arg10[%c7, %c0_20, %c0_21], %80 {strides = array<i32>} : memref<8x8x128xf32, #tpu.memory_space<vmem>>, vector<1x8x128xf32>,
    %c0_22 = arith.constant 0 : index
    %c0_23 = arith.constant 0 : index
    %81 = vector.load %arg2[%c0_22, %c0_23] : memref<32x256xf32, #tpu.memory_space<vmem>>, vector<32x256xf32>
    %cst_24 = arith.constant 0.000000e+00 : f32
    %82 = vector.broadcast %cst_24 : f32 to vector<8x32xf32>
    %c0_i32 = arith.constant 0 : i32
    %cst_25 = arith.constant dense<0.000000e+00> : vector<8x256xf32>
    %83 = tpu.matmul %82, %81, %cst_25 {dimension_numbers = #tpu.dot_dimension_numbers<[1], [0], [0], [1], [0, 0, 1, 1], [], []>} : vector<8x32xf32>, vector<32x256xf32>, vector<8x256xf32> -> vector<8x256xf32>
    %84 = arith.index_cast %c0_i32 : i32 to index
    %c0_26 = arith.constant 0 : index
    %c0_27 = arith.constant 0 : index
    %85 = vector.load %arg10[%84, %c0_26, %c0_27] : memref<8x8x128xf32, #tpu.memory_space<vmem>>, vector<1x8x128xf32>
    %86 = vector.shape_cast %85 : vector<1x8x128xf32> to vector<8x128xf32>
    %87 = vector.extract_strided_slice %83 {offsets = [0, 0], sizes = [8, 128], strides = [1, 1]} : vector<8x256xf32> to vector<8x128xf32>
    %88 = vector.extract_strided_slice %83 {offsets = [0, 128], sizes = [8, 128], strides = [1, 1]} : vector<8x256xf32> to vector<8x128xf32>
    %89 = vector.shape_cast %2 : vector<8x1xi1> to vector<8x1xi1>
    %90 = vector.broadcast %89 : vector<8x1xi1> to vector<8x128xi1>
    %91 = arith.select %90, %87, %88 : vector<8x128xi1>, vector<8x128xf32>
    %92 = arith.addf %86, %91 : vector<8x128xf32>
    %93 = arith.negf %92 : vector<8x128xf32>
    %94 = math.exp %93 : vector<8x128xf32>
    %cst_28 = arith.constant 1.000000e+00 : f32
    %95 = vector.broadcast %cst_28 : f32 to vector<8x128xf32>
    %96 = arith.addf %95, %94 : vector<8x128xf32>
    %97 = arith.divf %95, %96 : vector<8x128xf32>
    %98 = vector.extract_strided_slice %97 {offsets = [0, 0], sizes = [8, 32], strides = [1, 1]} : vector<8x128xf32> to vector<8x32xf32>
    %99 = vector.extract_strided_slice %97 {offsets = [0, 32], sizes = [8, 32], strides = [1, 1]} : vector<8x128xf32> to vector<8x32xf32>
    %100 = vector.extract_strided_slice %97 {offsets = [0, 64], sizes = [8, 32], strides = [1, 1]} : vector<8x128xf32> to vector<8x32xf32>
    %cst_29 = arith.constant 2.000000e+00 : f32
    %101 = vector.broadcast %cst_29 : f32 to vector<8x32xf32>
    %102 = arith.mulf %101, %100 : vector<8x32xf32>
    %cst_30 = arith.constant 1.000000e+00 : f32
    %103 = vector.broadcast %cst_30 : f32 to vector<8x32xf32>
    %104 = arith.subf %102, %103 : vector<8x32xf32>
    %105 = vector.extract_strided_slice %97 {offsets = [0, 96], sizes = [8, 32], strides = [1, 1]} : vector<8x128xf32> to vector<8x32xf32>
    %106 = arith.mulf %99, %82 : vector<8x32xf32>
    %107 = arith.mulf %98, %104 : vector<8x32xf32>
    %108 = arith.addf %106, %107 : vector<8x32xf32>
    %109 = math.tanh %108 : vector<8x32xf32>
    %110 = arith.mulf %105, %109 : vector<8x32xf32>
    %111 = vector.extract_strided_slice %110 {offsets = [0, 0], sizes = [4, 32], strides = [1, 1]} : vector<8x32xf32> to vector<4x32xf32>
    %112 = vector.extract_strided_slice %110 {offsets = [4, 0], sizes = [4, 32], strides = [1, 1]} : vector<8x32xf32> to vector<4x32xf32>
    %113 = arith.index_cast %c0_i32 : i32 to index
    %c0_31 = arith.constant 0 : index
    %c0_32 = arith.constant 0 : index
    %114 = vector.load %arg11[%113, %c0_31, %c0_32] : memref<8x8x64xf32, #tpu.memory_space<vmem>>, vector<1x4x32xf32>
    %115 = vector.shape_cast %114 : vector<1x4x32xf32> to vector<4x32xf32>
    %116 = vector.shape_cast %111 : vector<4x32xf32> to vector<1x4x32xf32>
    tpu.vector_store %arg11[%113, %c0_31, %c0_32], %116 {strides = array<i32>} : memref<8x8x64xf32, #tpu.memory_space<vmem>>, vector<1x4x32xf32>,
    %c7_i32 = arith.constant 7 : i32
    %117 = arith.subi %c7_i32, %c0_i32 : i32
    %118 = arith.index_cast %117 : i32 to index
    %c4_33 = arith.constant 4 : index
    %c0_34 = arith.constant 0 : index
    %119 = vector.load %arg11[%118, %c4_33, %c0_34] : memref<8x8x64xf32, #tpu.memory_space<vmem>>, vector<1x4x32xf32>
    %120 = vector.shape_cast %119 : vector<1x4x32xf32> to vector<4x32xf32>
    %121 = vector.shape_cast %111 : vector<4x32xf32> to vector<1x4x32xf32>
    tpu.vector_store %arg11[%118, %c4_33, %c0_34], %121 {strides = array<i32>} : memref<8x8x64xf32, #tpu.memory_space<vmem>>, vector<1x4x32xf32>,
    %c7_i32_35 = arith.constant 7 : i32
    %122 = arith.subi %c7_i32_35, %c0_i32 : i32
    %123 = arith.index_cast %122 : i32 to index
    %c0_36 = arith.constant 0 : index
    %c32 = arith.constant 32 : index
    %124 = vector.load %arg11[%123, %c0_36, %c32] : memref<8x8x64xf32, #tpu.memory_space<vmem>>, vector<1x4x32xf32>
    %125 = vector.shape_cast %124 : vector<1x4x32xf32> to vector<4x32xf32>
    %126 = vector.shape_cast %112 : vector<4x32xf32> to vector<1x4x32xf32>
    tpu.vector_store %arg11[%123, %c0_36, %c32], %126 {strides = array<i32>} : memref<8x8x64xf32, #tpu.memory_space<vmem>>, vector<1x4x32xf32>,
    %127 = arith.index_cast %c0_i32 : i32 to index
    %c4_37 = arith.constant 4 : index
    %c32_38 = arith.constant 32 : index
    %128 = vector.load %arg11[%127, %c4_37, %c32_38] : memref<8x8x64xf32, #tpu.memory_space<vmem>>, vector<1x4x32xf32>
    %129 = vector.shape_cast %128 : vector<1x4x32xf32> to vector<4x32xf32>
    %130 = vector.shape_cast %112 : vector<4x32xf32> to vector<1x4x32xf32>
    tpu.vector_store %arg11[%127, %c4_37, %c32_38], %130 {strides = array<i32>} : memref<8x8x64xf32, #tpu.memory_space<vmem>>, vector<1x4x32xf32>,
    %c1_i32 = arith.constant 1 : i32
    %cst_39 = arith.constant dense<0.000000e+00> : vector<8x256xf32>
    %131 = tpu.matmul %110, %81, %cst_39 {dimension_numbers = #tpu.dot_dimension_numbers<[1], [0], [0], [1], [0, 0, 1, 1], [], []>} : vector<8x32xf32>, vector<32x256xf32>, vector<8x256xf32> -> vector<8x256xf32>
    %132 = arith.index_cast %c1_i32 : i32 to index
    %c0_40 = arith.constant 0 : index
    %c0_41 = arith.constant 0 : index
    %133 = vector.load %arg10[%132, %c0_40, %c0_41] : memref<8x8x128xf32, #tpu.memory_space<vmem>>, vector<1x8x128xf32>
    %134 = vector.shape_cast %133 : vector<1x8x128xf32> to vector<8x128xf32>
    %135 = vector.extract_strided_slice %131 {offsets = [0, 0], sizes = [8, 128], strides = [1, 1]} : vector<8x256xf32> to vector<8x128xf32>
    %136 = vector.extract_strided_slice %131 {offsets = [0, 128], sizes = [8, 128], strides = [1, 1]} : vector<8x256xf32> to vector<8x128xf32>
    %137 = vector.shape_cast %2 : vector<8x1xi1> to vector<8x1xi1>
    %138 = vector.broadcast %137 : vector<8x1xi1> to vector<8x128xi1>
    %139 = arith.select %138, %135, %136 : vector<8x128xi1>, vector<8x128xf32>
    %140 = arith.addf %134, %139 : vector<8x128xf32>
    %141 = arith.negf %140 : vector<8x128xf32>
    %142 = math.exp %141 : vector<8x128xf32>
    %cst_42 = arith.constant 1.000000e+00 : f32
    %143 = vector.broadcast %cst_42 : f32 to vector<8x128xf32>
    %144 = arith.addf %143, %142 : vector<8x128xf32>
    %145 = arith.divf %143, %144 : vector<8x128xf32>
    %146 = vector.extract_strided_slice %145 {offsets = [0, 0], sizes = [8, 32], strides = [1, 1]} : vector<8x128xf32> to vector<8x32xf32>
    %147 = vector.extract_strided_slice %145 {offsets = [0, 32], sizes = [8, 32], strides = [1, 1]} : vector<8x128xf32> to vector<8x32xf32>
    %148 = vector.extract_strided_slice %145 {offsets = [0, 64], sizes = [8, 32], strides = [1, 1]} : vector<8x128xf32> to vector<8x32xf32>
    %cst_43 = arith.constant 2.000000e+00 : f32
    %149 = vector.broadcast %cst_43 : f32 to vector<8x32xf32>
    %150 = arith.mulf %149, %148 : vector<8x32xf32>
    %cst_44 = arith.constant 1.000000e+00 : f32
    %151 = vector.broadcast %cst_44 : f32 to vector<8x32xf32>
    %152 = arith.subf %150, %151 : vector<8x32xf32>
    %153 = vector.extract_strided_slice %145 {offsets = [0, 96], sizes = [8, 32], strides = [1, 1]} : vector<8x128xf32> to vector<8x32xf32>
    %154 = arith.mulf %147, %108 : vector<8x32xf32>
    %155 = arith.mulf %146, %152 : vector<8x32xf32>
    %156 = arith.addf %154, %155 : vector<8x32xf32>
    %157 = math.tanh %156 : vector<8x32xf32>
    %158 = arith.mulf %153, %157 : vector<8x32xf32>
    %159 = vector.extract_strided_slice %158 {offsets = [0, 0], sizes = [4, 32], strides = [1, 1]} : vector<8x32xf32> to vector<4x32xf32>
    %160 = vector.extract_strided_slice %158 {offsets = [4, 0], sizes = [4, 32], strides = [1, 1]} : vector<8x32xf32> to vector<4x32xf32>
    %161 = arith.index_cast %c1_i32 : i32 to index
    %c0_45 = arith.constant 0 : index
    %c0_46 = arith.constant 0 : index
    %162 = vector.load %arg11[%161, %c0_45, %c0_46] : memref<8x8x64xf32, #tpu.memory_space<vmem>>, vector<1x4x32xf32>
    %163 = vector.shape_cast %162 : vector<1x4x32xf32> to vector<4x32xf32>
    %164 = vector.shape_cast %159 : vector<4x32xf32> to vector<1x4x32xf32>
    tpu.vector_store %arg11[%161, %c0_45, %c0_46], %164 {strides = array<i32>} : memref<8x8x64xf32, #tpu.memory_space<vmem>>, vector<1x4x32xf32>,
    %c7_i32_47 = arith.constant 7 : i32
    %165 = arith.subi %c7_i32_47, %c1_i32 : i32
    %166 = arith.index_cast %165 : i32 to index
    %c4_48 = arith.constant 4 : index
    %c0_49 = arith.constant 0 : index
    %167 = vector.load %arg11[%166, %c4_48, %c0_49] : memref<8x8x64xf32, #tpu.memory_space<vmem>>, vector<1x4x32xf32>
    %168 = vector.shape_cast %167 : vector<1x4x32xf32> to vector<4x32xf32>
    %169 = vector.shape_cast %159 : vector<4x32xf32> to vector<1x4x32xf32>
    tpu.vector_store %arg11[%166, %c4_48, %c0_49], %169 {strides = array<i32>} : memref<8x8x64xf32, #tpu.memory_space<vmem>>, vector<1x4x32xf32>,
    %c7_i32_50 = arith.constant 7 : i32
    %170 = arith.subi %c7_i32_50, %c1_i32 : i32
    %171 = arith.index_cast %170 : i32 to index
    %c0_51 = arith.constant 0 : index
    %c32_52 = arith.constant 32 : index
    %172 = vector.load %arg11[%171, %c0_51, %c32_52] : memref<8x8x64xf32, #tpu.memory_space<vmem>>, vector<1x4x32xf32>
    %173 = vector.shape_cast %172 : vector<1x4x32xf32> to vector<4x32xf32>
    %174 = vector.shape_cast %160 : vector<4x32xf32> to vector<1x4x32xf32>
    tpu.vector_store %arg11[%171, %c0_51, %c32_52], %174 {strides = array<i32>} : memref<8x8x64xf32, #tpu.memory_space<vmem>>, vector<1x4x32xf32>,
    %175 = arith.index_cast %c1_i32 : i32 to index
    %c4_53 = arith.constant 4 : index
    %c32_54 = arith.constant 32 : index
    %176 = vector.load %arg11[%175, %c4_53, %c32_54] : memref<8x8x64xf32, #tpu.memory_space<vmem>>, vector<1x4x32xf32>
    %177 = vector.shape_cast %176 : vector<1x4x32xf32> to vector<4x32xf32>
    %178 = vector.shape_cast %160 : vector<4x32xf32> to vector<1x4x32xf32>
    tpu.vector_store %arg11[%175, %c4_53, %c32_54], %178 {strides = array<i32>} : memref<8x8x64xf32, #tpu.memory_space<vmem>>, vector<1x4x32xf32>,
    %c2_i32 = arith.constant 2 : i32
    %cst_55 = arith.constant dense<0.000000e+00> : vector<8x256xf32>
    %179 = tpu.matmul %158, %81, %cst_55 {dimension_numbers = #tpu.dot_dimension_numbers<[1], [0], [0], [1], [0, 0, 1, 1], [], []>} : vector<8x32xf32>, vector<32x256xf32>, vector<8x256xf32> -> vector<8x256xf32>
    %180 = arith.index_cast %c2_i32 : i32 to index
    %c0_56 = arith.constant 0 : index
    %c0_57 = arith.constant 0 : index
    %181 = vector.load %arg10[%180, %c0_56, %c0_57] : memref<8x8x128xf32, #tpu.memory_space<vmem>>, vector<1x8x128xf32>
    %182 = vector.shape_cast %181 : vector<1x8x128xf32> to vector<8x128xf32>
    %183 = vector.extract_strided_slice %179 {offsets = [0, 0], sizes = [8, 128], strides = [1, 1]} : vector<8x256xf32> to vector<8x128xf32>
    %184 = vector.extract_strided_slice %179 {offsets = [0, 128], sizes = [8, 128], strides = [1, 1]} : vector<8x256xf32> to vector<8x128xf32>
    %185 = vector.shape_cast %2 : vector<8x1xi1> to vector<8x1xi1>
    %186 = vector.broadcast %185 : vector<8x1xi1> to vector<8x128xi1>
    %187 = arith.select %186, %183, %184 : vector<8x128xi1>, vector<8x128xf32>
    %188 = arith.addf %182, %187 : vector<8x128xf32>
    %189 = arith.negf %188 : vector<8x128xf32>
    %190 = math.exp %189 : vector<8x128xf32>
    %cst_58 = arith.constant 1.000000e+00 : f32
    %191 = vector.broadcast %cst_58 : f32 to vector<8x128xf32>
    %192 = arith.addf %191, %190 : vector<8x128xf32>
    %193 = arith.divf %191, %192 : vector<8x128xf32>
    %194 = vector.extract_strided_slice %193 {offsets = [0, 0], sizes = [8, 32], strides = [1, 1]} : vector<8x128xf32> to vector<8x32xf32>
    %195 = vector.extract_strided_slice %193 {offsets = [0, 32], sizes = [8, 32], strides = [1, 1]} : vector<8x128xf32> to vector<8x32xf32>
    %196 = vector.extract_strided_slice %193 {offsets = [0, 64], sizes = [8, 32], strides = [1, 1]} : vector<8x128xf32> to vector<8x32xf32>
    %cst_59 = arith.constant 2.000000e+00 : f32
    %197 = vector.broadcast %cst_59 : f32 to vector<8x32xf32>
    %198 = arith.mulf %197, %196 : vector<8x32xf32>
    %cst_60 = arith.constant 1.000000e+00 : f32
    %199 = vector.broadcast %cst_60 : f32 to vector<8x32xf32>
    %200 = arith.subf %198, %199 : vector<8x32xf32>
    %201 = vector.extract_strided_slice %193 {offsets = [0, 96], sizes = [8, 32], strides = [1, 1]} : vector<8x128xf32> to vector<8x32xf32>
    %202 = arith.mulf %195, %156 : vector<8x32xf32>
    %203 = arith.mulf %194, %200 : vector<8x32xf32>
    %204 = arith.addf %202, %203 : vector<8x32xf32>
    %205 = math.tanh %204 : vector<8x32xf32>
    %206 = arith.mulf %201, %205 : vector<8x32xf32>
    %207 = vector.extract_strided_slice %206 {offsets = [0, 0], sizes = [4, 32], strides = [1, 1]} : vector<8x32xf32> to vector<4x32xf32>
    %208 = vector.extract_strided_slice %206 {offsets = [4, 0], sizes = [4, 32], strides = [1, 1]} : vector<8x32xf32> to vector<4x32xf32>
    %209 = arith.index_cast %c2_i32 : i32 to index
    %c0_61 = arith.constant 0 : index
    %c0_62 = arith.constant 0 : index
    %210 = vector.load %arg11[%209, %c0_61, %c0_62] : memref<8x8x64xf32, #tpu.memory_space<vmem>>, vector<1x4x32xf32>
    %211 = vector.shape_cast %210 : vector<1x4x32xf32> to vector<4x32xf32>
    %212 = vector.shape_cast %207 : vector<4x32xf32> to vector<1x4x32xf32>
    tpu.vector_store %arg11[%209, %c0_61, %c0_62], %212 {strides = array<i32>} : memref<8x8x64xf32, #tpu.memory_space<vmem>>, vector<1x4x32xf32>,
    %c7_i32_63 = arith.constant 7 : i32
    %213 = arith.subi %c7_i32_63, %c2_i32 : i32
    %214 = arith.index_cast %213 : i32 to index
    %c4_64 = arith.constant 4 : index
    %c0_65 = arith.constant 0 : index
    %215 = vector.load %arg11[%214, %c4_64, %c0_65] : memref<8x8x64xf32, #tpu.memory_space<vmem>>, vector<1x4x32xf32>
    %216 = vector.shape_cast %215 : vector<1x4x32xf32> to vector<4x32xf32>
    %217 = vector.shape_cast %207 : vector<4x32xf32> to vector<1x4x32xf32>
    tpu.vector_store %arg11[%214, %c4_64, %c0_65], %217 {strides = array<i32>} : memref<8x8x64xf32, #tpu.memory_space<vmem>>, vector<1x4x32xf32>,
    %c7_i32_66 = arith.constant 7 : i32
    %218 = arith.subi %c7_i32_66, %c2_i32 : i32
    %219 = arith.index_cast %218 : i32 to index
    %c0_67 = arith.constant 0 : index
    %c32_68 = arith.constant 32 : index
    %220 = vector.load %arg11[%219, %c0_67, %c32_68] : memref<8x8x64xf32, #tpu.memory_space<vmem>>, vector<1x4x32xf32>
    %221 = vector.shape_cast %220 : vector<1x4x32xf32> to vector<4x32xf32>
    %222 = vector.shape_cast %208 : vector<4x32xf32> to vector<1x4x32xf32>
    tpu.vector_store %arg11[%219, %c0_67, %c32_68], %222 {strides = array<i32>} : memref<8x8x64xf32, #tpu.memory_space<vmem>>, vector<1x4x32xf32>,
    %223 = arith.index_cast %c2_i32 : i32 to index
    %c4_69 = arith.constant 4 : index
    %c32_70 = arith.constant 32 : index
    %224 = vector.load %arg11[%223, %c4_69, %c32_70] : memref<8x8x64xf32, #tpu.memory_space<vmem>>, vector<1x4x32xf32>
    %225 = vector.shape_cast %224 : vector<1x4x32xf32> to vector<4x32xf32>
    %226 = vector.shape_cast %208 : vector<4x32xf32> to vector<1x4x32xf32>
    tpu.vector_store %arg11[%223, %c4_69, %c32_70], %226 {strides = array<i32>} : memref<8x8x64xf32, #tpu.memory_space<vmem>>, vector<1x4x32xf32>,
    %c3_i32 = arith.constant 3 : i32
    %cst_71 = arith.constant dense<0.000000e+00> : vector<8x256xf32>
    %227 = tpu.matmul %206, %81, %cst_71 {dimension_numbers = #tpu.dot_dimension_numbers<[1], [0], [0], [1], [0, 0, 1, 1], [], []>} : vector<8x32xf32>, vector<32x256xf32>, vector<8x256xf32> -> vector<8x256xf32>
    %228 = arith.index_cast %c3_i32 : i32 to index
    %c0_72 = arith.constant 0 : index
    %c0_73 = arith.constant 0 : index
    %229 = vector.load %arg10[%228, %c0_72, %c0_73] : memref<8x8x128xf32, #tpu.memory_space<vmem>>, vector<1x8x128xf32>
    %230 = vector.shape_cast %229 : vector<1x8x128xf32> to vector<8x128xf32>
    %231 = vector.extract_strided_slice %227 {offsets = [0, 0], sizes = [8, 128], strides = [1, 1]} : vector<8x256xf32> to vector<8x128xf32>
    %232 = vector.extract_strided_slice %227 {offsets = [0, 128], sizes = [8, 128], strides = [1, 1]} : vector<8x256xf32> to vector<8x128xf32>
    %233 = vector.shape_cast %2 : vector<8x1xi1> to vector<8x1xi1>
    %234 = vector.broadcast %233 : vector<8x1xi1> to vector<8x128xi1>
    %235 = arith.select %234, %231, %232 : vector<8x128xi1>, vector<8x128xf32>
    %236 = arith.addf %230, %235 : vector<8x128xf32>
    %237 = arith.negf %236 : vector<8x128xf32>
    %238 = math.exp %237 : vector<8x128xf32>
    %cst_74 = arith.constant 1.000000e+00 : f32
    %239 = vector.broadcast %cst_74 : f32 to vector<8x128xf32>
    %240 = arith.addf %239, %238 : vector<8x128xf32>
    %241 = arith.divf %239, %240 : vector<8x128xf32>
    %242 = vector.extract_strided_slice %241 {offsets = [0, 0], sizes = [8, 32], strides = [1, 1]} : vector<8x128xf32> to vector<8x32xf32>
    %243 = vector.extract_strided_slice %241 {offsets = [0, 32], sizes = [8, 32], strides = [1, 1]} : vector<8x128xf32> to vector<8x32xf32>
    %244 = vector.extract_strided_slice %241 {offsets = [0, 64], sizes = [8, 32], strides = [1, 1]} : vector<8x128xf32> to vector<8x32xf32>
    %cst_75 = arith.constant 2.000000e+00 : f32
    %245 = vector.broadcast %cst_75 : f32 to vector<8x32xf32>
    %246 = arith.mulf %245, %244 : vector<8x32xf32>
    %cst_76 = arith.constant 1.000000e+00 : f32
    %247 = vector.broadcast %cst_76 : f32 to vector<8x32xf32>
    %248 = arith.subf %246, %247 : vector<8x32xf32>
    %249 = vector.extract_strided_slice %241 {offsets = [0, 96], sizes = [8, 32], strides = [1, 1]} : vector<8x128xf32> to vector<8x32xf32>
    %250 = arith.mulf %243, %204 : vector<8x32xf32>
    %251 = arith.mulf %242, %248 : vector<8x32xf32>
    %252 = arith.addf %250, %251 : vector<8x32xf32>
    %253 = math.tanh %252 : vector<8x32xf32>
    %254 = arith.mulf %249, %253 : vector<8x32xf32>
    %255 = vector.extract_strided_slice %254 {offsets = [0, 0], sizes = [4, 32], strides = [1, 1]} : vector<8x32xf32> to vector<4x32xf32>
    %256 = vector.extract_strided_slice %254 {offsets = [4, 0], sizes = [4, 32], strides = [1, 1]} : vector<8x32xf32> to vector<4x32xf32>
    %257 = arith.index_cast %c3_i32 : i32 to index
    %c0_77 = arith.constant 0 : index
    %c0_78 = arith.constant 0 : index
    %258 = vector.load %arg11[%257, %c0_77, %c0_78] : memref<8x8x64xf32, #tpu.memory_space<vmem>>, vector<1x4x32xf32>
    %259 = vector.shape_cast %258 : vector<1x4x32xf32> to vector<4x32xf32>
    %260 = vector.shape_cast %255 : vector<4x32xf32> to vector<1x4x32xf32>
    tpu.vector_store %arg11[%257, %c0_77, %c0_78], %260 {strides = array<i32>} : memref<8x8x64xf32, #tpu.memory_space<vmem>>, vector<1x4x32xf32>,
    %c7_i32_79 = arith.constant 7 : i32
    %261 = arith.subi %c7_i32_79, %c3_i32 : i32
    %262 = arith.index_cast %261 : i32 to index
    %c4_80 = arith.constant 4 : index
    %c0_81 = arith.constant 0 : index
    %263 = vector.load %arg11[%262, %c4_80, %c0_81] : memref<8x8x64xf32, #tpu.memory_space<vmem>>, vector<1x4x32xf32>
    %264 = vector.shape_cast %263 : vector<1x4x32xf32> to vector<4x32xf32>
    %265 = vector.shape_cast %255 : vector<4x32xf32> to vector<1x4x32xf32>
    tpu.vector_store %arg11[%262, %c4_80, %c0_81], %265 {strides = array<i32>} : memref<8x8x64xf32, #tpu.memory_space<vmem>>, vector<1x4x32xf32>,
    %c7_i32_82 = arith.constant 7 : i32
    %266 = arith.subi %c7_i32_82, %c3_i32 : i32
    %267 = arith.index_cast %266 : i32 to index
    %c0_83 = arith.constant 0 : index
    %c32_84 = arith.constant 32 : index
    %268 = vector.load %arg11[%267, %c0_83, %c32_84] : memref<8x8x64xf32, #tpu.memory_space<vmem>>, vector<1x4x32xf32>
    %269 = vector.shape_cast %268 : vector<1x4x32xf32> to vector<4x32xf32>
    %270 = vector.shape_cast %256 : vector<4x32xf32> to vector<1x4x32xf32>
    tpu.vector_store %arg11[%267, %c0_83, %c32_84], %270 {strides = array<i32>} : memref<8x8x64xf32, #tpu.memory_space<vmem>>, vector<1x4x32xf32>,
    %271 = arith.index_cast %c3_i32 : i32 to index
    %c4_85 = arith.constant 4 : index
    %c32_86 = arith.constant 32 : index
    %272 = vector.load %arg11[%271, %c4_85, %c32_86] : memref<8x8x64xf32, #tpu.memory_space<vmem>>, vector<1x4x32xf32>
    %273 = vector.shape_cast %272 : vector<1x4x32xf32> to vector<4x32xf32>
    %274 = vector.shape_cast %256 : vector<4x32xf32> to vector<1x4x32xf32>
    tpu.vector_store %arg11[%271, %c4_85, %c32_86], %274 {strides = array<i32>} : memref<8x8x64xf32, #tpu.memory_space<vmem>>, vector<1x4x32xf32>,
    %c4_i32_87 = arith.constant 4 : i32
    %cst_88 = arith.constant dense<0.000000e+00> : vector<8x256xf32>
    %275 = tpu.matmul %254, %81, %cst_88 {dimension_numbers = #tpu.dot_dimension_numbers<[1], [0], [0], [1], [0, 0, 1, 1], [], []>} : vector<8x32xf32>, vector<32x256xf32>, vector<8x256xf32> -> vector<8x256xf32>
    %276 = arith.index_cast %c4_i32_87 : i32 to index
    %c0_89 = arith.constant 0 : index
    %c0_90 = arith.constant 0 : index
    %277 = vector.load %arg10[%276, %c0_89, %c0_90] : memref<8x8x128xf32, #tpu.memory_space<vmem>>, vector<1x8x128xf32>
    %278 = vector.shape_cast %277 : vector<1x8x128xf32> to vector<8x128xf32>
    %279 = vector.extract_strided_slice %275 {offsets = [0, 0], sizes = [8, 128], strides = [1, 1]} : vector<8x256xf32> to vector<8x128xf32>
    %280 = vector.extract_strided_slice %275 {offsets = [0, 128], sizes = [8, 128], strides = [1, 1]} : vector<8x256xf32> to vector<8x128xf32>
    %281 = vector.shape_cast %2 : vector<8x1xi1> to vector<8x1xi1>
    %282 = vector.broadcast %281 : vector<8x1xi1> to vector<8x128xi1>
    %283 = arith.select %282, %279, %280 : vector<8x128xi1>, vector<8x128xf32>
    %284 = arith.addf %278, %283 : vector<8x128xf32>
    %285 = arith.negf %284 : vector<8x128xf32>
    %286 = math.exp %285 : vector<8x128xf32>
    %cst_91 = arith.constant 1.000000e+00 : f32
    %287 = vector.broadcast %cst_91 : f32 to vector<8x128xf32>
    %288 = arith.addf %287, %286 : vector<8x128xf32>
    %289 = arith.divf %287, %288 : vector<8x128xf32>
    %290 = vector.extract_strided_slice %289 {offsets = [0, 0], sizes = [8, 32], strides = [1, 1]} : vector<8x128xf32> to vector<8x32xf32>
    %291 = vector.extract_strided_slice %289 {offsets = [0, 32], sizes = [8, 32], strides = [1, 1]} : vector<8x128xf32> to vector<8x32xf32>
    %292 = vector.extract_strided_slice %289 {offsets = [0, 64], sizes = [8, 32], strides = [1, 1]} : vector<8x128xf32> to vector<8x32xf32>
    %cst_92 = arith.constant 2.000000e+00 : f32
    %293 = vector.broadcast %cst_92 : f32 to vector<8x32xf32>
    %294 = arith.mulf %293, %292 : vector<8x32xf32>
    %cst_93 = arith.constant 1.000000e+00 : f32
    %295 = vector.broadcast %cst_93 : f32 to vector<8x32xf32>
    %296 = arith.subf %294, %295 : vector<8x32xf32>
    %297 = vector.extract_strided_slice %289 {offsets = [0, 96], sizes = [8, 32], strides = [1, 1]} : vector<8x128xf32> to vector<8x32xf32>
    %298 = arith.mulf %291, %252 : vector<8x32xf32>
    %299 = arith.mulf %290, %296 : vector<8x32xf32>
    %300 = arith.addf %298, %299 : vector<8x32xf32>
    %301 = math.tanh %300 : vector<8x32xf32>
    %302 = arith.mulf %297, %301 : vector<8x32xf32>
    %303 = vector.extract_strided_slice %302 {offsets = [0, 0], sizes = [4, 32], strides = [1, 1]} : vector<8x32xf32> to vector<4x32xf32>
    %304 = vector.extract_strided_slice %302 {offsets = [4, 0], sizes = [4, 32], strides = [1, 1]} : vector<8x32xf32> to vector<4x32xf32>
    %305 = arith.index_cast %c4_i32_87 : i32 to index
    %c0_94 = arith.constant 0 : index
    %c0_95 = arith.constant 0 : index
    %306 = vector.load %arg11[%305, %c0_94, %c0_95] : memref<8x8x64xf32, #tpu.memory_space<vmem>>, vector<1x4x32xf32>
    %307 = vector.shape_cast %306 : vector<1x4x32xf32> to vector<4x32xf32>
    %308 = vector.shape_cast %303 : vector<4x32xf32> to vector<1x4x32xf32>
    tpu.vector_store %arg11[%305, %c0_94, %c0_95], %308 {strides = array<i32>} : memref<8x8x64xf32, #tpu.memory_space<vmem>>, vector<1x4x32xf32>,
    %c7_i32_96 = arith.constant 7 : i32
    %309 = arith.subi %c7_i32_96, %c4_i32_87 : i32
    %310 = arith.index_cast %309 : i32 to index
    %c4_97 = arith.constant 4 : index
    %c0_98 = arith.constant 0 : index
    %311 = vector.load %arg11[%310, %c4_97, %c0_98] : memref<8x8x64xf32, #tpu.memory_space<vmem>>, vector<1x4x32xf32>
    %312 = vector.shape_cast %311 : vector<1x4x32xf32> to vector<4x32xf32>
    %313 = vector.shape_cast %303 : vector<4x32xf32> to vector<1x4x32xf32>
    tpu.vector_store %arg11[%310, %c4_97, %c0_98], %313 {strides = array<i32>} : memref<8x8x64xf32, #tpu.memory_space<vmem>>, vector<1x4x32xf32>,
    %c7_i32_99 = arith.constant 7 : i32
    %314 = arith.subi %c7_i32_99, %c4_i32_87 : i32
    %315 = arith.index_cast %314 : i32 to index
    %c0_100 = arith.constant 0 : index
    %c32_101 = arith.constant 32 : index
    %316 = vector.load %arg11[%315, %c0_100, %c32_101] : memref<8x8x64xf32, #tpu.memory_space<vmem>>, vector<1x4x32xf32>
    %317 = vector.shape_cast %316 : vector<1x4x32xf32> to vector<4x32xf32>
    %318 = vector.shape_cast %304 : vector<4x32xf32> to vector<1x4x32xf32>
    tpu.vector_store %arg11[%315, %c0_100, %c32_101], %318 {strides = array<i32>} : memref<8x8x64xf32, #tpu.memory_space<vmem>>, vector<1x4x32xf32>,
    %319 = arith.index_cast %c4_i32_87 : i32 to index
    %c4_102 = arith.constant 4 : index
    %c32_103 = arith.constant 32 : index
    %320 = vector.load %arg11[%319, %c4_102, %c32_103] : memref<8x8x64xf32, #tpu.memory_space<vmem>>, vector<1x4x32xf32>
    %321 = vector.shape_cast %320 : vector<1x4x32xf32> to vector<4x32xf32>
    %322 = vector.shape_cast %304 : vector<4x32xf32> to vector<1x4x32xf32>
    tpu.vector_store %arg11[%319, %c4_102, %c32_103], %322 {strides = array<i32>} : memref<8x8x64xf32, #tpu.memory_space<vmem>>, vector<1x4x32xf32>,
    %c5_i32 = arith.constant 5 : i32
    %cst_104 = arith.constant dense<0.000000e+00> : vector<8x256xf32>
    %323 = tpu.matmul %302, %81, %cst_104 {dimension_numbers = #tpu.dot_dimension_numbers<[1], [0], [0], [1], [0, 0, 1, 1], [], []>} : vector<8x32xf32>, vector<32x256xf32>, vector<8x256xf32> -> vector<8x256xf32>
    %324 = arith.index_cast %c5_i32 : i32 to index
    %c0_105 = arith.constant 0 : index
    %c0_106 = arith.constant 0 : index
    %325 = vector.load %arg10[%324, %c0_105, %c0_106] : memref<8x8x128xf32, #tpu.memory_space<vmem>>, vector<1x8x128xf32>
    %326 = vector.shape_cast %325 : vector<1x8x128xf32> to vector<8x128xf32>
    %327 = vector.extract_strided_slice %323 {offsets = [0, 0], sizes = [8, 128], strides = [1, 1]} : vector<8x256xf32> to vector<8x128xf32>
    %328 = vector.extract_strided_slice %323 {offsets = [0, 128], sizes = [8, 128], strides = [1, 1]} : vector<8x256xf32> to vector<8x128xf32>
    %329 = vector.shape_cast %2 : vector<8x1xi1> to vector<8x1xi1>
    %330 = vector.broadcast %329 : vector<8x1xi1> to vector<8x128xi1>
    %331 = arith.select %330, %327, %328 : vector<8x128xi1>, vector<8x128xf32>
    %332 = arith.addf %326, %331 : vector<8x128xf32>
    %333 = arith.negf %332 : vector<8x128xf32>
    %334 = math.exp %333 : vector<8x128xf32>
    %cst_107 = arith.constant 1.000000e+00 : f32
    %335 = vector.broadcast %cst_107 : f32 to vector<8x128xf32>
    %336 = arith.addf %335, %334 : vector<8x128xf32>
    %337 = arith.divf %335, %336 : vector<8x128xf32>
    %338 = vector.extract_strided_slice %337 {offsets = [0, 0], sizes = [8, 32], strides = [1, 1]} : vector<8x128xf32> to vector<8x32xf32>
    %339 = vector.extract_strided_slice %337 {offsets = [0, 32], sizes = [8, 32], strides = [1, 1]} : vector<8x128xf32> to vector<8x32xf32>
    %340 = vector.extract_strided_slice %337 {offsets = [0, 64], sizes = [8, 32], strides = [1, 1]} : vector<8x128xf32> to vector<8x32xf32>
    %cst_108 = arith.constant 2.000000e+00 : f32
    %341 = vector.broadcast %cst_108 : f32 to vector<8x32xf32>
    %342 = arith.mulf %341, %340 : vector<8x32xf32>
    %cst_109 = arith.constant 1.000000e+00 : f32
    %343 = vector.broadcast %cst_109 : f32 to vector<8x32xf32>
    %344 = arith.subf %342, %343 : vector<8x32xf32>
    %345 = vector.extract_strided_slice %337 {offsets = [0, 96], sizes = [8, 32], strides = [1, 1]} : vector<8x128xf32> to vector<8x32xf32>
    %346 = arith.mulf %339, %300 : vector<8x32xf32>
    %347 = arith.mulf %338, %344 : vector<8x32xf32>
    %348 = arith.addf %346, %347 : vector<8x32xf32>
    %349 = math.tanh %348 : vector<8x32xf32>
    %350 = arith.mulf %345, %349 : vector<8x32xf32>
    %351 = vector.extract_strided_slice %350 {offsets = [0, 0], sizes = [4, 32], strides = [1, 1]} : vector<8x32xf32> to vector<4x32xf32>
    %352 = vector.extract_strided_slice %350 {offsets = [4, 0], sizes = [4, 32], strides = [1, 1]} : vector<8x32xf32> to vector<4x32xf32>
    %353 = arith.index_cast %c5_i32 : i32 to index
    %c0_110 = arith.constant 0 : index
    %c0_111 = arith.constant 0 : index
    %354 = vector.load %arg11[%353, %c0_110, %c0_111] : memref<8x8x64xf32, #tpu.memory_space<vmem>>, vector<1x4x32xf32>
    %355 = vector.shape_cast %354 : vector<1x4x32xf32> to vector<4x32xf32>
    %356 = vector.shape_cast %351 : vector<4x32xf32> to vector<1x4x32xf32>
    tpu.vector_store %arg11[%353, %c0_110, %c0_111], %356 {strides = array<i32>} : memref<8x8x64xf32, #tpu.memory_space<vmem>>, vector<1x4x32xf32>,
    %c7_i32_112 = arith.constant 7 : i32
    %357 = arith.subi %c7_i32_112, %c5_i32 : i32
    %358 = arith.index_cast %357 : i32 to index
    %c4_113 = arith.constant 4 : index
    %c0_114 = arith.constant 0 : index
    %359 = vector.load %arg11[%358, %c4_113, %c0_114] : memref<8x8x64xf32, #tpu.memory_space<vmem>>, vector<1x4x32xf32>
    %360 = vector.shape_cast %359 : vector<1x4x32xf32> to vector<4x32xf32>
    %361 = vector.shape_cast %351 : vector<4x32xf32> to vector<1x4x32xf32>
    tpu.vector_store %arg11[%358, %c4_113, %c0_114], %361 {strides = array<i32>} : memref<8x8x64xf32, #tpu.memory_space<vmem>>, vector<1x4x32xf32>,
    %c7_i32_115 = arith.constant 7 : i32
    %362 = arith.subi %c7_i32_115, %c5_i32 : i32
    %363 = arith.index_cast %362 : i32 to index
    %c0_116 = arith.constant 0 : index
    %c32_117 = arith.constant 32 : index
    %364 = vector.load %arg11[%363, %c0_116, %c32_117] : memref<8x8x64xf32, #tpu.memory_space<vmem>>, vector<1x4x32xf32>
    %365 = vector.shape_cast %364 : vector<1x4x32xf32> to vector<4x32xf32>
    %366 = vector.shape_cast %352 : vector<4x32xf32> to vector<1x4x32xf32>
    tpu.vector_store %arg11[%363, %c0_116, %c32_117], %366 {strides = array<i32>} : memref<8x8x64xf32, #tpu.memory_space<vmem>>, vector<1x4x32xf32>,
    %367 = arith.index_cast %c5_i32 : i32 to index
    %c4_118 = arith.constant 4 : index
    %c32_119 = arith.constant 32 : index
    %368 = vector.load %arg11[%367, %c4_118, %c32_119] : memref<8x8x64xf32, #tpu.memory_space<vmem>>, vector<1x4x32xf32>
    %369 = vector.shape_cast %368 : vector<1x4x32xf32> to vector<4x32xf32>
    %370 = vector.shape_cast %352 : vector<4x32xf32> to vector<1x4x32xf32>
    tpu.vector_store %arg11[%367, %c4_118, %c32_119], %370 {strides = array<i32>} : memref<8x8x64xf32, #tpu.memory_space<vmem>>, vector<1x4x32xf32>,
    %c6_i32 = arith.constant 6 : i32
    %cst_120 = arith.constant dense<0.000000e+00> : vector<8x256xf32>
    %371 = tpu.matmul %350, %81, %cst_120 {dimension_numbers = #tpu.dot_dimension_numbers<[1], [0], [0], [1], [0, 0, 1, 1], [], []>} : vector<8x32xf32>, vector<32x256xf32>, vector<8x256xf32> -> vector<8x256xf32>
    %372 = arith.index_cast %c6_i32 : i32 to index
    %c0_121 = arith.constant 0 : index
    %c0_122 = arith.constant 0 : index
    %373 = vector.load %arg10[%372, %c0_121, %c0_122] : memref<8x8x128xf32, #tpu.memory_space<vmem>>, vector<1x8x128xf32>
    %374 = vector.shape_cast %373 : vector<1x8x128xf32> to vector<8x128xf32>
    %375 = vector.extract_strided_slice %371 {offsets = [0, 0], sizes = [8, 128], strides = [1, 1]} : vector<8x256xf32> to vector<8x128xf32>
    %376 = vector.extract_strided_slice %371 {offsets = [0, 128], sizes = [8, 128], strides = [1, 1]} : vector<8x256xf32> to vector<8x128xf32>
    %377 = vector.shape_cast %2 : vector<8x1xi1> to vector<8x1xi1>
    %378 = vector.broadcast %377 : vector<8x1xi1> to vector<8x128xi1>
    %379 = arith.select %378, %375, %376 : vector<8x128xi1>, vector<8x128xf32>
    %380 = arith.addf %374, %379 : vector<8x128xf32>
    %381 = arith.negf %380 : vector<8x128xf32>
    %382 = math.exp %381 : vector<8x128xf32>
    %cst_123 = arith.constant 1.000000e+00 : f32
    %383 = vector.broadcast %cst_123 : f32 to vector<8x128xf32>
    %384 = arith.addf %383, %382 : vector<8x128xf32>
    %385 = arith.divf %383, %384 : vector<8x128xf32>
    %386 = vector.extract_strided_slice %385 {offsets = [0, 0], sizes = [8, 32], strides = [1, 1]} : vector<8x128xf32> to vector<8x32xf32>
    %387 = vector.extract_strided_slice %385 {offsets = [0, 32], sizes = [8, 32], strides = [1, 1]} : vector<8x128xf32> to vector<8x32xf32>
    %388 = vector.extract_strided_slice %385 {offsets = [0, 64], sizes = [8, 32], strides = [1, 1]} : vector<8x128xf32> to vector<8x32xf32>
    %cst_124 = arith.constant 2.000000e+00 : f32
    %389 = vector.broadcast %cst_124 : f32 to vector<8x32xf32>
    %390 = arith.mulf %389, %388 : vector<8x32xf32>
    %cst_125 = arith.constant 1.000000e+00 : f32
    %391 = vector.broadcast %cst_125 : f32 to vector<8x32xf32>
    %392 = arith.subf %390, %391 : vector<8x32xf32>
    %393 = vector.extract_strided_slice %385 {offsets = [0, 96], sizes = [8, 32], strides = [1, 1]} : vector<8x128xf32> to vector<8x32xf32>
    %394 = arith.mulf %387, %348 : vector<8x32xf32>
    %395 = arith.mulf %386, %392 : vector<8x32xf32>
    %396 = arith.addf %394, %395 : vector<8x32xf32>
    %397 = math.tanh %396 : vector<8x32xf32>
    %398 = arith.mulf %393, %397 : vector<8x32xf32>
    %399 = vector.extract_strided_slice %398 {offsets = [0, 0], sizes = [4, 32], strides = [1, 1]} : vector<8x32xf32> to vector<4x32xf32>
    %400 = vector.extract_strided_slice %398 {offsets = [4, 0], sizes = [4, 32], strides = [1, 1]} : vector<8x32xf32> to vector<4x32xf32>
    %401 = arith.index_cast %c6_i32 : i32 to index
    %c0_126 = arith.constant 0 : index
    %c0_127 = arith.constant 0 : index
    %402 = vector.load %arg11[%401, %c0_126, %c0_127] : memref<8x8x64xf32, #tpu.memory_space<vmem>>, vector<1x4x32xf32>
    %403 = vector.shape_cast %402 : vector<1x4x32xf32> to vector<4x32xf32>
    %404 = vector.shape_cast %399 : vector<4x32xf32> to vector<1x4x32xf32>
    tpu.vector_store %arg11[%401, %c0_126, %c0_127], %404 {strides = array<i32>} : memref<8x8x64xf32, #tpu.memory_space<vmem>>, vector<1x4x32xf32>,
    %c7_i32_128 = arith.constant 7 : i32
    %405 = arith.subi %c7_i32_128, %c6_i32 : i32
    %406 = arith.index_cast %405 : i32 to index
    %c4_129 = arith.constant 4 : index
    %c0_130 = arith.constant 0 : index
    %407 = vector.load %arg11[%406, %c4_129, %c0_130] : memref<8x8x64xf32, #tpu.memory_space<vmem>>, vector<1x4x32xf32>
    %408 = vector.shape_cast %407 : vector<1x4x32xf32> to vector<4x32xf32>
    %409 = vector.shape_cast %399 : vector<4x32xf32> to vector<1x4x32xf32>
    tpu.vector_store %arg11[%406, %c4_129, %c0_130], %409 {strides = array<i32>} : memref<8x8x64xf32, #tpu.memory_space<vmem>>, vector<1x4x32xf32>,
    %c7_i32_131 = arith.constant 7 : i32
    %410 = arith.subi %c7_i32_131, %c6_i32 : i32
    %411 = arith.index_cast %410 : i32 to index
    %c0_132 = arith.constant 0 : index
    %c32_133 = arith.constant 32 : index
    %412 = vector.load %arg11[%411, %c0_132, %c32_133] : memref<8x8x64xf32, #tpu.memory_space<vmem>>, vector<1x4x32xf32>
    %413 = vector.shape_cast %412 : vector<1x4x32xf32> to vector<4x32xf32>
    %414 = vector.shape_cast %400 : vector<4x32xf32> to vector<1x4x32xf32>
    tpu.vector_store %arg11[%411, %c0_132, %c32_133], %414 {strides = array<i32>} : memref<8x8x64xf32, #tpu.memory_space<vmem>>, vector<1x4x32xf32>,
    %415 = arith.index_cast %c6_i32 : i32 to index
    %c4_134 = arith.constant 4 : index
    %c32_135 = arith.constant 32 : index
    %416 = vector.load %arg11[%415, %c4_134, %c32_135] : memref<8x8x64xf32, #tpu.memory_space<vmem>>, vector<1x4x32xf32>
    %417 = vector.shape_cast %416 : vector<1x4x32xf32> to vector<4x32xf32>
    %418 = vector.shape_cast %400 : vector<4x32xf32> to vector<1x4x32xf32>
    tpu.vector_store %arg11[%415, %c4_134, %c32_135], %418 {strides = array<i32>} : memref<8x8x64xf32, #tpu.memory_space<vmem>>, vector<1x4x32xf32>,
    %c7_i32_136 = arith.constant 7 : i32
    %cst_137 = arith.constant dense<0.000000e+00> : vector<8x256xf32>
    %419 = tpu.matmul %398, %81, %cst_137 {dimension_numbers = #tpu.dot_dimension_numbers<[1], [0], [0], [1], [0, 0, 1, 1], [], []>} : vector<8x32xf32>, vector<32x256xf32>, vector<8x256xf32> -> vector<8x256xf32>
    %420 = arith.index_cast %c7_i32_136 : i32 to index
    %c0_138 = arith.constant 0 : index
    %c0_139 = arith.constant 0 : index
    %421 = vector.load %arg10[%420, %c0_138, %c0_139] : memref<8x8x128xf32, #tpu.memory_space<vmem>>, vector<1x8x128xf32>
    %422 = vector.shape_cast %421 : vector<1x8x128xf32> to vector<8x128xf32>
    %423 = vector.extract_strided_slice %419 {offsets = [0, 0], sizes = [8, 128], strides = [1, 1]} : vector<8x256xf32> to vector<8x128xf32>
    %424 = vector.extract_strided_slice %419 {offsets = [0, 128], sizes = [8, 128], strides = [1, 1]} : vector<8x256xf32> to vector<8x128xf32>
    %425 = vector.shape_cast %2 : vector<8x1xi1> to vector<8x1xi1>
    %426 = vector.broadcast %425 : vector<8x1xi1> to vector<8x128xi1>
    %427 = arith.select %426, %423, %424 : vector<8x128xi1>, vector<8x128xf32>
    %428 = arith.addf %422, %427 : vector<8x128xf32>
    %429 = arith.negf %428 : vector<8x128xf32>
    %430 = math.exp %429 : vector<8x128xf32>
    %cst_140 = arith.constant 1.000000e+00 : f32
    %431 = vector.broadcast %cst_140 : f32 to vector<8x128xf32>
    %432 = arith.addf %431, %430 : vector<8x128xf32>
    %433 = arith.divf %431, %432 : vector<8x128xf32>
    %434 = vector.extract_strided_slice %433 {offsets = [0, 0], sizes = [8, 32], strides = [1, 1]} : vector<8x128xf32> to vector<8x32xf32>
    %435 = vector.extract_strided_slice %433 {offsets = [0, 32], sizes = [8, 32], strides = [1, 1]} : vector<8x128xf32> to vector<8x32xf32>
    %436 = vector.extract_strided_slice %433 {offsets = [0, 64], sizes = [8, 32], strides = [1, 1]} : vector<8x128xf32> to vector<8x32xf32>
    %cst_141 = arith.constant 2.000000e+00 : f32
    %437 = vector.broadcast %cst_141 : f32 to vector<8x32xf32>
    %438 = arith.mulf %437, %436 : vector<8x32xf32>
    %cst_142 = arith.constant 1.000000e+00 : f32
    %439 = vector.broadcast %cst_142 : f32 to vector<8x32xf32>
    %440 = arith.subf %438, %439 : vector<8x32xf32>
    %441 = vector.extract_strided_slice %433 {offsets = [0, 96], sizes = [8, 32], strides = [1, 1]} : vector<8x128xf32> to vector<8x32xf32>
    %442 = arith.mulf %435, %396 : vector<8x32xf32>
    %443 = arith.mulf %434, %440 : vector<8x32xf32>
    %444 = arith.addf %442, %443 : vector<8x32xf32>
    %445 = math.tanh %444 : vector<8x32xf32>
    %446 = arith.mulf %441, %445 : vector<8x32xf32>
    %447 = vector.extract_strided_slice %446 {offsets = [0, 0], sizes = [4, 32], strides = [1, 1]} : vector<8x32xf32> to vector<4x32xf32>
    %448 = vector.extract_strided_slice %446 {offsets = [4, 0], sizes = [4, 32], strides = [1, 1]} : vector<8x32xf32> to vector<4x32xf32>
    %449 = arith.index_cast %c7_i32_136 : i32 to index
    %c0_143 = arith.constant 0 : index
    %c0_144 = arith.constant 0 : index
    %450 = vector.load %arg11[%449, %c0_143, %c0_144] : memref<8x8x64xf32, #tpu.memory_space<vmem>>, vector<1x4x32xf32>
    %451 = vector.shape_cast %450 : vector<1x4x32xf32> to vector<4x32xf32>
    %452 = vector.shape_cast %447 : vector<4x32xf32> to vector<1x4x32xf32>
    tpu.vector_store %arg11[%449, %c0_143, %c0_144], %452 {strides = array<i32>} : memref<8x8x64xf32, #tpu.memory_space<vmem>>, vector<1x4x32xf32>,
    %c7_i32_145 = arith.constant 7 : i32
    %453 = arith.subi %c7_i32_145, %c7_i32_136 : i32
    %454 = arith.index_cast %453 : i32 to index
    %c4_146 = arith.constant 4 : index
    %c0_147 = arith.constant 0 : index
    %455 = vector.load %arg11[%454, %c4_146, %c0_147] : memref<8x8x64xf32, #tpu.memory_space<vmem>>, vector<1x4x32xf32>
    %456 = vector.shape_cast %455 : vector<1x4x32xf32> to vector<4x32xf32>
    %457 = vector.shape_cast %447 : vector<4x32xf32> to vector<1x4x32xf32>
    tpu.vector_store %arg11[%454, %c4_146, %c0_147], %457 {strides = array<i32>} : memref<8x8x64xf32, #tpu.memory_space<vmem>>, vector<1x4x32xf32>,
    %c7_i32_148 = arith.constant 7 : i32
    %458 = arith.subi %c7_i32_148, %c7_i32_136 : i32
    %459 = arith.index_cast %458 : i32 to index
    %c0_149 = arith.constant 0 : index
    %c32_150 = arith.constant 32 : index
    %460 = vector.load %arg11[%459, %c0_149, %c32_150] : memref<8x8x64xf32, #tpu.memory_space<vmem>>, vector<1x4x32xf32>
    %461 = vector.shape_cast %460 : vector<1x4x32xf32> to vector<4x32xf32>
    %462 = vector.shape_cast %448 : vector<4x32xf32> to vector<1x4x32xf32>
    tpu.vector_store %arg11[%459, %c0_149, %c32_150], %462 {strides = array<i32>} : memref<8x8x64xf32, #tpu.memory_space<vmem>>, vector<1x4x32xf32>,
    %463 = arith.index_cast %c7_i32_136 : i32 to index
    %c4_151 = arith.constant 4 : index
    %c32_152 = arith.constant 32 : index
    %464 = vector.load %arg11[%463, %c4_151, %c32_152] : memref<8x8x64xf32, #tpu.memory_space<vmem>>, vector<1x4x32xf32>
    %465 = vector.shape_cast %464 : vector<1x4x32xf32> to vector<4x32xf32>
    %466 = vector.shape_cast %448 : vector<4x32xf32> to vector<1x4x32xf32>
    tpu.vector_store %arg11[%463, %c4_151, %c32_152], %466 {strides = array<i32>} : memref<8x8x64xf32, #tpu.memory_space<vmem>>, vector<1x4x32xf32>,
    %c8_i32 = arith.constant 8 : i32
    %c0_153 = arith.constant 0 : index
    %c0_154 = arith.constant 0 : index
    %467 = vector.load %arg4[%c0_153, %c0_154] : memref<64x256xf32, #tpu.memory_space<vmem>>, vector<64x256xf32>
    %c0_155 = arith.constant 0 : index
    %c0_156 = arith.constant 0 : index
    %468 = vector.load %arg6[%c0_155, %c0_156] : memref<1x256xf32, #tpu.memory_space<vmem>>, vector<1x256xf32>
    %c0_157 = arith.constant 0 : index
    %c0_158 = arith.constant 0 : index
    %c0_159 = arith.constant 0 : index
    %469 = vector.load %arg11[%c0_157, %c0_158, %c0_159] : memref<8x8x64xf32, #tpu.memory_space<vmem>>, vector<1x8x64xf32>
    %470 = vector.shape_cast %469 : vector<1x8x64xf32> to vector<8x64xf32>
    %cst_160 = arith.constant dense<0.000000e+00> : vector<8x256xf32>
    %471 = tpu.matmul %470, %467, %cst_160 {dimension_numbers = #tpu.dot_dimension_numbers<[1], [0], [0], [1], [0, 0, 1, 1], [], []>} : vector<8x64xf32>, vector<64x256xf32>, vector<8x256xf32> -> vector<8x256xf32>
    %472 = vector.broadcast %468 : vector<1x256xf32> to vector<8x256xf32>
    %473 = arith.addf %471, %472 : vector<8x256xf32>
    %474 = vector.extract_strided_slice %473 {offsets = [0, 0], sizes = [8, 128], strides = [1, 1]} : vector<8x256xf32> to vector<8x128xf32>
    %475 = vector.extract_strided_slice %473 {offsets = [0, 128], sizes = [8, 128], strides = [1, 1]} : vector<8x256xf32> to vector<8x128xf32>
    %476 = vector.shape_cast %2 : vector<8x1xi1> to vector<8x1xi1>
    %477 = vector.broadcast %476 : vector<8x1xi1> to vector<8x128xi1>
    %478 = arith.select %477, %474, %475 : vector<8x128xi1>, vector<8x128xf32>
    %c0_161 = arith.constant 0 : index
    %c0_162 = arith.constant 0 : index
    %c0_163 = arith.constant 0 : index
    %479 = vector.load %arg10[%c0_161, %c0_162, %c0_163] : memref<8x8x128xf32, #tpu.memory_space<vmem>>, vector<1x8x128xf32>
    %480 = vector.shape_cast %479 : vector<1x8x128xf32> to vector<8x128xf32>
    %481 = vector.shape_cast %478 : vector<8x128xf32> to vector<1x8x128xf32>
    tpu.vector_store %arg10[%c0_161, %c0_162, %c0_163], %481 {strides = array<i32>} : memref<8x8x128xf32, #tpu.memory_space<vmem>>, vector<1x8x128xf32>,
    %c1_164 = arith.constant 1 : index
    %c0_165 = arith.constant 0 : index
    %c0_166 = arith.constant 0 : index
    %482 = vector.load %arg11[%c1_164, %c0_165, %c0_166] : memref<8x8x64xf32, #tpu.memory_space<vmem>>, vector<1x8x64xf32>
    %483 = vector.shape_cast %482 : vector<1x8x64xf32> to vector<8x64xf32>
    %cst_167 = arith.constant dense<0.000000e+00> : vector<8x256xf32>
    %484 = tpu.matmul %483, %467, %cst_167 {dimension_numbers = #tpu.dot_dimension_numbers<[1], [0], [0], [1], [0, 0, 1, 1], [], []>} : vector<8x64xf32>, vector<64x256xf32>, vector<8x256xf32> -> vector<8x256xf32>
    %485 = vector.broadcast %468 : vector<1x256xf32> to vector<8x256xf32>
    %486 = arith.addf %484, %485 : vector<8x256xf32>
    %487 = vector.extract_strided_slice %486 {offsets = [0, 0], sizes = [8, 128], strides = [1, 1]} : vector<8x256xf32> to vector<8x128xf32>
    %488 = vector.extract_strided_slice %486 {offsets = [0, 128], sizes = [8, 128], strides = [1, 1]} : vector<8x256xf32> to vector<8x128xf32>
    %489 = vector.shape_cast %2 : vector<8x1xi1> to vector<8x1xi1>
    %490 = vector.broadcast %489 : vector<8x1xi1> to vector<8x128xi1>
    %491 = arith.select %490, %487, %488 : vector<8x128xi1>, vector<8x128xf32>
    %c1_168 = arith.constant 1 : index
    %c0_169 = arith.constant 0 : index
    %c0_170 = arith.constant 0 : index
    %492 = vector.load %arg10[%c1_168, %c0_169, %c0_170] : memref<8x8x128xf32, #tpu.memory_space<vmem>>, vector<1x8x128xf32>
    %493 = vector.shape_cast %492 : vector<1x8x128xf32> to vector<8x128xf32>
    %494 = vector.shape_cast %491 : vector<8x128xf32> to vector<1x8x128xf32>
    tpu.vector_store %arg10[%c1_168, %c0_169, %c0_170], %494 {strides = array<i32>} : memref<8x8x128xf32, #tpu.memory_space<vmem>>, vector<1x8x128xf32>,
    %c2_171 = arith.constant 2 : index
    %c0_172 = arith.constant 0 : index
    %c0_173 = arith.constant 0 : index
    %495 = vector.load %arg11[%c2_171, %c0_172, %c0_173] : memref<8x8x64xf32, #tpu.memory_space<vmem>>, vector<1x8x64xf32>
    %496 = vector.shape_cast %495 : vector<1x8x64xf32> to vector<8x64xf32>
    %cst_174 = arith.constant dense<0.000000e+00> : vector<8x256xf32>
    %497 = tpu.matmul %496, %467, %cst_174 {dimension_numbers = #tpu.dot_dimension_numbers<[1], [0], [0], [1], [0, 0, 1, 1], [], []>} : vector<8x64xf32>, vector<64x256xf32>, vector<8x256xf32> -> vector<8x256xf32>
    %498 = vector.broadcast %468 : vector<1x256xf32> to vector<8x256xf32>
    %499 = arith.addf %497, %498 : vector<8x256xf32>
    %500 = vector.extract_strided_slice %499 {offsets = [0, 0], sizes = [8, 128], strides = [1, 1]} : vector<8x256xf32> to vector<8x128xf32>
    %501 = vector.extract_strided_slice %499 {offsets = [0, 128], sizes = [8, 128], strides = [1, 1]} : vector<8x256xf32> to vector<8x128xf32>
    %502 = vector.shape_cast %2 : vector<8x1xi1> to vector<8x1xi1>
    %503 = vector.broadcast %502 : vector<8x1xi1> to vector<8x128xi1>
    %504 = arith.select %503, %500, %501 : vector<8x128xi1>, vector<8x128xf32>
    %c2_175 = arith.constant 2 : index
    %c0_176 = arith.constant 0 : index
    %c0_177 = arith.constant 0 : index
    %505 = vector.load %arg10[%c2_175, %c0_176, %c0_177] : memref<8x8x128xf32, #tpu.memory_space<vmem>>, vector<1x8x128xf32>
    %506 = vector.shape_cast %505 : vector<1x8x128xf32> to vector<8x128xf32>
    %507 = vector.shape_cast %504 : vector<8x128xf32> to vector<1x8x128xf32>
    tpu.vector_store %arg10[%c2_175, %c0_176, %c0_177], %507 {strides = array<i32>} : memref<8x8x128xf32, #tpu.memory_space<vmem>>, vector<1x8x128xf32>,
    %c3_178 = arith.constant 3 : index
    %c0_179 = arith.constant 0 : index
    %c0_180 = arith.constant 0 : index
    %508 = vector.load %arg11[%c3_178, %c0_179, %c0_180] : memref<8x8x64xf32, #tpu.memory_space<vmem>>, vector<1x8x64xf32>
    %509 = vector.shape_cast %508 : vector<1x8x64xf32> to vector<8x64xf32>
    %cst_181 = arith.constant dense<0.000000e+00> : vector<8x256xf32>
    %510 = tpu.matmul %509, %467, %cst_181 {dimension_numbers = #tpu.dot_dimension_numbers<[1], [0], [0], [1], [0, 0, 1, 1], [], []>} : vector<8x64xf32>, vector<64x256xf32>, vector<8x256xf32> -> vector<8x256xf32>
    %511 = vector.broadcast %468 : vector<1x256xf32> to vector<8x256xf32>
    %512 = arith.addf %510, %511 : vector<8x256xf32>
    %513 = vector.extract_strided_slice %512 {offsets = [0, 0], sizes = [8, 128], strides = [1, 1]} : vector<8x256xf32> to vector<8x128xf32>
    %514 = vector.extract_strided_slice %512 {offsets = [0, 128], sizes = [8, 128], strides = [1, 1]} : vector<8x256xf32> to vector<8x128xf32>
    %515 = vector.shape_cast %2 : vector<8x1xi1> to vector<8x1xi1>
    %516 = vector.broadcast %515 : vector<8x1xi1> to vector<8x128xi1>
    %517 = arith.select %516, %513, %514 : vector<8x128xi1>, vector<8x128xf32>
    %c3_182 = arith.constant 3 : index
    %c0_183 = arith.constant 0 : index
    %c0_184 = arith.constant 0 : index
    %518 = vector.load %arg10[%c3_182, %c0_183, %c0_184] : memref<8x8x128xf32, #tpu.memory_space<vmem>>, vector<1x8x128xf32>
    %519 = vector.shape_cast %518 : vector<1x8x128xf32> to vector<8x128xf32>
    %520 = vector.shape_cast %517 : vector<8x128xf32> to vector<1x8x128xf32>
    tpu.vector_store %arg10[%c3_182, %c0_183, %c0_184], %520 {strides = array<i32>} : memref<8x8x128xf32, #tpu.memory_space<vmem>>, vector<1x8x128xf32>,
    %c4_185 = arith.constant 4 : index
    %c0_186 = arith.constant 0 : index
    %c0_187 = arith.constant 0 : index
    %521 = vector.load %arg11[%c4_185, %c0_186, %c0_187] : memref<8x8x64xf32, #tpu.memory_space<vmem>>, vector<1x8x64xf32>
    %522 = vector.shape_cast %521 : vector<1x8x64xf32> to vector<8x64xf32>
    %cst_188 = arith.constant dense<0.000000e+00> : vector<8x256xf32>
    %523 = tpu.matmul %522, %467, %cst_188 {dimension_numbers = #tpu.dot_dimension_numbers<[1], [0], [0], [1], [0, 0, 1, 1], [], []>} : vector<8x64xf32>, vector<64x256xf32>, vector<8x256xf32> -> vector<8x256xf32>
    %524 = vector.broadcast %468 : vector<1x256xf32> to vector<8x256xf32>
    %525 = arith.addf %523, %524 : vector<8x256xf32>
    %526 = vector.extract_strided_slice %525 {offsets = [0, 0], sizes = [8, 128], strides = [1, 1]} : vector<8x256xf32> to vector<8x128xf32>
    %527 = vector.extract_strided_slice %525 {offsets = [0, 128], sizes = [8, 128], strides = [1, 1]} : vector<8x256xf32> to vector<8x128xf32>
    %528 = vector.shape_cast %2 : vector<8x1xi1> to vector<8x1xi1>
    %529 = vector.broadcast %528 : vector<8x1xi1> to vector<8x128xi1>
    %530 = arith.select %529, %526, %527 : vector<8x128xi1>, vector<8x128xf32>
    %c4_189 = arith.constant 4 : index
    %c0_190 = arith.constant 0 : index
    %c0_191 = arith.constant 0 : index
    %531 = vector.load %arg10[%c4_189, %c0_190, %c0_191] : memref<8x8x128xf32, #tpu.memory_space<vmem>>, vector<1x8x128xf32>
    %532 = vector.shape_cast %531 : vector<1x8x128xf32> to vector<8x128xf32>
    %533 = vector.shape_cast %530 : vector<8x128xf32> to vector<1x8x128xf32>
    tpu.vector_store %arg10[%c4_189, %c0_190, %c0_191], %533 {strides = array<i32>} : memref<8x8x128xf32, #tpu.memory_space<vmem>>, vector<1x8x128xf32>,
    %c5_192 = arith.constant 5 : index
    %c0_193 = arith.constant 0 : index
    %c0_194 = arith.constant 0 : index
    %534 = vector.load %arg11[%c5_192, %c0_193, %c0_194] : memref<8x8x64xf32, #tpu.memory_space<vmem>>, vector<1x8x64xf32>
    %535 = vector.shape_cast %534 : vector<1x8x64xf32> to vector<8x64xf32>
    %cst_195 = arith.constant dense<0.000000e+00> : vector<8x256xf32>
    %536 = tpu.matmul %535, %467, %cst_195 {dimension_numbers = #tpu.dot_dimension_numbers<[1], [0], [0], [1], [0, 0, 1, 1], [], []>} : vector<8x64xf32>, vector<64x256xf32>, vector<8x256xf32> -> vector<8x256xf32>
    %537 = vector.broadcast %468 : vector<1x256xf32> to vector<8x256xf32>
    %538 = arith.addf %536, %537 : vector<8x256xf32>
    %539 = vector.extract_strided_slice %538 {offsets = [0, 0], sizes = [8, 128], strides = [1, 1]} : vector<8x256xf32> to vector<8x128xf32>
    %540 = vector.extract_strided_slice %538 {offsets = [0, 128], sizes = [8, 128], strides = [1, 1]} : vector<8x256xf32> to vector<8x128xf32>
    %541 = vector.shape_cast %2 : vector<8x1xi1> to vector<8x1xi1>
    %542 = vector.broadcast %541 : vector<8x1xi1> to vector<8x128xi1>
    %543 = arith.select %542, %539, %540 : vector<8x128xi1>, vector<8x128xf32>
    %c5_196 = arith.constant 5 : index
    %c0_197 = arith.constant 0 : index
    %c0_198 = arith.constant 0 : index
    %544 = vector.load %arg10[%c5_196, %c0_197, %c0_198] : memref<8x8x128xf32, #tpu.memory_space<vmem>>, vector<1x8x128xf32>
    %545 = vector.shape_cast %544 : vector<1x8x128xf32> to vector<8x128xf32>
    %546 = vector.shape_cast %543 : vector<8x128xf32> to vector<1x8x128xf32>
    tpu.vector_store %arg10[%c5_196, %c0_197, %c0_198], %546 {strides = array<i32>} : memref<8x8x128xf32, #tpu.memory_space<vmem>>, vector<1x8x128xf32>,
    %c6_199 = arith.constant 6 : index
    %c0_200 = arith.constant 0 : index
    %c0_201 = arith.constant 0 : index
    %547 = vector.load %arg11[%c6_199, %c0_200, %c0_201] : memref<8x8x64xf32, #tpu.memory_space<vmem>>, vector<1x8x64xf32>
    %548 = vector.shape_cast %547 : vector<1x8x64xf32> to vector<8x64xf32>
    %cst_202 = arith.constant dense<0.000000e+00> : vector<8x256xf32>
    %549 = tpu.matmul %548, %467, %cst_202 {dimension_numbers = #tpu.dot_dimension_numbers<[1], [0], [0], [1], [0, 0, 1, 1], [], []>} : vector<8x64xf32>, vector<64x256xf32>, vector<8x256xf32> -> vector<8x256xf32>
    %550 = vector.broadcast %468 : vector<1x256xf32> to vector<8x256xf32>
    %551 = arith.addf %549, %550 : vector<8x256xf32>
    %552 = vector.extract_strided_slice %551 {offsets = [0, 0], sizes = [8, 128], strides = [1, 1]} : vector<8x256xf32> to vector<8x128xf32>
    %553 = vector.extract_strided_slice %551 {offsets = [0, 128], sizes = [8, 128], strides = [1, 1]} : vector<8x256xf32> to vector<8x128xf32>
    %554 = vector.shape_cast %2 : vector<8x1xi1> to vector<8x1xi1>
    %555 = vector.broadcast %554 : vector<8x1xi1> to vector<8x128xi1>
    %556 = arith.select %555, %552, %553 : vector<8x128xi1>, vector<8x128xf32>
    %c6_203 = arith.constant 6 : index
    %c0_204 = arith.constant 0 : index
    %c0_205 = arith.constant 0 : index
    %557 = vector.load %arg10[%c6_203, %c0_204, %c0_205] : memref<8x8x128xf32, #tpu.memory_space<vmem>>, vector<1x8x128xf32>
    %558 = vector.shape_cast %557 : vector<1x8x128xf32> to vector<8x128xf32>
    %559 = vector.shape_cast %556 : vector<8x128xf32> to vector<1x8x128xf32>
    tpu.vector_store %arg10[%c6_203, %c0_204, %c0_205], %559 {strides = array<i32>} : memref<8x8x128xf32, #tpu.memory_space<vmem>>, vector<1x8x128xf32>,
    %c7_206 = arith.constant 7 : index
    %c0_207 = arith.constant 0 : index
    %c0_208 = arith.constant 0 : index
    %560 = vector.load %arg11[%c7_206, %c0_207, %c0_208] : memref<8x8x64xf32, #tpu.memory_space<vmem>>, vector<1x8x64xf32>
    %561 = vector.shape_cast %560 : vector<1x8x64xf32> to vector<8x64xf32>
    %cst_209 = arith.constant dense<0.000000e+00> : vector<8x256xf32>
    %562 = tpu.matmul %561, %467, %cst_209 {dimension_numbers = #tpu.dot_dimension_numbers<[1], [0], [0], [1], [0, 0, 1, 1], [], []>} : vector<8x64xf32>, vector<64x256xf32>, vector<8x256xf32> -> vector<8x256xf32>
    %563 = vector.broadcast %468 : vector<1x256xf32> to vector<8x256xf32>
    %564 = arith.addf %562, %563 : vector<8x256xf32>
    %565 = vector.extract_strided_slice %564 {offsets = [0, 0], sizes = [8, 128], strides = [1, 1]} : vector<8x256xf32> to vector<8x128xf32>
    %566 = vector.extract_strided_slice %564 {offsets = [0, 128], sizes = [8, 128], strides = [1, 1]} : vector<8x256xf32> to vector<8x128xf32>
    %567 = vector.shape_cast %2 : vector<8x1xi1> to vector<8x1xi1>
    %568 = vector.broadcast %567 : vector<8x1xi1> to vector<8x128xi1>
    %569 = arith.select %568, %565, %566 : vector<8x128xi1>, vector<8x128xf32>
    %c7_210 = arith.constant 7 : index
    %c0_211 = arith.constant 0 : index
    %c0_212 = arith.constant 0 : index
    %570 = vector.load %arg10[%c7_210, %c0_211, %c0_212] : memref<8x8x128xf32, #tpu.memory_space<vmem>>, vector<1x8x128xf32>
    %571 = vector.shape_cast %570 : vector<1x8x128xf32> to vector<8x128xf32>
    %572 = vector.shape_cast %569 : vector<8x128xf32> to vector<1x8x128xf32>
    tpu.vector_store %arg10[%c7_210, %c0_211, %c0_212], %572 {strides = array<i32>} : memref<8x8x128xf32, #tpu.memory_space<vmem>>, vector<1x8x128xf32>,
    %c0_213 = arith.constant 0 : index
    %c0_214 = arith.constant 0 : index
    %573 = vector.load %arg5[%c0_213, %c0_214] : memref<32x256xf32, #tpu.memory_space<vmem>>, vector<32x256xf32>
    %cst_215 = arith.constant 0.000000e+00 : f32
    %574 = vector.broadcast %cst_215 : f32 to vector<8x32xf32>
    %c0_i32_216 = arith.constant 0 : i32
    %cst_217 = arith.constant dense<0.000000e+00> : vector<8x256xf32>
    %575 = tpu.matmul %574, %573, %cst_217 {dimension_numbers = #tpu.dot_dimension_numbers<[1], [0], [0], [1], [0, 0, 1, 1], [], []>} : vector<8x32xf32>, vector<32x256xf32>, vector<8x256xf32> -> vector<8x256xf32>
    %576 = arith.index_cast %c0_i32_216 : i32 to index
    %c0_218 = arith.constant 0 : index
    %c0_219 = arith.constant 0 : index
    %577 = vector.load %arg10[%576, %c0_218, %c0_219] : memref<8x8x128xf32, #tpu.memory_space<vmem>>, vector<1x8x128xf32>
    %578 = vector.shape_cast %577 : vector<1x8x128xf32> to vector<8x128xf32>
    %579 = vector.extract_strided_slice %575 {offsets = [0, 0], sizes = [8, 128], strides = [1, 1]} : vector<8x256xf32> to vector<8x128xf32>
    %580 = vector.extract_strided_slice %575 {offsets = [0, 128], sizes = [8, 128], strides = [1, 1]} : vector<8x256xf32> to vector<8x128xf32>
    %581 = vector.shape_cast %2 : vector<8x1xi1> to vector<8x1xi1>
    %582 = vector.broadcast %581 : vector<8x1xi1> to vector<8x128xi1>
    %583 = arith.select %582, %579, %580 : vector<8x128xi1>, vector<8x128xf32>
    %584 = arith.addf %578, %583 : vector<8x128xf32>
    %585 = arith.negf %584 : vector<8x128xf32>
    %586 = math.exp %585 : vector<8x128xf32>
    %cst_220 = arith.constant 1.000000e+00 : f32
    %587 = vector.broadcast %cst_220 : f32 to vector<8x128xf32>
    %588 = arith.addf %587, %586 : vector<8x128xf32>
    %589 = arith.divf %587, %588 : vector<8x128xf32>
    %590 = vector.extract_strided_slice %589 {offsets = [0, 0], sizes = [8, 32], strides = [1, 1]} : vector<8x128xf32> to vector<8x32xf32>
    %591 = vector.extract_strided_slice %589 {offsets = [0, 32], sizes = [8, 32], strides = [1, 1]} : vector<8x128xf32> to vector<8x32xf32>
    %592 = vector.extract_strided_slice %589 {offsets = [0, 64], sizes = [8, 32], strides = [1, 1]} : vector<8x128xf32> to vector<8x32xf32>
    %cst_221 = arith.constant 2.000000e+00 : f32
    %593 = vector.broadcast %cst_221 : f32 to vector<8x32xf32>
    %594 = arith.mulf %593, %592 : vector<8x32xf32>
    %cst_222 = arith.constant 1.000000e+00 : f32
    %595 = vector.broadcast %cst_222 : f32 to vector<8x32xf32>
    %596 = arith.subf %594, %595 : vector<8x32xf32>
    %597 = vector.extract_strided_slice %589 {offsets = [0, 96], sizes = [8, 32], strides = [1, 1]} : vector<8x128xf32> to vector<8x32xf32>
    %598 = arith.mulf %591, %574 : vector<8x32xf32>
    %599 = arith.mulf %590, %596 : vector<8x32xf32>
    %600 = arith.addf %598, %599 : vector<8x32xf32>
    %601 = math.tanh %600 : vector<8x32xf32>
    %602 = arith.mulf %597, %601 : vector<8x32xf32>
    %c1_i32_223 = arith.constant 1 : i32
    %cst_224 = arith.constant dense<0.000000e+00> : vector<8x256xf32>
    %603 = tpu.matmul %602, %573, %cst_224 {dimension_numbers = #tpu.dot_dimension_numbers<[1], [0], [0], [1], [0, 0, 1, 1], [], []>} : vector<8x32xf32>, vector<32x256xf32>, vector<8x256xf32> -> vector<8x256xf32>
    %604 = arith.index_cast %c1_i32_223 : i32 to index
    %c0_225 = arith.constant 0 : index
    %c0_226 = arith.constant 0 : index
    %605 = vector.load %arg10[%604, %c0_225, %c0_226] : memref<8x8x128xf32, #tpu.memory_space<vmem>>, vector<1x8x128xf32>
    %606 = vector.shape_cast %605 : vector<1x8x128xf32> to vector<8x128xf32>
    %607 = vector.extract_strided_slice %603 {offsets = [0, 0], sizes = [8, 128], strides = [1, 1]} : vector<8x256xf32> to vector<8x128xf32>
    %608 = vector.extract_strided_slice %603 {offsets = [0, 128], sizes = [8, 128], strides = [1, 1]} : vector<8x256xf32> to vector<8x128xf32>
    %609 = vector.shape_cast %2 : vector<8x1xi1> to vector<8x1xi1>
    %610 = vector.broadcast %609 : vector<8x1xi1> to vector<8x128xi1>
    %611 = arith.select %610, %607, %608 : vector<8x128xi1>, vector<8x128xf32>
    %612 = arith.addf %606, %611 : vector<8x128xf32>
    %613 = arith.negf %612 : vector<8x128xf32>
    %614 = math.exp %613 : vector<8x128xf32>
    %cst_227 = arith.constant 1.000000e+00 : f32
    %615 = vector.broadcast %cst_227 : f32 to vector<8x128xf32>
    %616 = arith.addf %615, %614 : vector<8x128xf32>
    %617 = arith.divf %615, %616 : vector<8x128xf32>
    %618 = vector.extract_strided_slice %617 {offsets = [0, 0], sizes = [8, 32], strides = [1, 1]} : vector<8x128xf32> to vector<8x32xf32>
    %619 = vector.extract_strided_slice %617 {offsets = [0, 32], sizes = [8, 32], strides = [1, 1]} : vector<8x128xf32> to vector<8x32xf32>
    %620 = vector.extract_strided_slice %617 {offsets = [0, 64], sizes = [8, 32], strides = [1, 1]} : vector<8x128xf32> to vector<8x32xf32>
    %cst_228 = arith.constant 2.000000e+00 : f32
    %621 = vector.broadcast %cst_228 : f32 to vector<8x32xf32>
    %622 = arith.mulf %621, %620 : vector<8x32xf32>
    %cst_229 = arith.constant 1.000000e+00 : f32
    %623 = vector.broadcast %cst_229 : f32 to vector<8x32xf32>
    %624 = arith.subf %622, %623 : vector<8x32xf32>
    %625 = vector.extract_strided_slice %617 {offsets = [0, 96], sizes = [8, 32], strides = [1, 1]} : vector<8x128xf32> to vector<8x32xf32>
    %626 = arith.mulf %619, %600 : vector<8x32xf32>
    %627 = arith.mulf %618, %624 : vector<8x32xf32>
    %628 = arith.addf %626, %627 : vector<8x32xf32>
    %629 = math.tanh %628 : vector<8x32xf32>
    %630 = arith.mulf %625, %629 : vector<8x32xf32>
    %c2_i32_230 = arith.constant 2 : i32
    %cst_231 = arith.constant dense<0.000000e+00> : vector<8x256xf32>
    %631 = tpu.matmul %630, %573, %cst_231 {dimension_numbers = #tpu.dot_dimension_numbers<[1], [0], [0], [1], [0, 0, 1, 1], [], []>} : vector<8x32xf32>, vector<32x256xf32>, vector<8x256xf32> -> vector<8x256xf32>
    %632 = arith.index_cast %c2_i32_230 : i32 to index
    %c0_232 = arith.constant 0 : index
    %c0_233 = arith.constant 0 : index
    %633 = vector.load %arg10[%632, %c0_232, %c0_233] : memref<8x8x128xf32, #tpu.memory_space<vmem>>, vector<1x8x128xf32>
    %634 = vector.shape_cast %633 : vector<1x8x128xf32> to vector<8x128xf32>
    %635 = vector.extract_strided_slice %631 {offsets = [0, 0], sizes = [8, 128], strides = [1, 1]} : vector<8x256xf32> to vector<8x128xf32>
    %636 = vector.extract_strided_slice %631 {offsets = [0, 128], sizes = [8, 128], strides = [1, 1]} : vector<8x256xf32> to vector<8x128xf32>
    %637 = vector.shape_cast %2 : vector<8x1xi1> to vector<8x1xi1>
    %638 = vector.broadcast %637 : vector<8x1xi1> to vector<8x128xi1>
    %639 = arith.select %638, %635, %636 : vector<8x128xi1>, vector<8x128xf32>
    %640 = arith.addf %634, %639 : vector<8x128xf32>
    %641 = arith.negf %640 : vector<8x128xf32>
    %642 = math.exp %641 : vector<8x128xf32>
    %cst_234 = arith.constant 1.000000e+00 : f32
    %643 = vector.broadcast %cst_234 : f32 to vector<8x128xf32>
    %644 = arith.addf %643, %642 : vector<8x128xf32>
    %645 = arith.divf %643, %644 : vector<8x128xf32>
    %646 = vector.extract_strided_slice %645 {offsets = [0, 0], sizes = [8, 32], strides = [1, 1]} : vector<8x128xf32> to vector<8x32xf32>
    %647 = vector.extract_strided_slice %645 {offsets = [0, 32], sizes = [8, 32], strides = [1, 1]} : vector<8x128xf32> to vector<8x32xf32>
    %648 = vector.extract_strided_slice %645 {offsets = [0, 64], sizes = [8, 32], strides = [1, 1]} : vector<8x128xf32> to vector<8x32xf32>
    %cst_235 = arith.constant 2.000000e+00 : f32
    %649 = vector.broadcast %cst_235 : f32 to vector<8x32xf32>
    %650 = arith.mulf %649, %648 : vector<8x32xf32>
    %cst_236 = arith.constant 1.000000e+00 : f32
    %651 = vector.broadcast %cst_236 : f32 to vector<8x32xf32>
    %652 = arith.subf %650, %651 : vector<8x32xf32>
    %653 = vector.extract_strided_slice %645 {offsets = [0, 96], sizes = [8, 32], strides = [1, 1]} : vector<8x128xf32> to vector<8x32xf32>
    %654 = arith.mulf %647, %628 : vector<8x32xf32>
    %655 = arith.mulf %646, %652 : vector<8x32xf32>
    %656 = arith.addf %654, %655 : vector<8x32xf32>
    %657 = math.tanh %656 : vector<8x32xf32>
    %658 = arith.mulf %653, %657 : vector<8x32xf32>
    %c3_i32_237 = arith.constant 3 : i32
    %cst_238 = arith.constant dense<0.000000e+00> : vector<8x256xf32>
    %659 = tpu.matmul %658, %573, %cst_238 {dimension_numbers = #tpu.dot_dimension_numbers<[1], [0], [0], [1], [0, 0, 1, 1], [], []>} : vector<8x32xf32>, vector<32x256xf32>, vector<8x256xf32> -> vector<8x256xf32>
    %660 = arith.index_cast %c3_i32_237 : i32 to index
    %c0_239 = arith.constant 0 : index
    %c0_240 = arith.constant 0 : index
    %661 = vector.load %arg10[%660, %c0_239, %c0_240] : memref<8x8x128xf32, #tpu.memory_space<vmem>>, vector<1x8x128xf32>
    %662 = vector.shape_cast %661 : vector<1x8x128xf32> to vector<8x128xf32>
    %663 = vector.extract_strided_slice %659 {offsets = [0, 0], sizes = [8, 128], strides = [1, 1]} : vector<8x256xf32> to vector<8x128xf32>
    %664 = vector.extract_strided_slice %659 {offsets = [0, 128], sizes = [8, 128], strides = [1, 1]} : vector<8x256xf32> to vector<8x128xf32>
    %665 = vector.shape_cast %2 : vector<8x1xi1> to vector<8x1xi1>
    %666 = vector.broadcast %665 : vector<8x1xi1> to vector<8x128xi1>
    %667 = arith.select %666, %663, %664 : vector<8x128xi1>, vector<8x128xf32>
    %668 = arith.addf %662, %667 : vector<8x128xf32>
    %669 = arith.negf %668 : vector<8x128xf32>
    %670 = math.exp %669 : vector<8x128xf32>
    %cst_241 = arith.constant 1.000000e+00 : f32
    %671 = vector.broadcast %cst_241 : f32 to vector<8x128xf32>
    %672 = arith.addf %671, %670 : vector<8x128xf32>
    %673 = arith.divf %671, %672 : vector<8x128xf32>
    %674 = vector.extract_strided_slice %673 {offsets = [0, 0], sizes = [8, 32], strides = [1, 1]} : vector<8x128xf32> to vector<8x32xf32>
    %675 = vector.extract_strided_slice %673 {offsets = [0, 32], sizes = [8, 32], strides = [1, 1]} : vector<8x128xf32> to vector<8x32xf32>
    %676 = vector.extract_strided_slice %673 {offsets = [0, 64], sizes = [8, 32], strides = [1, 1]} : vector<8x128xf32> to vector<8x32xf32>
    %cst_242 = arith.constant 2.000000e+00 : f32
    %677 = vector.broadcast %cst_242 : f32 to vector<8x32xf32>
    %678 = arith.mulf %677, %676 : vector<8x32xf32>
    %cst_243 = arith.constant 1.000000e+00 : f32
    %679 = vector.broadcast %cst_243 : f32 to vector<8x32xf32>
    %680 = arith.subf %678, %679 : vector<8x32xf32>
    %681 = vector.extract_strided_slice %673 {offsets = [0, 96], sizes = [8, 32], strides = [1, 1]} : vector<8x128xf32> to vector<8x32xf32>
    %682 = arith.mulf %675, %656 : vector<8x32xf32>
    %683 = arith.mulf %674, %680 : vector<8x32xf32>
    %684 = arith.addf %682, %683 : vector<8x32xf32>
    %685 = math.tanh %684 : vector<8x32xf32>
    %686 = arith.mulf %681, %685 : vector<8x32xf32>
    %c4_i32_244 = arith.constant 4 : i32
    %cst_245 = arith.constant dense<0.000000e+00> : vector<8x256xf32>
    %687 = tpu.matmul %686, %573, %cst_245 {dimension_numbers = #tpu.dot_dimension_numbers<[1], [0], [0], [1], [0, 0, 1, 1], [], []>} : vector<8x32xf32>, vector<32x256xf32>, vector<8x256xf32> -> vector<8x256xf32>
    %688 = arith.index_cast %c4_i32_244 : i32 to index
    %c0_246 = arith.constant 0 : index
    %c0_247 = arith.constant 0 : index
    %689 = vector.load %arg10[%688, %c0_246, %c0_247] : memref<8x8x128xf32, #tpu.memory_space<vmem>>, vector<1x8x128xf32>
    %690 = vector.shape_cast %689 : vector<1x8x128xf32> to vector<8x128xf32>
    %691 = vector.extract_strided_slice %687 {offsets = [0, 0], sizes = [8, 128], strides = [1, 1]} : vector<8x256xf32> to vector<8x128xf32>
    %692 = vector.extract_strided_slice %687 {offsets = [0, 128], sizes = [8, 128], strides = [1, 1]} : vector<8x256xf32> to vector<8x128xf32>
    %693 = vector.shape_cast %2 : vector<8x1xi1> to vector<8x1xi1>
    %694 = vector.broadcast %693 : vector<8x1xi1> to vector<8x128xi1>
    %695 = arith.select %694, %691, %692 : vector<8x128xi1>, vector<8x128xf32>
    %696 = arith.addf %690, %695 : vector<8x128xf32>
    %697 = arith.negf %696 : vector<8x128xf32>
    %698 = math.exp %697 : vector<8x128xf32>
    %cst_248 = arith.constant 1.000000e+00 : f32
    %699 = vector.broadcast %cst_248 : f32 to vector<8x128xf32>
    %700 = arith.addf %699, %698 : vector<8x128xf32>
    %701 = arith.divf %699, %700 : vector<8x128xf32>
    %702 = vector.extract_strided_slice %701 {offsets = [0, 0], sizes = [8, 32], strides = [1, 1]} : vector<8x128xf32> to vector<8x32xf32>
    %703 = vector.extract_strided_slice %701 {offsets = [0, 32], sizes = [8, 32], strides = [1, 1]} : vector<8x128xf32> to vector<8x32xf32>
    %704 = vector.extract_strided_slice %701 {offsets = [0, 64], sizes = [8, 32], strides = [1, 1]} : vector<8x128xf32> to vector<8x32xf32>
    %cst_249 = arith.constant 2.000000e+00 : f32
    %705 = vector.broadcast %cst_249 : f32 to vector<8x32xf32>
    %706 = arith.mulf %705, %704 : vector<8x32xf32>
    %cst_250 = arith.constant 1.000000e+00 : f32
    %707 = vector.broadcast %cst_250 : f32 to vector<8x32xf32>
    %708 = arith.subf %706, %707 : vector<8x32xf32>
    %709 = vector.extract_strided_slice %701 {offsets = [0, 96], sizes = [8, 32], strides = [1, 1]} : vector<8x128xf32> to vector<8x32xf32>
    %710 = arith.mulf %703, %684 : vector<8x32xf32>
    %711 = arith.mulf %702, %708 : vector<8x32xf32>
    %712 = arith.addf %710, %711 : vector<8x32xf32>
    %713 = math.tanh %712 : vector<8x32xf32>
    %714 = arith.mulf %709, %713 : vector<8x32xf32>
    %c5_i32_251 = arith.constant 5 : i32
    %cst_252 = arith.constant dense<0.000000e+00> : vector<8x256xf32>
    %715 = tpu.matmul %714, %573, %cst_252 {dimension_numbers = #tpu.dot_dimension_numbers<[1], [0], [0], [1], [0, 0, 1, 1], [], []>} : vector<8x32xf32>, vector<32x256xf32>, vector<8x256xf32> -> vector<8x256xf32>
    %716 = arith.index_cast %c5_i32_251 : i32 to index
    %c0_253 = arith.constant 0 : index
    %c0_254 = arith.constant 0 : index
    %717 = vector.load %arg10[%716, %c0_253, %c0_254] : memref<8x8x128xf32, #tpu.memory_space<vmem>>, vector<1x8x128xf32>
    %718 = vector.shape_cast %717 : vector<1x8x128xf32> to vector<8x128xf32>
    %719 = vector.extract_strided_slice %715 {offsets = [0, 0], sizes = [8, 128], strides = [1, 1]} : vector<8x256xf32> to vector<8x128xf32>
    %720 = vector.extract_strided_slice %715 {offsets = [0, 128], sizes = [8, 128], strides = [1, 1]} : vector<8x256xf32> to vector<8x128xf32>
    %721 = vector.shape_cast %2 : vector<8x1xi1> to vector<8x1xi1>
    %722 = vector.broadcast %721 : vector<8x1xi1> to vector<8x128xi1>
    %723 = arith.select %722, %719, %720 : vector<8x128xi1>, vector<8x128xf32>
    %724 = arith.addf %718, %723 : vector<8x128xf32>
    %725 = arith.negf %724 : vector<8x128xf32>
    %726 = math.exp %725 : vector<8x128xf32>
    %cst_255 = arith.constant 1.000000e+00 : f32
    %727 = vector.broadcast %cst_255 : f32 to vector<8x128xf32>
    %728 = arith.addf %727, %726 : vector<8x128xf32>
    %729 = arith.divf %727, %728 : vector<8x128xf32>
    %730 = vector.extract_strided_slice %729 {offsets = [0, 0], sizes = [8, 32], strides = [1, 1]} : vector<8x128xf32> to vector<8x32xf32>
    %731 = vector.extract_strided_slice %729 {offsets = [0, 32], sizes = [8, 32], strides = [1, 1]} : vector<8x128xf32> to vector<8x32xf32>
    %732 = vector.extract_strided_slice %729 {offsets = [0, 64], sizes = [8, 32], strides = [1, 1]} : vector<8x128xf32> to vector<8x32xf32>
    %cst_256 = arith.constant 2.000000e+00 : f32
    %733 = vector.broadcast %cst_256 : f32 to vector<8x32xf32>
    %734 = arith.mulf %733, %732 : vector<8x32xf32>
    %cst_257 = arith.constant 1.000000e+00 : f32
    %735 = vector.broadcast %cst_257 : f32 to vector<8x32xf32>
    %736 = arith.subf %734, %735 : vector<8x32xf32>
    %737 = vector.extract_strided_slice %729 {offsets = [0, 96], sizes = [8, 32], strides = [1, 1]} : vector<8x128xf32> to vector<8x32xf32>
    %738 = arith.mulf %731, %712 : vector<8x32xf32>
    %739 = arith.mulf %730, %736 : vector<8x32xf32>
    %740 = arith.addf %738, %739 : vector<8x32xf32>
    %741 = math.tanh %740 : vector<8x32xf32>
    %742 = arith.mulf %737, %741 : vector<8x32xf32>
    %c6_i32_258 = arith.constant 6 : i32
    %cst_259 = arith.constant dense<0.000000e+00> : vector<8x256xf32>
    %743 = tpu.matmul %742, %573, %cst_259 {dimension_numbers = #tpu.dot_dimension_numbers<[1], [0], [0], [1], [0, 0, 1, 1], [], []>} : vector<8x32xf32>, vector<32x256xf32>, vector<8x256xf32> -> vector<8x256xf32>
    %744 = arith.index_cast %c6_i32_258 : i32 to index
    %c0_260 = arith.constant 0 : index
    %c0_261 = arith.constant 0 : index
    %745 = vector.load %arg10[%744, %c0_260, %c0_261] : memref<8x8x128xf32, #tpu.memory_space<vmem>>, vector<1x8x128xf32>
    %746 = vector.shape_cast %745 : vector<1x8x128xf32> to vector<8x128xf32>
    %747 = vector.extract_strided_slice %743 {offsets = [0, 0], sizes = [8, 128], strides = [1, 1]} : vector<8x256xf32> to vector<8x128xf32>
    %748 = vector.extract_strided_slice %743 {offsets = [0, 128], sizes = [8, 128], strides = [1, 1]} : vector<8x256xf32> to vector<8x128xf32>
    %749 = vector.shape_cast %2 : vector<8x1xi1> to vector<8x1xi1>
    %750 = vector.broadcast %749 : vector<8x1xi1> to vector<8x128xi1>
    %751 = arith.select %750, %747, %748 : vector<8x128xi1>, vector<8x128xf32>
    %752 = arith.addf %746, %751 : vector<8x128xf32>
    %753 = arith.negf %752 : vector<8x128xf32>
    %754 = math.exp %753 : vector<8x128xf32>
    %cst_262 = arith.constant 1.000000e+00 : f32
    %755 = vector.broadcast %cst_262 : f32 to vector<8x128xf32>
    %756 = arith.addf %755, %754 : vector<8x128xf32>
    %757 = arith.divf %755, %756 : vector<8x128xf32>
    %758 = vector.extract_strided_slice %757 {offsets = [0, 0], sizes = [8, 32], strides = [1, 1]} : vector<8x128xf32> to vector<8x32xf32>
    %759 = vector.extract_strided_slice %757 {offsets = [0, 32], sizes = [8, 32], strides = [1, 1]} : vector<8x128xf32> to vector<8x32xf32>
    %760 = vector.extract_strided_slice %757 {offsets = [0, 64], sizes = [8, 32], strides = [1, 1]} : vector<8x128xf32> to vector<8x32xf32>
    %cst_263 = arith.constant 2.000000e+00 : f32
    %761 = vector.broadcast %cst_263 : f32 to vector<8x32xf32>
    %762 = arith.mulf %761, %760 : vector<8x32xf32>
    %cst_264 = arith.constant 1.000000e+00 : f32
    %763 = vector.broadcast %cst_264 : f32 to vector<8x32xf32>
    %764 = arith.subf %762, %763 : vector<8x32xf32>
    %765 = vector.extract_strided_slice %757 {offsets = [0, 96], sizes = [8, 32], strides = [1, 1]} : vector<8x128xf32> to vector<8x32xf32>
    %766 = arith.mulf %759, %740 : vector<8x32xf32>
    %767 = arith.mulf %758, %764 : vector<8x32xf32>
    %768 = arith.addf %766, %767 : vector<8x32xf32>
    %769 = math.tanh %768 : vector<8x32xf32>
    %770 = arith.mulf %765, %769 : vector<8x32xf32>
    %c7_i32_265 = arith.constant 7 : i32
    %cst_266 = arith.constant dense<0.000000e+00> : vector<8x256xf32>
    %771 = tpu.matmul %770, %573, %cst_266 {dimension_numbers = #tpu.dot_dimension_numbers<[1], [0], [0], [1], [0, 0, 1, 1], [], []>} : vector<8x32xf32>, vector<32x256xf32>, vector<8x256xf32> -> vector<8x256xf32>
    %772 = arith.index_cast %c7_i32_265 : i32 to index
    %c0_267 = arith.constant 0 : index
    %c0_268 = arith.constant 0 : index
    %773 = vector.load %arg10[%772, %c0_267, %c0_268] : memref<8x8x128xf32, #tpu.memory_space<vmem>>, vector<1x8x128xf32>
    %774 = vector.shape_cast %773 : vector<1x8x128xf32> to vector<8x128xf32>
    %775 = vector.extract_strided_slice %771 {offsets = [0, 0], sizes = [8, 128], strides = [1, 1]} : vector<8x256xf32> to vector<8x128xf32>
    %776 = vector.extract_strided_slice %771 {offsets = [0, 128], sizes = [8, 128], strides = [1, 1]} : vector<8x256xf32> to vector<8x128xf32>
    %777 = vector.shape_cast %2 : vector<8x1xi1> to vector<8x1xi1>
    %778 = vector.broadcast %777 : vector<8x1xi1> to vector<8x128xi1>
    %779 = arith.select %778, %775, %776 : vector<8x128xi1>, vector<8x128xf32>
    %780 = arith.addf %774, %779 : vector<8x128xf32>
    %781 = arith.negf %780 : vector<8x128xf32>
    %782 = math.exp %781 : vector<8x128xf32>
    %cst_269 = arith.constant 1.000000e+00 : f32
    %783 = vector.broadcast %cst_269 : f32 to vector<8x128xf32>
    %784 = arith.addf %783, %782 : vector<8x128xf32>
    %785 = arith.divf %783, %784 : vector<8x128xf32>
    %786 = vector.extract_strided_slice %785 {offsets = [0, 0], sizes = [8, 32], strides = [1, 1]} : vector<8x128xf32> to vector<8x32xf32>
    %787 = vector.extract_strided_slice %785 {offsets = [0, 32], sizes = [8, 32], strides = [1, 1]} : vector<8x128xf32> to vector<8x32xf32>
    %788 = vector.extract_strided_slice %785 {offsets = [0, 64], sizes = [8, 32], strides = [1, 1]} : vector<8x128xf32> to vector<8x32xf32>
    %cst_270 = arith.constant 2.000000e+00 : f32
    %789 = vector.broadcast %cst_270 : f32 to vector<8x32xf32>
    %790 = arith.mulf %789, %788 : vector<8x32xf32>
    %cst_271 = arith.constant 1.000000e+00 : f32
    %791 = vector.broadcast %cst_271 : f32 to vector<8x32xf32>
    %792 = arith.subf %790, %791 : vector<8x32xf32>
    %793 = vector.extract_strided_slice %785 {offsets = [0, 96], sizes = [8, 32], strides = [1, 1]} : vector<8x128xf32> to vector<8x32xf32>
    %794 = arith.mulf %787, %768 : vector<8x32xf32>
    %795 = arith.mulf %786, %792 : vector<8x32xf32>
    %796 = arith.addf %794, %795 : vector<8x32xf32>
    %797 = math.tanh %796 : vector<8x32xf32>
    %798 = arith.mulf %793, %797 : vector<8x32xf32>
    %c8_i32_272 = arith.constant 8 : i32
    %799 = vector.extract_strided_slice %796 {offsets = [0, 0], sizes = [4, 32], strides = [1, 1]} : vector<8x32xf32> to vector<4x32xf32>
    %800 = vector.extract_strided_slice %796 {offsets = [4, 0], sizes = [4, 32], strides = [1, 1]} : vector<8x32xf32> to vector<4x32xf32>
    %801 = tpu.concatenate %799, %800 in 1 : vector<4x32xf32>, vector<4x32xf32> -> vector<4x64xf32>
    %c0_273 = arith.constant 0 : index
    %c0_274 = arith.constant 0 : index
    %802 = vector.load %arg7[%c0_273, %c0_274] : memref<64x1xf32, #tpu.memory_space<vmem>>, vector<64x1xf32>
    %cst_275 = arith.constant dense<0.000000e+00> : vector<4x1xf32>
    %803 = tpu.matmul %801, %802, %cst_275 {dimension_numbers = #tpu.dot_dimension_numbers<[1], [0], [0], [1], [0, 0, 1, 1], [], []>} : vector<4x64xf32>, vector<64x1xf32>, vector<4x1xf32> -> vector<4x1xf32>
    %c0_276 = arith.constant 0 : index
    %c0_277 = arith.constant 0 : index
    %804 = vector.load %arg8[%c0_276, %c0_277] : memref<1x1xf32, #tpu.memory_space<vmem>>, vector<1x1xf32>
    %805 = vector.broadcast %804 : vector<1x1xf32> to vector<4x1xf32>
    %806 = arith.addf %803, %805 : vector<4x1xf32>
    %807 = arith.negf %806 : vector<4x1xf32>
    %808 = math.exp %807 : vector<4x1xf32>
    %cst_278 = arith.constant 1.000000e+00 : f32
    %809 = vector.broadcast %cst_278 : f32 to vector<4x1xf32>
    %810 = arith.addf %809, %808 : vector<4x1xf32>
    %811 = arith.divf %809, %810 : vector<4x1xf32>
    %c0_279 = arith.constant 0 : index
    %c0_280 = arith.constant 0 : index
    %812 = vector.load %arg9[%c0_279, %c0_280] : memref<4x1xf32, #tpu.memory_space<vmem>>, vector<4x1xf32>
    tpu.vector_store %arg9[%c0_279, %c0_280], %811 {strides = array<i32>} : memref<4x1xf32, #tpu.memory_space<vmem>>, vector<4x1xf32>,
    return
  }
}

</mosaic_0001>

<bundles_post_ra>
// kernel: bilstm_forward.1
= control target key start
LH: loop header
LB: loop body
LE: loop exit
PB: predicated region body
PF: predicated region fallthrough
CT: control target
= control target key end

     0   :  { %vm55_vm0 = vcmask 130048   ;;  %v2298_v10 = vmov 0.0   ;;  %v34_v15 = vlaneseq  ;;  %s2300_s14 = smov 32   ;;  %vm195_vm6 = vcmask 261120   ;;  %s2301_s18 = smov 96   ;;  %s3162_s2 = inlined_call_operand.vmem [shape: f32[32,256], index: 2, kind: input, shape index: {}]   ;;  %s3163_s1 = inlined_call_operand.vmem [shape: f32[16,256], index: 1, kind: input, shape index: {}]   ;;  %s3164_s0 = inlined_call_operand.vmem [shape: f32[64,16], index: 0, kind: input, shape index: {}]   ;;  %s3165_s3 = inlined_call_operand.vmem [shape: f32[1,256], index: 3, kind: input, shape index: {}]   ;;  %s3166_s4 = inlined_call_operand.vmem [shape: f32[64,256], index: 4, kind: input, shape index: {}]   ;;  %s3167_s5 = inlined_call_operand.vmem [shape: f32[32,256], index: 5, kind: input, shape index: {}]   ;;  %s3168_s6 = inlined_call_operand.vmem [shape: f32[1,256], index: 6, kind: input, shape index: {}]   ;;  %s3169_s7 = inlined_call_operand.vmem [shape: f32[64,1], index: 7, kind: input, shape index: {}]   ;;  %s3170_s8 = inlined_call_operand.<no memory space> [shape: f32[1,1], index: 8, kind: input, shape index: {}]   ;;  %s3171_s9 = inlined_call_operand.vmem [shape: f32[4,1], index: 9, kind: output, shape index: {}]  }
   0x1   :  { %v2355_v0 = vld [vmem:[%s3162_s2 + $0x30] sm:$0xff]  ;;  %v2360_v1 = vld [vmem:[%s3162_s2 + $0x20] sm:$0xff]  ;;  %v48_v4 = vld [vmem:[%s3163_s1 + $0x18] sm:$0xff]  ;;  %vm284_vm7 = vcmask 257024  }
   0x2   :  { %211 = vmatpush.msra.mxu3 %v2355_v0  ;;  %308 = vmatpush.msra.mxu2 %v2355_v0  ;;  %v2367_v2 = vld [vmem:[%s3162_s2 + $0x10] sm:$0xff]  ;;  %v45_v5 = vld [vmem:[%s3163_s1] sm:$0xff]  ;;  %v46_v6 = vld [vmem:[%s3163_s1 + $0x8] sm:$0xff]  ;;  %v2442_v21 = vshrl.u32 %v34_v15, 7 }
   0x3   :  { %v47_v3 = vld [vmem:[%s3163_s1 + $0x10] sm:$0xff]  ;;  %v2385_v7 = vld [vmem:[%s3162_s2] sm:$0xff]  ;;  %135 = vmatpush.msra.mxu1 %v48_v4  ;;  %v2395_v9 = vld [vmem:[%s3162_s2 + $0x38] sm:$0xff] }
   0x4   :  { %212 = vmatpush.msra.mxu3 %v2360_v1  ;;  %94 = vmatpush.msra.mxu0 %v47_v3  ;;  %v37_v8 = vld [vmem:[%s3164_s0] sm:$0xff]  ;;  %v2404_v11 = vld [vmem:[%s3162_s2 + $0x28] sm:$0xff]  ;;  %v2411_v12 = vld [vmem:[%s3162_s2 + $0x18] sm:$0xff]  ;;  %vm36_vm1 = vcmp.lt.s32.totalorder %v2442_v21, 4 }
   0x5   :  { %309 = vmatpush.msra.mxu2 %v2360_v1  ;;  %136 = vmatpush.msra.mxu1 %v46_v6  ;;  %v2419_v13 = vld [vmem:[%s3162_s2 + $0x8] sm:$0xff]  ;;  %v49_v14 = vld [vmem:[%s3165_s3] sm:$0x3]  ;;  %s2299_s3 = smov 64  }
   0x6   :  { %213 = vmatpush.msra.mxu3 %v2367_v2  ;;  %95 = vmatpush.msra.mxu0 %v45_v5  ;;  %v2438_v16 = vperm.slane %v49_v14, 0  ;;  %v2440_v18 = vperm.slane %v49_v14, 1  ;;  %v38_v51 = vld [vmem:[%s3164_s0 + $0x8] sm:$0xff] }
   0x7   :  { %2101 = vmatmul.msk.f32.vlgmr.msra.gmra.mxu0 %vm55_vm0, %v37_v8  ;;  %2109 = vmatmul.msk.f32.vlgmr.msra.gmra.mxu1 %vm55_vm0, %v37_v8 }
   0x8   :  { %214 = vmatpush.msra.mxu3 %v2385_v7  ;;  %310 = vmatpush.msra.mxu2 %v2367_v2 }
   0x9   :  { %215 = vmatmul.f32.vlgmr.msra.gmra.mxu3 %v2298_v10 }
   0xa   :  { %231 = vmatpush.msrb.mxu3 %v2395_v9  ;;  %311 = vmatpush.msra.mxu2 %v2385_v7 }
   0xc   :  { %232 = vmatpush.msrb.mxu3 %v2404_v11  ;;  %404 = vmatpush.msrb.mxu2 %v2355_v0 }
   0xe   :  { %233 = vmatpush.msrb.mxu3 %v2411_v12  ;;  %405 = vmatpush.msrb.mxu2 %v2360_v1 }
   0xf   :  { %2102 = vmatmul.msk.f32.gmra.mxu0 %vm55_vm0, %v38_v51  ;;  %2110 = vmatmul.msk.f32.gmra.mxu1 %vm55_vm0, %v38_v51 }
  0x10   :  { %234 = vmatpush.msrb.mxu3 %v2419_v13  ;;  %406 = vmatpush.msrb.mxu2 %v2367_v2 }
  0x11   :  { %235 = vmatmul.f32.vlgmr.msrb.gmra.mxu3 %v2298_v10 }
  0x12   :  { %328 = vmatpush.msra.mxu3 %v2395_v9  ;;  %407 = vmatpush.msrb.mxu2 %v2385_v7 }
  0x14   :  { %329 = vmatpush.msra.mxu3 %v2404_v11 }
  0x16   :  { %330 = vmatpush.msra.mxu3 %v2411_v12 }
  0x18   :  { %331 = vmatpush.msra.mxu3 %v2419_v13 }
  0x1a   :  { %424 = vmatpush.msrb.mxu3 %v2395_v9 }
  0x1c   :  { %425 = vmatpush.msrb.mxu3 %v2404_v11 }
  0x1e   :  { %426 = vmatpush.msrb.mxu3 %v2411_v12 }
  0x20   :  { %427 = vmatpush.msrb.mxu3 %v2419_v13 }
  0x84   :  { %v97_v17 = vpop.f32.mrf.mxu0  ;;  %v138_v20 = vpop.f32.mrf.mxu1 }
  0x85   :  { %v98_v22 = vadd.f32 %v97_v17, %v2438_v16  ;;  %v139_v23 = vadd.f32 %v138_v20, %v2440_v18 }
  0x87   :  { %v164_v24 = vsel %vm36_vm1, %v98_v22, %v139_v23 }
  0x8c   :  { %v216_v19 = vpop.f32.mrf.mxu3  ;;  %v100_v53 = vpop.f32.mrf.mxu0 }
  0x8d   :  { %v141_v54 = vpop.f32.mrf.mxu1  ;;  %v101_v55 = vadd.f32 %v100_v53, %v2438_v16 }
  0x8e   :  { %v142_v56 = vadd.f32 %v141_v54, %v2440_v18 }
  0x90   :  { %v166_v57 = vsel %vm36_vm1, %v101_v55, %v142_v56 }
  0x94   :  { %v236_v25 = vpop.f32.mrf.mxu3 }
  0x95   :  { %v240_v26 = vsel %vm36_vm1, %v216_v19, %v236_v25 }
  0x96   :  { %v241_v27 = vadd.f32 %v240_v26, %v164_v24 }
  0x98   :  { %v2117_v28 = vmul.f32 -1.442695, %v241_v27 }
  0x9a   :  { %2200 = vpow2.f32 %v2117_v28 }
  0xa0   :  { %v2201_v29 = vpop.eup %2200 }
  0xa1   :  { %v245_v30 = vadd.f32 1.0, %v2201_v29 }
  0xa3   :  { %2202 = vrcp.f32 %v245_v30  ;;  %v257_v34 = vand.u32 2147483648, %v245_v30  ;;  %v255_v36 = vand.u32 2147483647, %v245_v30  ;;  %vm251_vm3 = vweird.f32 %v245_v30 }
  0xa5   :  { %v258_v38 = vor.u32 1.1754944e-38, %v257_v34  ;;  %vm256_vm5 = vcmp.eq.f32.partialorder %v255_v36, 8.507059e+37 }
  0xa9   :  { %v2203_v31 = vpop.eup %2202 }
  0xaa   :  { %v247_v32 = vmul.f32 %v2203_v31, %v245_v30  ;;  %vm252_vm2 = vweird.f32 %v2203_v31 }
  0xab   :  { %vm253_vm4 = vmor %vm251_vm3, %vm252_vm2 }
  0xac   :  { %v248_v33 = vsub.f32 1.0, %v247_v32 }
  0xae   :  { %v249_v35 = vmul.f32 %v2203_v31, %v248_v33  ;;  %v39_v33 = vld [vmem:[%s3164_s0 + $0x10] sm:$0xff] }
  0xaf   :  { %2103 = vmatmul.msk.f32.gmra.mxu0 %vm55_vm0, %v39_v33  ;;  %2111 = vmatmul.msk.f32.gmra.mxu1 %vm55_vm0, %v39_v33 }
  0xb0   :  { %v250_v37 = vadd.f32 %v2203_v31, %v249_v35 }
  0xb2   :  { %v254_v39 = vsel %vm253_vm4, %v2203_v31, %v250_v37 }
  0xb3   :  { %v259_v40 = vsel %vm256_vm5, %v258_v38, %v254_v39 }
  0xb4   :  { %v261_v41 = vmul.f32 2.0, %v259_v40  ;;  %v263_v45 = vmul.f32 0.0, %v259_v40 }
  0xb6   :  { %v2118_v42 = vadd.f32 -1.0, %v261_v41 }
  0xb8   :  { %265 = vrot.lane.b32.xlu0 %v2118_v42, %s2299_s3 }
 0x12a   :  { %v266_v43 = vpop.permute.xlu0 %265 }
 0x12b   :  { %v268_v44 = vmul.f32 %v266_v43, %v259_v40 }
 0x12c   :  { %v103_v35 = vpop.f32.mrf.mxu0  ;;  %v144_v36 = vpop.f32.mrf.mxu1 }
 0x12d   :  { %270 = vrot.lane.b32.xlu0 %v268_v44, %s2300_s14  ;;  %v104_v37 = vadd.f32 %v103_v35, %v2438_v16  ;;  %v145_v38 = vadd.f32 %v144_v36, %v2440_v18 }
 0x12f   :  { %v169_v39 = vsel %vm36_vm1, %v104_v37, %v145_v38 }
 0x19f   :  { %v271_v46 = vpop.permute.xlu0 %270 }
 0x1a0   :  { %v273_v47 = vadd.f32 %v271_v46, %v263_v45 }
 0x1a2   :  { %2204 = vtanh.f32 %v273_v47 }
 0x1a8   :  { %v2205_v48 = vpop.eup %2204 }
 0x1a9   :  { %276 = vrot.lane.b32.xlu1 %v2205_v48, %s2299_s3 }
 0x21b   :  { %v277_v49 = vpop.permute.xlu1 %276 }
 0x21c   :  { %v2454_v50 = vmul.f32 %v277_v49, %v259_v40 }
 0x21e   :  { %281 = vrot.lane.b32.xlu1 %v2454_v50, %s2300_s14 }
 0x290   :  { %v282_v52 = vpop.permute.xlu1 %281 }
 0x291   :  { %2119 = vmatmul.msk.f32.vlgmr.msra.gmra.mxu2 %vm195_vm6, %v282_v52  ;;  %2120 = vmatmul.msk.f32.vlgmr.msra.gmra.mxu3 %vm195_vm6, %v282_v52  ;;  %285 = vst.msk [vmem:[#allocation3] sm:$0xf] %vm284_vm7, %v282_v52 }
 0x292   :  { %500 = vmatpush.msra.mxu2 %v2355_v0  ;;  %520 = vmatpush.msra.mxu3 %v2395_v9  ;;  %287 = vst.msk [vmem:[#allocation3 + $0x3c] sm:$0xf] %vm284_vm7, %v282_v52 }
 0x294   :  { %501 = vmatpush.msra.mxu2 %v2360_v1  ;;  %521 = vmatpush.msra.mxu3 %v2404_v11 }
 0x296   :  { %502 = vmatpush.msra.mxu2 %v2367_v2  ;;  %522 = vmatpush.msra.mxu3 %v2411_v12 }
 0x298   :  { %503 = vmatpush.msra.mxu2 %v2385_v7  ;;  %523 = vmatpush.msra.mxu3 %v2419_v13 }
 0x314   :  { %v313_v58 = vpop.f32.mrf.mxu2  ;;  %v333_v59 = vpop.f32.mrf.mxu3 }
 0x315   :  { %v337_v60 = vsel %vm36_vm1, %v313_v58, %v333_v59 }
 0x316   :  { %v338_v61 = vadd.f32 %v337_v60, %v166_v57 }
 0x318   :  { %v2121_v62 = vmul.f32 -1.442695, %v338_v61 }
 0x31a   :  { %2206 = vpow2.f32 %v2121_v62 }
 0x320   :  { %v2207_v63 = vpop.eup %2206 }
 0x321   :  { %v342_v3 = vadd.f32 1.0, %v2207_v63 }
 0x323   :  { %2208 = vrcp.f32 %v342_v3  ;;  %v354_v8 = vand.u32 2147483648, %v342_v3  ;;  %v352_v15 = vand.u32 2147483647, %v342_v3  ;;  %vm348_vm9 = vweird.f32 %v342_v3 }
 0x325   :  { %v355_v19 = vor.u32 1.1754944e-38, %v354_v8  ;;  %vm353_vm11 = vcmp.eq.f32.partialorder %v352_v15, 8.507059e+37  ;;  %v40_v8 = vld [vmem:[%s3164_s0 + $0x18] sm:$0xff] }
 0x326   :  { %2104 = vmatmul.msk.f32.gmra.mxu0 %vm55_vm0, %v40_v8  ;;  %2112 = vmatmul.msk.f32.gmra.mxu1 %vm55_vm0, %v40_v8 }
 0x329   :  { %v2209_v4 = vpop.eup %2208 }
 0x32a   :  { %v344_v5 = vmul.f32 %v2209_v4, %v342_v3  ;;  %vm349_vm8 = vweird.f32 %v2209_v4 }
 0x32b   :  { %vm350_vm10 = vmor %vm348_vm9, %vm349_vm8 }
 0x32c   :  { %v345_v6 = vsub.f32 1.0, %v344_v5 }
 0x32e   :  { %v346_v14 = vmul.f32 %v2209_v4, %v345_v6 }
 0x330   :  { %v347_v17 = vadd.f32 %v2209_v4, %v346_v14 }
 0x332   :  { %v351_v20 = vsel %vm350_vm10, %v2209_v4, %v347_v17 }
 0x333   :  { %v356_v22 = vsel %vm353_vm11, %v355_v19, %v351_v20 }
 0x334   :  { %v358_v23 = vmul.f32 2.0, %v356_v22  ;;  %v360_v27 = vmul.f32 %v356_v22, %v273_v47 }
 0x336   :  { %v2122_v24 = vadd.f32 -1.0, %v358_v23 }
 0x338   :  { %362 = vrot.lane.b32.xlu2 %v2122_v24, %s2299_s3 }
 0x392   :  { %v363_v25 = vpop.permute.xlu2 %362 }
 0x393   :  { %v365_v26 = vmul.f32 %v363_v25, %v356_v22 }
 0x395   :  { %367 = vrot.lane.b32.xlu2 %v365_v26, %s2300_s14 }
 0x3a3   :  { %v106_v15 = vpop.f32.mrf.mxu0  ;;  %v147_v17 = vpop.f32.mrf.mxu1 }
 0x3a4   :  { %v107_v19 = vadd.f32 %v106_v15, %v2438_v16  ;;  %v148_v20 = vadd.f32 %v147_v17, %v2440_v18 }
 0x3ef   :  { %v368_v28 = vpop.permute.xlu2 %367 }
 0x3f0   :  { %v370_v29 = vadd.f32 %v368_v28, %v360_v27 }
 0x3f2   :  { %2210 = vtanh.f32 %v370_v29 }
 0x3f8   :  { %v2211_v30 = vpop.eup %2210 }
 0x3f9   :  { %373 = vrot.lane.b32.xlu0 %v2211_v30, %s2299_s3 }
 0x46b   :  { %v374_v31 = vpop.permute.xlu0 %373 }
 0x46c   :  { %v2484_v32 = vmul.f32 %v374_v31, %v356_v22  ;;  %v172_v22 = vsel %vm36_vm1, %v107_v19, %v148_v20 }
 0x46e   :  { %378 = vrot.lane.b32.xlu1 %v2484_v32, %s2300_s14 }
 0x4e0   :  { %v379_v34 = vpop.permute.xlu1 %378 }
 0x4e1   :  { %2123 = vmatmul.msk.f32.vlgmr.msrb.gmra.mxu2 %vm195_vm6, %v379_v34  ;;  %2124 = vmatmul.msk.f32.vlgmr.msrb.gmra.mxu3 %vm195_vm6, %v379_v34  ;;  %382 = vst.msk [vmem:[#allocation3 + $0x8] sm:$0xf] %vm284_vm7, %v379_v34 }
 0x4e2   :  { %596 = vmatpush.msrb.mxu2 %v2355_v0  ;;  %616 = vmatpush.msrb.mxu3 %v2395_v9  ;;  %384 = vst.msk [vmem:[#allocation3 + $0x34] sm:$0xf] %vm284_vm7, %v379_v34 }
 0x4e4   :  { %597 = vmatpush.msrb.mxu2 %v2360_v1  ;;  %617 = vmatpush.msrb.mxu3 %v2404_v11 }
 0x4e6   :  { %598 = vmatpush.msrb.mxu2 %v2367_v2  ;;  %618 = vmatpush.msrb.mxu3 %v2411_v12 }
 0x4e8   :  { %599 = vmatpush.msrb.mxu2 %v2385_v7  ;;  %619 = vmatpush.msrb.mxu3 %v2419_v13 }
 0x564   :  { %v409_v40 = vpop.f32.mrf.mxu2  ;;  %v429_v41 = vpop.f32.mrf.mxu3 }
 0x565   :  { %v433_v42 = vsel %vm36_vm1, %v409_v40, %v429_v41 }
 0x566   :  { %v434_v43 = vadd.f32 %v433_v42, %v169_v39 }
 0x568   :  { %v2125_v44 = vmul.f32 -1.442695, %v434_v43 }
 0x56a   :  { %2212 = vpow2.f32 %v2125_v44 }
 0x570   :  { %v2213_v45 = vpop.eup %2212 }
 0x571   :  { %v438_v46 = vadd.f32 1.0, %v2213_v45 }
 0x573   :  { %2214 = vrcp.f32 %v438_v46  ;;  %v450_v51 = vand.u32 2147483648, %v438_v46  ;;  %v448_v53 = vand.u32 2147483647, %v438_v46  ;;  %vm444_vm13 = vweird.f32 %v438_v46 }
 0x575   :  { %v451_v55 = vor.u32 1.1754944e-38, %v450_v51  ;;  %vm449_vm15 = vcmp.eq.f32.partialorder %v448_v53, 8.507059e+37 }
 0x579   :  { %v2215_v47 = vpop.eup %2214 }
 0x57a   :  { %v440_v48 = vmul.f32 %v2215_v47, %v438_v46  ;;  %vm445_vm12 = vweird.f32 %v2215_v47 }
 0x57b   :  { %vm446_vm14 = vmor %vm444_vm13, %vm445_vm12 }
 0x57c   :  { %v441_v49 = vsub.f32 1.0, %v440_v48 }
 0x57e   :  { %v442_v52 = vmul.f32 %v2215_v47, %v441_v49 }
 0x580   :  { %v443_v54 = vadd.f32 %v2215_v47, %v442_v52  ;;  %v41_v52 = vld [vmem:[%s3164_s0 + $0x20] sm:$0xff] }
 0x581   :  { %2105 = vmatmul.msk.f32.gmra.mxu0 %vm55_vm0, %v41_v52  ;;  %2113 = vmatmul.msk.f32.gmra.mxu1 %vm55_vm0, %v41_v52 }
 0x582   :  { %v447_v56 = vsel %vm446_vm14, %v2215_v47, %v443_v54 }
 0x583   :  { %v452_v57 = vsel %vm449_vm15, %v451_v55, %v447_v56 }
 0x584   :  { %v454_v58 = vmul.f32 2.0, %v452_v57  ;;  %v456_v62 = vmul.f32 %v452_v57, %v370_v29 }
 0x586   :  { %v2126_v59 = vadd.f32 -1.0, %v454_v58 }
 0x588   :  { %458 = vrot.lane.b32.xlu2 %v2126_v59, %s2299_s3 }
 0x5e2   :  { %v459_v60 = vpop.permute.xlu2 %458 }
 0x5e3   :  { %v461_v61 = vmul.f32 %v459_v60, %v452_v57 }
 0x5e5   :  { %463 = vrot.lane.b32.xlu0 %v461_v61, %s2300_s14 }
 0x5fe   :  { %v109_v54 = vpop.f32.mrf.mxu0  ;;  %v150_v55 = vpop.f32.mrf.mxu1 }
 0x5ff   :  { %v110_v56 = vadd.f32 %v109_v54, %v2438_v16 }
 0x657   :  { %v464_v63 = vpop.permute.xlu0 %463 }
 0x658   :  { %v466_v3 = vadd.f32 %v464_v63, %v456_v62 }
 0x65a   :  { %2216 = vtanh.f32 %v466_v3 }
 0x660   :  { %v2217_v4 = vpop.eup %2216 }
 0x661   :  { %469 = vrot.lane.b32.xlu1 %v2217_v4, %s2299_s3 }
 0x6d3   :  { %v470_v5 = vpop.permute.xlu1 %469 }
 0x6d4   :  { %v2514_v6 = vmul.f32 %v470_v5, %v452_v57  ;;  %v151_v57 = vadd.f32 %v150_v55, %v2440_v18 }
 0x6d6   :  { %474 = vrot.lane.b32.xlu2 %v2514_v6, %s2300_s14  ;;  %v175_v58 = vsel %vm36_vm1, %v110_v56, %v151_v57 }
 0x730   :  { %v475_v14 = vpop.permute.xlu2 %474 }
 0x731   :  { %2127 = vmatmul.msk.f32.vlgmr.msra.gmra.mxu2 %vm195_vm6, %v475_v14  ;;  %2128 = vmatmul.msk.f32.vlgmr.msra.gmra.mxu3 %vm195_vm6, %v475_v14  ;;  %478 = vst.msk [vmem:[#allocation3 + $0x10] sm:$0xf] %vm284_vm7, %v475_v14 }
 0x732   :  { %690 = vmatpush.msra.mxu2 %v2355_v0  ;;  %710 = vmatpush.msra.mxu3 %v2395_v9  ;;  %480 = vst.msk [vmem:[#allocation3 + $0x2c] sm:$0xf] %vm284_vm7, %v475_v14 }
 0x734   :  { %691 = vmatpush.msra.mxu2 %v2360_v1  ;;  %711 = vmatpush.msra.mxu3 %v2404_v11 }
 0x736   :  { %692 = vmatpush.msra.mxu2 %v2367_v2  ;;  %712 = vmatpush.msra.mxu3 %v2411_v12 }
 0x738   :  { %693 = vmatpush.msra.mxu2 %v2385_v7  ;;  %713 = vmatpush.msra.mxu3 %v2419_v13 }
 0x7b4   :  { %v505_v23 = vpop.f32.mrf.mxu2  ;;  %v525_v24 = vpop.f32.mrf.mxu3 }
 0x7b5   :  { %v529_v25 = vsel %vm36_vm1, %v505_v23, %v525_v24 }
 0x7b6   :  { %v530_v26 = vadd.f32 %v529_v25, %v172_v22 }
 0x7b8   :  { %v2129_v27 = vmul.f32 -1.442695, %v530_v26 }
 0x7ba   :  { %2218 = vpow2.f32 %v2129_v27 }
 0x7c0   :  { %v2219_v28 = vpop.eup %2218 }
 0x7c1   :  { %v534_v29 = vadd.f32 1.0, %v2219_v28 }
 0x7c3   :  { %2220 = vrcp.f32 %v534_v29  ;;  %v546_v34 = vand.u32 2147483648, %v534_v29  ;;  %v544_v36 = vand.u32 2147483647, %v534_v29  ;;  %vm540_vm3 = vweird.f32 %v534_v29 }
 0x7c5   :  { %v547_v38 = vor.u32 1.1754944e-38, %v546_v34  ;;  %vm545_vm5 = vcmp.eq.f32.partialorder %v544_v36, 8.507059e+37  ;;  %v42_v36 = vld [vmem:[%s3164_s0 + $0x28] sm:$0xff] }
 0x7c6   :  { %2106 = vmatmul.msk.f32.gmra.mxu0 %vm55_vm0, %v42_v36  ;;  %2114 = vmatmul.msk.f32.gmra.mxu1 %vm55_vm0, %v42_v36 }
 0x7c9   :  { %v2221_v30 = vpop.eup %2220 }
 0x7ca   :  { %v536_v31 = vmul.f32 %v2221_v30, %v534_v29  ;;  %vm541_vm2 = vweird.f32 %v2221_v30 }
 0x7cb   :  { %vm542_vm4 = vmor %vm540_vm3, %vm541_vm2 }
 0x7cc   :  { %v537_v33 = vsub.f32 1.0, %v536_v31 }
 0x7ce   :  { %v538_v35 = vmul.f32 %v2221_v30, %v537_v33 }
 0x7d0   :  { %v539_v37 = vadd.f32 %v2221_v30, %v538_v35 }
 0x7d2   :  { %v543_v39 = vsel %vm542_vm4, %v2221_v30, %v539_v37 }
 0x7d3   :  { %v548_v40 = vsel %vm545_vm5, %v547_v38, %v543_v39 }
 0x7d4   :  { %v550_v41 = vmul.f32 2.0, %v548_v40  ;;  %v552_v45 = vmul.f32 %v548_v40, %v466_v3 }
 0x7d6   :  { %v2130_v42 = vadd.f32 -1.0, %v550_v41 }
 0x7d8   :  { %554 = vrot.lane.b32.xlu0 %v2130_v42, %s2299_s3 }
 0x843   :  { %v112_v38 = vpop.f32.mrf.mxu0  ;;  %v153_v39 = vpop.f32.mrf.mxu1 }
 0x84a   :  { %v555_v43 = vpop.permute.xlu0 %554 }
 0x84b   :  { %v557_v44 = vmul.f32 %v555_v43, %v548_v40 }
 0x84d   :  { %559 = vrot.lane.b32.xlu1 %v557_v44, %s2300_s14 }
 0x8bf   :  { %v560_v46 = vpop.permute.xlu1 %559 }
 0x8c0   :  { %v562_v47 = vadd.f32 %v560_v46, %v552_v45 }
 0x8c2   :  { %2222 = vtanh.f32 %v562_v47 }
 0x8c8   :  { %v2223_v48 = vpop.eup %2222 }
 0x8c9   :  { %565 = vrot.lane.b32.xlu2 %v2223_v48, %s2299_s3 }
 0x923   :  { %v566_v49 = vpop.permute.xlu2 %565 }
 0x924   :  { %v2544_v51 = vmul.f32 %v566_v49, %v548_v40  ;;  %v113_v40 = vadd.f32 %v112_v38, %v2438_v16 }
 0x926   :  { %570 = vrot.lane.b32.xlu0 %v2544_v51, %s2300_s14 }
 0x998   :  { %v571_v53 = vpop.permute.xlu0 %570 }
 0x999   :  { %2131 = vmatmul.msk.f32.vlgmr.msrb.gmra.mxu2 %vm195_vm6, %v571_v53  ;;  %2132 = vmatmul.msk.f32.vlgmr.msrb.gmra.mxu3 %vm195_vm6, %v571_v53  ;;  %574 = vst.msk [vmem:[#allocation3 + $0x18] sm:$0xf] %vm284_vm7, %v571_v53 }
 0x99a   :  { %784 = vmatpush.msrb.mxu2 %v2355_v0  ;;  %804 = vmatpush.msrb.mxu3 %v2395_v9  ;;  %576 = vst.msk [vmem:[#allocation3 + $0x24] sm:$0xf] %vm284_vm7, %v571_v53 }
 0x99c   :  { %785 = vmatpush.msrb.mxu2 %v2360_v1  ;;  %805 = vmatpush.msrb.mxu3 %v2404_v11 }
 0x99e   :  { %786 = vmatpush.msrb.mxu2 %v2367_v2  ;;  %806 = vmatpush.msrb.mxu3 %v2411_v12 }
 0x9a0   :  { %787 = vmatpush.msrb.mxu2 %v2385_v7  ;;  %807 = vmatpush.msrb.mxu3 %v2419_v13 }
 0xa1c   :  { %v601_v59 = vpop.f32.mrf.mxu2  ;;  %v621_v60 = vpop.f32.mrf.mxu3 }
 0xa1d   :  { %v625_v61 = vsel %vm36_vm1, %v601_v59, %v621_v60 }
 0xa1e   :  { %v626_v62 = vadd.f32 %v625_v61, %v175_v58 }
 0xa20   :  { %v2133_v63 = vmul.f32 -1.442695, %v626_v62 }
 0xa22   :  { %2224 = vpow2.f32 %v2133_v63 }
 0xa28   :  { %v2225_v3 = vpop.eup %2224 }
 0xa29   :  { %v630_v4 = vadd.f32 1.0, %v2225_v3  ;;  %v43_v3 = vld [vmem:[%s3164_s0 + $0x30] sm:$0xff] }
 0xa2a   :  { %2107 = vmatmul.msk.f32.gmra.mxu0 %vm55_vm0, %v43_v3  ;;  %2115 = vmatmul.msk.f32.gmra.mxu1 %vm55_vm0, %v43_v3 }
 0xa2b   :  { %2226 = vrcp.f32 %v630_v4  ;;  %v642_v15 = vand.u32 2147483648, %v630_v4  ;;  %v640_v19 = vand.u32 2147483647, %v630_v4  ;;  %vm636_vm9 = vweird.f32 %v630_v4 }
 0xa2d   :  { %v643_v22 = vor.u32 1.1754944e-38, %v642_v15  ;;  %vm641_vm11 = vcmp.eq.f32.partialorder %v640_v19, 8.507059e+37 }
 0xa31   :  { %v2227_v5 = vpop.eup %2226 }
 0xa32   :  { %v632_v8 = vmul.f32 %v2227_v5, %v630_v4  ;;  %vm637_vm8 = vweird.f32 %v2227_v5 }
 0xa33   :  { %vm638_vm10 = vmor %vm636_vm9, %vm637_vm8 }
 0xa34   :  { %v633_v14 = vsub.f32 1.0, %v632_v8 }
 0xa36   :  { %v634_v17 = vmul.f32 %v2227_v5, %v633_v14 }
 0xa38   :  { %v635_v20 = vadd.f32 %v2227_v5, %v634_v17 }
 0xa3a   :  { %v639_v23 = vsel %vm638_vm10, %v2227_v5, %v635_v20 }
 0xa3b   :  { %v644_v24 = vsel %vm641_vm11, %v643_v22, %v639_v23  ;;  %vm291_vm11 = vcmask 523524  }
 0xa3c   :  { %v646_v25 = vmul.f32 2.0, %v644_v24  ;;  %v648_v29 = vmul.f32 %v644_v24, %v562_v47 }
 0xa3e   :  { %v2134_v26 = vadd.f32 -1.0, %v646_v25 }
 0xa40   :  { %650 = vrot.lane.b32.xlu1 %v2134_v26, %s2299_s3 }
 0xaa7   :  { %v115_v5 = vpop.f32.mrf.mxu0  ;;  %v156_v8 = vpop.f32.mrf.mxu1 }
 0xaa8   :  { %v116_v14 = vadd.f32 %v115_v5, %v2438_v16  ;;  %v157_v15 = vadd.f32 %v156_v8, %v2440_v18 }
 0xaaa   :  { %v181_v17 = vsel %vm36_vm1, %v116_v14, %v157_v15 }
 0xab2   :  { %v651_v27 = vpop.permute.xlu1 %650 }
 0xab3   :  { %v653_v28 = vmul.f32 %v651_v27, %v644_v24 }
 0xab5   :  { %655 = vrot.lane.b32.xlu2 %v653_v28, %s2300_s14 }
 0xb0f   :  { %v656_v30 = vpop.permute.xlu2 %655 }
 0xb10   :  { %v658_v31 = vadd.f32 %v656_v30, %v648_v29 }
 0xb12   :  { %2228 = vtanh.f32 %v658_v31 }
 0xb18   :  { %v2229_v33 = vpop.eup %2228 }
 0xb19   :  { %661 = vrot.lane.b32.xlu0 %v2229_v33, %s2299_s3 }
 0xb8b   :  { %v662_v34 = vpop.permute.xlu0 %661 }
 0xb8c   :  { %v2574_v35 = vmul.f32 %v662_v34, %v644_v24 }
 0xb8e   :  { %666 = vrot.lane.b32.xlu1 %v2574_v35, %s2300_s14 }
 0xc00   :  { %v2583_v37 = vpop.permute.xlu1 %666 }
 0xc01   :  { %2135 = vmatmul.msk.f32.vlgmr.msra.gmra.mxu2 %vm195_vm6, %v2583_v37  ;;  %2136 = vmatmul.msk.f32.vlgmr.msra.gmra.mxu3 %vm195_vm6, %v2583_v37 }
 0xc02   :  { %878 = vmatpush.msra.mxu2 %v2355_v0  ;;  %898 = vmatpush.msra.mxu3 %v2395_v9  ;;  %v154_v0 = vadd.f32 %v153_v39, %v2440_v18 }
 0xc04   :  { %879 = vmatpush.msra.mxu2 %v2360_v1  ;;  %899 = vmatpush.msra.mxu3 %v2404_v11  ;;  %v178_v9 = vsel %vm36_vm1, %v113_v40, %v154_v0 }
 0xc06   :  { %880 = vmatpush.msra.mxu2 %v2367_v2  ;;  %900 = vmatpush.msra.mxu3 %v2411_v12 }
 0xc08   :  { %881 = vmatpush.msra.mxu2 %v2385_v7  ;;  %901 = vmatpush.msra.mxu3 %v2419_v13 }
 0xc84   :  { %v695_v1 = vpop.f32.mrf.mxu2  ;;  %v715_v41 = vpop.f32.mrf.mxu3 }
 0xc85   :  { %v719_v2 = vsel %vm36_vm1, %v695_v1, %v715_v41 }
 0xc86   :  { %v720_v11 = vadd.f32 %v719_v2, %v178_v9 }
 0xc88   :  { %v2137_v12 = vmul.f32 -1.442695, %v720_v11 }
 0xc8a   :  { %2230 = vpow2.f32 %v2137_v12 }
 0xc90   :  { %v2231_v7 = vpop.eup %2230 }
 0xc91   :  { %v724_v42 = vadd.f32 1.0, %v2231_v7 }
 0xc93   :  { %2232 = vrcp.f32 %v724_v42  ;;  %v736_v45 = vand.u32 2147483648, %v724_v42  ;;  %v734_v47 = vand.u32 2147483647, %v724_v42  ;;  %vm730_vm13 = vweird.f32 %v724_v42 }
 0xc95   :  { %v737_v49 = vor.u32 1.1754944e-38, %v736_v45  ;;  %vm735_vm15 = vcmp.eq.f32.partialorder %v734_v47, 8.507059e+37 }
 0xc99   :  { %v2233_v13 = vpop.eup %2232 }
 0xc9a   :  { %v726_v43 = vmul.f32 %v2233_v13, %v724_v42  ;;  %vm731_vm12 = vweird.f32 %v2233_v13 }
 0xc9b   :  { %vm732_vm14 = vmor %vm730_vm13, %vm731_vm12  ;;  %vm981_vm12 = vcmask 523264  }
 0xc9c   :  { %v727_v44 = vsub.f32 1.0, %v726_v43 }
 0xc9e   :  { %v728_v46 = vmul.f32 %v2233_v13, %v727_v44 }
 0xca0   :  { %v729_v48 = vadd.f32 %v2233_v13, %v728_v46 }
 0xca2   :  { %v733_v52 = vsel %vm732_vm14, %v2233_v13, %v729_v48  ;;  %v44_v13 = vld [vmem:[%s3164_s0 + $0x38] sm:$0xff] }
 0xca3   :  { %v738_v53 = vsel %vm735_vm15, %v737_v49, %v733_v52  ;;  %2108 = vmatmul.msk.f32.gmra.mxu0 %vm55_vm0, %v44_v13  ;;  %2116 = vmatmul.msk.f32.gmra.mxu1 %vm55_vm0, %v44_v13 }
 0xca4   :  { %v740_v54 = vmul.f32 2.0, %v738_v53  ;;  %v742_v58 = vmul.f32 %v738_v53, %v658_v31 }
 0xca6   :  { %v2138_v55 = vadd.f32 -1.0, %v740_v54 }
 0xca8   :  { %744 = vrot.lane.b32.xlu2 %v2138_v55, %s2299_s3 }
 0xd02   :  { %v745_v56 = vpop.permute.xlu2 %744 }
 0xd03   :  { %v747_v57 = vmul.f32 %v745_v56, %v738_v53 }
 0xd05   :  { %749 = vrot.lane.b32.xlu0 %v747_v57, %s2300_s14 }
 0xd20   :  { %v118_v44 = vpop.f32.mrf.mxu0  ;;  %v159_v45 = vpop.f32.mrf.mxu1 }
 0xd21   :  { %v119_v46 = vadd.f32 %v118_v44, %v2438_v16  ;;  %v160_v47 = vadd.f32 %v159_v45, %v2440_v18  ;;  %v2903_v44 = vld [vmem:[%s3167_s5 + $0x30] sm:$0xff]  ;;  %v2908_v45 = vld [vmem:[%s3167_s5 + $0x38] sm:$0xff] }
 0xd23   :  { %v184_v48 = vsel %vm36_vm1, %v119_v46, %v160_v47  ;;  %v2919_v47 = vld [vmem:[%s3167_s5 + $0x20] sm:$0xff] }
 0xd77   :  { %v750_v59 = vpop.permute.xlu0 %749 }
 0xd78   :  { %v752_v60 = vadd.f32 %v750_v59, %v742_v58 }
 0xd7a   :  { %2234 = vtanh.f32 %v752_v60 }
 0xd80   :  { %v2235_v61 = vpop.eup %2234 }
 0xd81   :  { %755 = vrot.lane.b32.xlu1 %v2235_v61, %s2299_s3 }
 0xdf3   :  { %v756_v62 = vpop.permute.xlu1 %755 }
 0xdf4   :  { %v2606_v63 = vmul.f32 %v756_v62, %v738_v53 }
 0xdf6   :  { %760 = vrot.lane.b32.xlu2 %v2606_v63, %s2300_s14 }
 0xe50   :  { %v2615_v4 = vpop.permute.xlu2 %760 }
 0xe51   :  { %2139 = vmatmul.msk.f32.vlgmr.msrb.gmra.mxu2 %vm195_vm6, %v2615_v4  ;;  %2140 = vmatmul.msk.f32.vlgmr.msrb.gmra.mxu3 %vm195_vm6, %v2615_v4 }
 0xed4   :  { %v789_v19 = vpop.f32.mrf.mxu2  ;;  %v809_v20 = vpop.f32.mrf.mxu3 }
 0xed5   :  { %v813_v22 = vsel %vm36_vm1, %v789_v19, %v809_v20 }
 0xed6   :  { %v814_v23 = vadd.f32 %v813_v22, %v181_v17 }
 0xed8   :  { %v2141_v24 = vmul.f32 -1.442695, %v814_v23 }
 0xeda   :  { %2236 = vpow2.f32 %v2141_v24 }
 0xee0   :  { %v2237_v25 = vpop.eup %2236 }
 0xee1   :  { %v818_v26 = vadd.f32 1.0, %v2237_v25  ;;  %v2673_v25 = vld [vmem:[%s3166_s4 + $0x70] sm:$0xff] }
 0xee2   :  { %993 = vmatpush.msrb.mxu0 %v2673_v25  ;;  %1039 = vmatpush.msrb.mxu2 %v2673_v25 }
 0xee3   :  { %2238 = vrcp.f32 %v818_v26  ;;  %v830_v30 = vand.u32 2147483648, %v818_v26  ;;  %v828_v33 = vand.u32 2147483647, %v818_v26  ;;  %vm824_vm3 = vweird.f32 %v818_v26 }
 0xee5   :  { %v831_v36 = vor.u32 1.1754944e-38, %v830_v30  ;;  %vm829_vm5 = vcmp.eq.f32.partialorder %v828_v33, 8.507059e+37  ;;  %v2709_v30 = vld [vmem:[%s3166_s4 + $0x40] sm:$0xff] }
 0xee9   :  { %v2239_v27 = vpop.eup %2238 }
 0xeea   :  { %v820_v28 = vmul.f32 %v2239_v27, %v818_v26  ;;  %vm825_vm2 = vweird.f32 %v2239_v27  ;;  %v2683_v26 = vld [vmem:[%s3166_s4 + $0x60] sm:$0xff] }
 0xeeb   :  { %vm826_vm4 = vmor %vm824_vm3, %vm825_vm2  ;;  %994 = vmatpush.msrb.mxu0 %v2683_v26  ;;  %1040 = vmatpush.msrb.mxu2 %v2683_v26 }
 0xeec   :  { %v821_v29 = vsub.f32 1.0, %v820_v28  ;;  %v2695_v28 = vld [vmem:[%s3166_s4 + $0x50] sm:$0xff] }
 0xeed   :  { %995 = vmatpush.msrb.mxu0 %v2695_v28  ;;  %1041 = vmatpush.msrb.mxu2 %v2695_v28 }
 0xeee   :  { %v822_v31 = vmul.f32 %v2239_v27, %v821_v29  ;;  %v2700_v29 = vld [vmem:[%s3166_s4 + $0x58] sm:$0xff] }
 0xeef   :  { %996 = vmatpush.msrb.mxu0 %v2709_v30  ;;  %1042 = vmatpush.msrb.mxu2 %v2709_v30 }
 0xef0   :  { %v823_v34 = vadd.f32 %v2239_v27, %v822_v31  ;;  %v2714_v31 = vld [vmem:[%s3166_s4 + $0x48] sm:$0xff] }
 0xef2   :  { %v827_v38 = vsel %vm826_vm4, %v2239_v27, %v823_v34  ;;  %v2690_v27 = vld [vmem:[%s3166_s4 + $0x68] sm:$0xff] }
 0xef3   :  { %v832_v39 = vsel %vm829_vm5, %v831_v36, %v827_v38  ;;  %v2739_v36 = vld [vmem:[%s3166_s4 + $0x30] sm:$0xff]  ;;  %v2744_v38 = vld [vmem:[%s3166_s4 + $0x38] sm:$0xff] }
 0xef4   :  { %v834_v40 = vmul.f32 2.0, %v832_v39  ;;  %v836_v41 = vmul.f32 %v832_v39, %v752_v60  ;;  %997 = vmatpush.msrb.mxu0 %v2739_v36  ;;  %1043 = vmatpush.msrb.mxu2 %v2739_v36 }
 0xef6   :  { %v2142_v0 = vadd.f32 -1.0, %v834_v40  ;;  %v2781_v40 = vld [vmem:[%s3166_s4] sm:$0xff] }
 0xef8   :  { %838 = vrot.lane.b32.xlu0 %v2142_v0, %s2299_s3  ;;  %v2786_v0 = vld [vmem:[%s3166_s4 + $0x8] sm:$0xff] }
 0xf6a   :  { %v839_v9 = vpop.permute.xlu0 %838 }
 0xf6b   :  { %v841_v1 = vmul.f32 %v839_v9, %v832_v39 }
 0xf6d   :  { %843 = vrot.lane.b32.xlu1 %v841_v1, %s2300_s14 }
 0xfdf   :  { %v844_v2 = vpop.permute.xlu1 %843 }
 0xfe0   :  { %v846_v11 = vadd.f32 %v844_v2, %v836_v41 }
 0xfe2   :  { %2240 = vtanh.f32 %v846_v11 }
 0xfe8   :  { %v2241_v12 = vpop.eup %2240 }
 0xfe9   :  { %849 = vrot.lane.b32.xlu2 %v2241_v12, %s2299_s3 }
0x1043   :  { %v850_v7 = vpop.permute.xlu2 %849 }
0x1044   :  { %v2630_v42 = vmul.f32 %v850_v7, %v832_v39  ;;  %v2770_v39 = vld [vmem:[%s3166_s4 + $0x18] sm:$0xff] }
0x1046   :  { %854 = vrot.lane.b32.xlu0 %v2630_v42, %s2300_s14 }
0x10b8   :  { %v2639_v43 = vpop.permute.xlu0 %854 }
0x10b9   :  { %2143 = vmatmul.msk.f32.vlgmr.msra.gmra.mxu2 %vm195_vm6, %v2639_v43  ;;  %2144 = vmatmul.msk.f32.vlgmr.msra.gmra.mxu3 %vm195_vm6, %v2639_v43 }
0x113c   :  { %v883_v49 = vpop.f32.mrf.mxu2  ;;  %v903_v52 = vpop.f32.mrf.mxu3 }
0x113d   :  { %v907_v53 = vsel %vm36_vm1, %v883_v49, %v903_v52  ;;  %v2933_v52 = vld [vmem:[%s3167_s5 + $0x10] sm:$0xff] }
0x113e   :  { %v908_v54 = vadd.f32 %v907_v53, %v184_v48  ;;  %v2924_v48 = vld [vmem:[%s3167_s5 + $0x28] sm:$0xff]  ;;  %v2938_v53 = vld [vmem:[%s3167_s5 + $0x18] sm:$0xff] }
0x1140   :  { %v2145_v55 = vmul.f32 -1.442695, %v908_v54  ;;  %v2947_v54 = vld [vmem:[%s3167_s5] sm:$0xff] }
0x1142   :  { %2242 = vpow2.f32 %v2145_v55  ;;  %v2952_v55 = vld [vmem:[%s3167_s5 + $0x8] sm:$0xff] }
0x1148   :  { %v2243_v56 = vpop.eup %2242 }
0x1149   :  { %v912_v57 = vadd.f32 1.0, %v2243_v56 }
0x114b   :  { %2244 = vrcp.f32 %v912_v57  ;;  %v924_v16 = vand.u32 2147483648, %v912_v57  ;;  %v922_v18 = vand.u32 2147483647, %v912_v57  ;;  %vm918_vm8 = vweird.f32 %v912_v57 }
0x114d   :  { %v925_v3 = vor.u32 1.1754944e-38, %v924_v16  ;;  %vm923_vm10 = vcmp.eq.f32.partialorder %v922_v18, 8.507059e+37 }
0x1151   :  { %v2245_v58 = vpop.eup %2244 }
0x1152   :  { %v914_v59 = vmul.f32 %v2245_v58, %v912_v57  ;;  %vm919_vm0 = vweird.f32 %v2245_v58 }
0x1153   :  { %vm920_vm9 = vmor %vm918_vm8, %vm919_vm0 }
0x1154   :  { %v915_v60 = vsub.f32 1.0, %v914_v59 }
0x1156   :  { %v916_v61 = vmul.f32 %v2245_v58, %v915_v60 }
0x1158   :  { %v917_v62 = vadd.f32 %v2245_v58, %v916_v61 }
0x115a   :  { %v921_v5 = vsel %vm920_vm9, %v2245_v58, %v917_v62  ;;  %v974_v58 = vld [vmem:[%s3168_s6] sm:$0x3] }
0x115b   :  { %v926_v8 = vsel %vm923_vm10, %v925_v3, %v921_v5  ;;  %v977_v59 = vperm.slane %v974_v58, 0  ;;  %v978_v60 = vperm.slane %v974_v58, 1 }
0x115c   :  { %v928_v14 = vmul.f32 2.0, %v926_v8 }
0x115e   :  { %v2146_v15 = vadd.f32 -1.0, %v928_v14 }
0x1160   :  { %932 = vrot.lane.b32.xlu1 %v2146_v15, %s2299_s3 }
0x1168   :  { %288 = vrot.lane.b32.xlu1 %v2454_v50, %s2299_s3 }
0x1170   :  { %481 = vrot.lane.b32.xlu1 %v2514_v6, %s2299_s3  ;;  %v930_v6 = vmul.f32 %v926_v8, %v846_v11 }
0x1178   :  { %671 = vrot.lane.b32.xlu1 %v2574_v35, %s2299_s3 }
0x11d2   :  { %v933_v17 = vpop.permute.xlu1 %932 }
0x11d3   :  { %v935_v19 = vmul.f32 %v933_v17, %v926_v8 }
0x11d5   :  { %937 = vrot.lane.b32.xlu2 %v935_v19, %s2300_s14 }
0x11da   :  { %v289_v20 = vpop.permute.xlu1 %288 }
0x11db   :  { %292 = vst.msk [vmem:[#allocation3 + $0x34] sm:$0xf0] %vm291_vm11, %v289_v20 }
0x11dc   :  { %293 = vst.msk [vmem:[#allocation3] sm:$0xf0] %vm291_vm11, %v289_v20 }
0x11e2   :  { %v482_v22 = vpop.permute.xlu1 %481 }
0x11e3   :  { %484 = vst.msk [vmem:[#allocation3 + $0x24] sm:$0xf0] %vm291_vm11, %v482_v22 }
0x11e4   :  { %485 = vst.msk [vmem:[#allocation3 + $0x10] sm:$0xf0] %vm291_vm11, %v482_v22 }
0x11e5   :  { %763 = vst.msk [vmem:[#allocation3 + $0x28] sm:$0xf] %vm284_vm7, %v2615_v4 }
0x11e6   :  { %764 = vst.msk [vmem:[#allocation3 + $0x14] sm:$0xf] %vm284_vm7, %v2615_v4  ;;  %v2678_v4 = vld [vmem:[%s3166_s4 + $0x78] sm:$0xff] }
0x11e7   :  { %1013 = vmatpush.msrb.mxu1 %v2678_v4  ;;  %1059 = vmatpush.msrb.mxu3 %v2678_v4 }
0x11e9   :  { %1014 = vmatpush.msrb.mxu1 %v2690_v27  ;;  %1060 = vmatpush.msrb.mxu3 %v2690_v27 }
0x11ea   :  { %v672_v50 = vpop.permute.xlu1 %671 }
0x11eb   :  { %674 = vst.msk [vmem:[#allocation3 + $0x14] sm:$0xf0] %vm291_vm11, %v672_v50  ;;  %1015 = vmatpush.msrb.mxu1 %v2700_v29  ;;  %1061 = vmatpush.msrb.mxu3 %v2700_v29 }
0x11ec   :  { %675 = vst.msk [vmem:[#allocation3 + $0x20] sm:$0xf0] %vm291_vm11, %v672_v50 }
0x11ed   :  { %1016 = vmatpush.msrb.mxu1 %v2714_v31  ;;  %1062 = vmatpush.msrb.mxu3 %v2714_v31 }
0x11ef   :  { %1017 = vmatpush.msrb.mxu1 %v2744_v38  ;;  %1063 = vmatpush.msrb.mxu3 %v2744_v38 }
0x122f   :  { %v938_v35 = vpop.permute.xlu2 %937 }
0x1230   :  { %v940_v23 = vadd.f32 %v938_v35, %v930_v6 }
0x1232   :  { %2246 = vtanh.f32 %v940_v23 }
0x1238   :  { %v2247_v24 = vpop.eup %2246 }
0x1239   :  { %943 = vrot.lane.b32.xlu0 %v2247_v24, %s2299_s3 }
0x12ab   :  { %v944_v33 = vpop.permute.xlu0 %943 }
0x12ac   :  { %v946_v34 = vmul.f32 %v944_v33, %v926_v8 }
0x12ae   :  { %953 = vrot.lane.b32.xlu0 %v946_v34, %s2299_s3  ;;  %948 = vrot.lane.b32.xlu2 %v946_v34, %s2300_s14 }
0x12b6   :  { %577 = vrot.lane.b32.xlu0 %v2544_v51, %s2299_s3  ;;  %765 = vrot.lane.b32.xlu2 %v2606_v63, %s2299_s3  ;;  %v2758_v51 = vld [vmem:[%s3166_s4 + $0x28] sm:$0xff]  ;;  %v2763_v63 = vld [vmem:[%s3166_s4 + $0x10] sm:$0xff] }
0x12b7   :  { %1018 = vmatpush.msrb.mxu1 %v2758_v51  ;;  %1064 = vmatpush.msrb.mxu3 %v2758_v51 }
0x12b9   :  { %1019 = vmatpush.msrb.mxu1 %v2770_v39  ;;  %1065 = vmatpush.msrb.mxu3 %v2770_v39 }
0x12bb   :  { %1020 = vmatpush.msrb.mxu1 %v2786_v0  ;;  %1066 = vmatpush.msrb.mxu3 %v2786_v0 }
0x12bd   :  { %1105 = vmatpush.msra.mxu1 %v2678_v4  ;;  %1151 = vmatpush.msra.mxu3 %v2678_v4 }
0x12be   :  { %859 = vrot.lane.b32.xlu0 %v2630_v42, %s2299_s3  ;;  %385 = vrot.lane.b32.xlu2 %v2484_v32, %s2299_s3  ;;  %v2753_v32 = vld [vmem:[%s3166_s4 + $0x20] sm:$0xff] }
0x12bf   :  { %998 = vmatpush.msrb.mxu0 %v2753_v32  ;;  %1044 = vmatpush.msrb.mxu2 %v2753_v32 }
0x12c0   :  { %1106 = vmatpush.msra.mxu1 %v2690_v27  ;;  %1152 = vmatpush.msra.mxu3 %v2690_v27 }
0x12c1   :  { %999 = vmatpush.msrb.mxu0 %v2763_v63  ;;  %1045 = vmatpush.msrb.mxu2 %v2763_v63 }
0x12c2   :  { %1107 = vmatpush.msra.mxu1 %v2700_v29  ;;  %1153 = vmatpush.msra.mxu3 %v2700_v29 }
0x12c3   :  { %1000 = vmatpush.msrb.mxu0 %v2781_v40  ;;  %1046 = vmatpush.msrb.mxu2 %v2781_v40 }
0x12c4   :  { %1108 = vmatpush.msra.mxu1 %v2714_v31  ;;  %1154 = vmatpush.msra.mxu3 %v2714_v31 }
0x12c5   :  { %1085 = vmatpush.msra.mxu0 %v2673_v25  ;;  %1131 = vmatpush.msra.mxu2 %v2673_v25 }
0x12c6   :  { %1109 = vmatpush.msra.mxu1 %v2744_v38  ;;  %1155 = vmatpush.msra.mxu3 %v2744_v38 }
0x12c7   :  { %1086 = vmatpush.msra.mxu0 %v2683_v26  ;;  %1132 = vmatpush.msra.mxu2 %v2683_v26 }
0x12c8   :  { %1110 = vmatpush.msra.mxu1 %v2758_v51  ;;  %1156 = vmatpush.msra.mxu3 %v2758_v51 }
0x12c9   :  { %1087 = vmatpush.msra.mxu0 %v2695_v28  ;;  %1133 = vmatpush.msra.mxu2 %v2695_v28 }
0x12ca   :  { %1111 = vmatpush.msra.mxu1 %v2770_v39  ;;  %1157 = vmatpush.msra.mxu3 %v2770_v39 }
0x12cb   :  { %1088 = vmatpush.msra.mxu0 %v2709_v30  ;;  %1134 = vmatpush.msra.mxu2 %v2709_v30 }
0x12cc   :  { %1112 = vmatpush.msra.mxu1 %v2786_v0  ;;  %1158 = vmatpush.msra.mxu3 %v2786_v0 }
0x12cd   :  { %1089 = vmatpush.msra.mxu0 %v2739_v36  ;;  %1135 = vmatpush.msra.mxu2 %v2739_v36 }
0x12cf   :  { %1090 = vmatpush.msra.mxu0 %v2753_v32  ;;  %1136 = vmatpush.msra.mxu2 %v2753_v32 }
0x12d1   :  { %1091 = vmatpush.msra.mxu0 %v2763_v63  ;;  %1137 = vmatpush.msra.mxu2 %v2763_v63 }
0x12d3   :  { %1092 = vmatpush.msra.mxu0 %v2781_v40  ;;  %1138 = vmatpush.msra.mxu2 %v2781_v40 }
0x1308   :  { %v949_v9 = vpop.permute.xlu2 %948 }
0x1309   :  { %951 = vst.msk [vmem:[#allocation3 + $0x38] sm:$0xf] %vm284_vm7, %v949_v9 }
0x130a   :  { %952 = vst.msk [vmem:[#allocation3 + $0x4] sm:$0xf] %vm284_vm7, %v949_v9 }
0x1310   :  { %v766_v1 = vpop.permute.xlu2 %765 }
0x1311   :  { %768 = vst.msk [vmem:[#allocation3 + $0xc] sm:$0xf0] %vm291_vm11, %v766_v1 }
0x1312   :  { %769 = vst.msk [vmem:[#allocation3 + $0x28] sm:$0xf0] %vm291_vm11, %v766_v1 }
0x1318   :  { %v386_v41 = vpop.permute.xlu2 %385  ;;  %v1073_v42 = vld [vmem:[#allocation3 + $0x10] sm:$0xff] }
0x1319   :  { %388 = vst.msk [vmem:[#allocation3 + $0x2c] sm:$0xf0] %vm291_vm11, %v386_v41  ;;  %v1211_v49 = vld [vmem:[#allocation3 + $0x28] sm:$0xff] }
0x131a   :  { %389 = vst.msk [vmem:[#allocation3 + $0x8] sm:$0xf0] %vm291_vm11, %v386_v41 }
0x131b   :  { %857 = vst.msk [vmem:[#allocation3 + $0x30] sm:$0xf] %vm284_vm7, %v2639_v43 }
0x131c   :  { %858 = vst.msk [vmem:[#allocation3 + $0xc] sm:$0xf] %vm284_vm7, %v2639_v43 }
0x1320   :  { %v954_v2 = vpop.permute.xlu0 %953 }
0x1321   :  { %956 = vst.msk [vmem:[#allocation3 - $0x4] sm:$0xf0] %vm291_vm11, %v954_v2 }
0x1322   :  { %957 = vst.msk [vmem:[#allocation3 + $0x38] sm:$0xf0] %vm291_vm11, %v954_v2 }
0x1328   :  { %v578_v11 = vpop.permute.xlu0 %577  ;;  %v975_v12 = vld [vmem:[#allocation3] sm:$0xff] }
0x1329   :  { %580 = vst.msk [vmem:[#allocation3 + $0x1c] sm:$0xf0] %vm291_vm11, %v578_v11  ;;  %2147 = vmatmul.msk.f32.vlgmr.msrb.gmra.mxu0 %vm981_vm12, %v975_v12  ;;  %2148 = vmatmul.msk.f32.vlgmr.msrb.gmra.mxu1 %vm981_vm12, %v975_v12 }
0x132a   :  { %581 = vst.msk [vmem:[#allocation3 + $0x18] sm:$0xf0] %vm291_vm11, %v578_v11  ;;  %1177 = vmatpush.msrb.mxu0 %v2673_v25  ;;  %1197 = vmatpush.msrb.mxu1 %v2678_v4 }
0x132b   :  { %669 = vst.msk [vmem:[#allocation3 + $0x20] sm:$0xf] %vm284_vm7, %v2583_v37 }
0x132c   :  { %670 = vst.msk [vmem:[#allocation3 + $0x1c] sm:$0xf] %vm284_vm7, %v2583_v37  ;;  %1178 = vmatpush.msrb.mxu0 %v2683_v26  ;;  %1198 = vmatpush.msrb.mxu1 %v2690_v27 }
0x132e   :  { %1179 = vmatpush.msrb.mxu0 %v2695_v28  ;;  %1199 = vmatpush.msrb.mxu1 %v2700_v29 }
0x1330   :  { %1180 = vmatpush.msrb.mxu0 %v2709_v30  ;;  %1200 = vmatpush.msrb.mxu1 %v2714_v31  ;;  %v860_v7 = vpop.permute.xlu0 %859 }
0x1331   :  { %862 = vst.msk [vmem:[#allocation3 + $0x4] sm:$0xf0] %vm291_vm11, %v860_v7  ;;  %2151 = vmatmul.msk.f32.vlgmr.msra.gmra.mxu0 %vm981_vm12, %v1073_v42  ;;  %2152 = vmatmul.msk.f32.vlgmr.msra.gmra.mxu1 %vm981_vm12, %v1073_v42 }
0x1332   :  { %863 = vst.msk [vmem:[#allocation3 + $0x30] sm:$0xf0] %vm291_vm11, %v860_v7  ;;  %1181 = vmatpush.msrb.mxu0 %v2739_v36  ;;  %1201 = vmatpush.msrb.mxu1 %v2744_v38  ;;  %v1165_v13 = vld [vmem:[#allocation3 + $0x20] sm:$0xff] }
0x1333   :  { %v1119_v43 = vld [vmem:[#allocation3 + $0x18] sm:$0xff] }
0x1334   :  { %1182 = vmatpush.msrb.mxu0 %v2753_v32  ;;  %1202 = vmatpush.msrb.mxu1 %v2758_v51 }
0x1336   :  { %1183 = vmatpush.msrb.mxu0 %v2763_v63  ;;  %1203 = vmatpush.msrb.mxu1 %v2770_v39 }
0x1338   :  { %1184 = vmatpush.msrb.mxu0 %v2781_v40  ;;  %1204 = vmatpush.msrb.mxu1 %v2786_v0  ;;  %v1027_v37 = vld [vmem:[#allocation3 + $0x8] sm:$0xff] }
0x1339   :  { %2149 = vmatmul.msk.f32.vlgmr.msrb.gmra.mxu2 %vm981_vm12, %v1027_v37  ;;  %2150 = vmatmul.msk.f32.vlgmr.msrb.gmra.mxu3 %vm981_vm12, %v1027_v37  ;;  %v1257_v46 = vld [vmem:[#allocation3 + $0x30] sm:$0xff] }
0x133a   :  { %1269 = vmatpush.msra.mxu0 %v2673_v25  ;;  %1289 = vmatpush.msra.mxu1 %v2678_v4 }
0x133b   :  { %2155 = vmatmul.msk.f32.vlgmr.msrb.gmra.mxu0 %vm981_vm12, %v1165_v13  ;;  %2156 = vmatmul.msk.f32.vlgmr.msrb.gmra.mxu1 %vm981_vm12, %v1165_v13 }
0x133c   :  { %1223 = vmatpush.msrb.mxu2 %v2673_v25  ;;  %1243 = vmatpush.msrb.mxu3 %v2678_v4 }
0x133d   :  { %1270 = vmatpush.msra.mxu0 %v2683_v26  ;;  %1290 = vmatpush.msra.mxu1 %v2690_v27 }
0x133e   :  { %1224 = vmatpush.msrb.mxu2 %v2683_v26  ;;  %1244 = vmatpush.msrb.mxu3 %v2690_v27 }
0x133f   :  { %1271 = vmatpush.msra.mxu0 %v2695_v28  ;;  %1291 = vmatpush.msra.mxu1 %v2700_v29 }
0x1340   :  { %1225 = vmatpush.msrb.mxu2 %v2695_v28  ;;  %1245 = vmatpush.msrb.mxu3 %v2700_v29 }
0x1341   :  { %1272 = vmatpush.msra.mxu0 %v2709_v30  ;;  %1292 = vmatpush.msra.mxu1 %v2714_v31 }
0x1342   :  { %1226 = vmatpush.msrb.mxu2 %v2709_v30  ;;  %1246 = vmatpush.msrb.mxu3 %v2714_v31 }
0x1343   :  { %1273 = vmatpush.msra.mxu0 %v2739_v36  ;;  %1293 = vmatpush.msra.mxu1 %v2744_v38 }
0x1344   :  { %2153 = vmatmul.msk.f32.vlgmr.msra.gmra.mxu2 %vm981_vm12, %v1119_v43  ;;  %2154 = vmatmul.msk.f32.vlgmr.msra.gmra.mxu3 %vm981_vm12, %v1119_v43 }
0x1345   :  { %1227 = vmatpush.msrb.mxu2 %v2739_v36  ;;  %1247 = vmatpush.msrb.mxu3 %v2744_v38 }
0x1346   :  { %1274 = vmatpush.msra.mxu0 %v2753_v32  ;;  %1294 = vmatpush.msra.mxu1 %v2758_v51 }
0x1347   :  { %1228 = vmatpush.msrb.mxu2 %v2753_v32  ;;  %1248 = vmatpush.msrb.mxu3 %v2758_v51 }
0x1348   :  { %1275 = vmatpush.msra.mxu0 %v2763_v63  ;;  %1295 = vmatpush.msra.mxu1 %v2770_v39 }
0x1349   :  { %1229 = vmatpush.msrb.mxu2 %v2763_v63  ;;  %1249 = vmatpush.msrb.mxu3 %v2770_v39 }
0x134a   :  { %1276 = vmatpush.msra.mxu0 %v2781_v40  ;;  %1296 = vmatpush.msra.mxu1 %v2786_v0 }
0x134b   :  { %1230 = vmatpush.msrb.mxu2 %v2781_v40  ;;  %1250 = vmatpush.msrb.mxu3 %v2786_v0 }
0x134c   :  { %2159 = vmatmul.msk.f32.vlgmr.msra.gmra.mxu0 %vm981_vm12, %v1257_v46  ;;  %2160 = vmatmul.msk.f32.vlgmr.msra.gmra.mxu1 %vm981_vm12, %v1257_v46 }
0x134d   :  { %1369 = vmatpush.msrb.mxu0 %v2903_v44  ;;  %1389 = vmatpush.msrb.mxu1 %v2908_v45 }
0x134e   :  { %1315 = vmatpush.msra.mxu2 %v2673_v25  ;;  %1335 = vmatpush.msra.mxu3 %v2678_v4 }
0x134f   :  { %2157 = vmatmul.msk.f32.vlgmr.msrb.gmra.mxu2 %vm981_vm12, %v1211_v49  ;;  %2158 = vmatmul.msk.f32.vlgmr.msrb.gmra.mxu3 %vm981_vm12, %v1211_v49 }
0x1350   :  { %1370 = vmatpush.msrb.mxu0 %v2919_v47  ;;  %1390 = vmatpush.msrb.mxu1 %v2924_v48 }
0x1351   :  { %1316 = vmatpush.msra.mxu2 %v2683_v26  ;;  %1336 = vmatpush.msra.mxu3 %v2690_v27 }
0x1352   :  { %1371 = vmatpush.msrb.mxu0 %v2933_v52  ;;  %1391 = vmatpush.msrb.mxu1 %v2938_v53 }
0x1353   :  { %1317 = vmatpush.msra.mxu2 %v2695_v28  ;;  %1337 = vmatpush.msra.mxu3 %v2700_v29 }
0x1354   :  { %1372 = vmatpush.msrb.mxu0 %v2947_v54  ;;  %1392 = vmatpush.msrb.mxu1 %v2952_v55 }
0x1355   :  { %1318 = vmatpush.msra.mxu2 %v2709_v30  ;;  %1338 = vmatpush.msra.mxu3 %v2714_v31 }
0x1356   :  { %1373 = vmatmul.f32.vlgmr.msrb.gmra.mxu0 %v2298_v10  ;;  %1393 = vmatmul.f32.vlgmr.msrb.gmra.mxu1 %v2298_v10  ;;  %v1303_v10 = vld [vmem:[#allocation3 + $0x38] sm:$0xff] }
0x1357   :  { %1319 = vmatpush.msra.mxu2 %v2739_v36  ;;  %1339 = vmatpush.msra.mxu3 %v2744_v38 }
0x1358   :  { %1455 = vmatpush.msra.mxu0 %v2903_v44  ;;  %1475 = vmatpush.msra.mxu1 %v2908_v45 }
0x1359   :  { %1320 = vmatpush.msra.mxu2 %v2753_v32  ;;  %1340 = vmatpush.msra.mxu3 %v2758_v51 }
0x135a   :  { %1456 = vmatpush.msra.mxu0 %v2919_v47  ;;  %1476 = vmatpush.msra.mxu1 %v2924_v48 }
0x135b   :  { %1321 = vmatpush.msra.mxu2 %v2763_v63  ;;  %1341 = vmatpush.msra.mxu3 %v2770_v39 }
0x135c   :  { %1457 = vmatpush.msra.mxu0 %v2933_v52  ;;  %1477 = vmatpush.msra.mxu1 %v2938_v53 }
0x135d   :  { %1322 = vmatpush.msra.mxu2 %v2781_v40  ;;  %1342 = vmatpush.msra.mxu3 %v2786_v0 }
0x135e   :  { %2161 = vmatmul.msk.f32.vlgmr.msra.gmra.mxu2 %vm981_vm12, %v1303_v10  ;;  %2162 = vmatmul.msk.f32.vlgmr.msra.gmra.mxu3 %vm981_vm12, %v1303_v10 }
0x135f   :  { %1458 = vmatpush.msra.mxu0 %v2947_v54  ;;  %1478 = vmatpush.msra.mxu1 %v2952_v55 }
0x1360   :  { %1541 = vmatpush.msrb.mxu2 %v2903_v44  ;;  %1561 = vmatpush.msrb.mxu3 %v2908_v45 }
0x1361   :  { %1627 = vmatpush.msrb.mxu0 %v2903_v44  ;;  %1647 = vmatpush.msrb.mxu1 %v2908_v45 }
0x1362   :  { %1542 = vmatpush.msrb.mxu2 %v2919_v47  ;;  %1562 = vmatpush.msrb.mxu3 %v2924_v48 }
0x1363   :  { %1628 = vmatpush.msrb.mxu0 %v2919_v47  ;;  %1648 = vmatpush.msrb.mxu1 %v2924_v48 }
0x1364   :  { %1543 = vmatpush.msrb.mxu2 %v2933_v52  ;;  %1563 = vmatpush.msrb.mxu3 %v2938_v53 }
0x1365   :  { %1629 = vmatpush.msrb.mxu0 %v2933_v52  ;;  %1649 = vmatpush.msrb.mxu1 %v2938_v53 }
0x1366   :  { %1544 = vmatpush.msrb.mxu2 %v2947_v54  ;;  %1564 = vmatpush.msrb.mxu3 %v2952_v55 }
0x1367   :  { %1630 = vmatpush.msrb.mxu0 %v2947_v54  ;;  %1650 = vmatpush.msrb.mxu1 %v2952_v55 }
0x1368   :  { %1713 = vmatpush.msra.mxu2 %v2903_v44  ;;  %1733 = vmatpush.msra.mxu3 %v2908_v45 }
0x136a   :  { %1714 = vmatpush.msra.mxu2 %v2919_v47  ;;  %1734 = vmatpush.msra.mxu3 %v2924_v48 }
0x136c   :  { %1715 = vmatpush.msra.mxu2 %v2933_v52  ;;  %1735 = vmatpush.msra.mxu3 %v2938_v53 }
0x136e   :  { %1716 = vmatpush.msra.mxu2 %v2947_v54  ;;  %1736 = vmatpush.msra.mxu3 %v2952_v55 }
0x13a6   :  { %v1002_v56 = vpop.f32.mrf.mxu0  ;;  %v1022_v57 = vpop.f32.mrf.mxu1 }
0x13a7   :  { %v1003_v31 = vadd.f32 %v1002_v56, %v977_v59  ;;  %v1023_v33 = vadd.f32 %v1022_v57, %v978_v60 }
0x13a9   :  { %v1025_v39 = vsel %vm36_vm1, %v1003_v31, %v1023_v33 }
0x13ae   :  { %v1094_v16 = vpop.f32.mrf.mxu0  ;;  %v1114_v61 = vpop.f32.mrf.mxu1 }
0x13af   :  { %v1095_v18 = vadd.f32 %v1094_v16, %v977_v59  ;;  %v1115_v62 = vadd.f32 %v1114_v61, %v978_v60 }
0x13b1   :  { %v3011_v3 = vsel %vm36_vm1, %v1095_v18, %v1115_v62 }
0x13b8   :  { %v1186_v5 = vpop.f32.mrf.mxu0  ;;  %v1206_v8 = vpop.f32.mrf.mxu1 }
0x13b9   :  { %v1187_v14 = vadd.f32 %v1186_v5, %v977_v59  ;;  %v1207_v15 = vadd.f32 %v1206_v8, %v978_v60 }
0x13bb   :  { %v3015_v17 = vsel %vm36_vm1, %v1187_v14, %v1207_v15 }
0x13bc   :  { %v1048_v19 = vpop.f32.mrf.mxu2  ;;  %v1068_v20 = vpop.f32.mrf.mxu3 }
0x13bd   :  { %v1049_v22 = vadd.f32 %v1048_v19, %v977_v59  ;;  %v1069_v50 = vadd.f32 %v1068_v20, %v978_v60 }
0x13bf   :  { %v3019_v6 = vsel %vm36_vm1, %v1049_v22, %v1069_v50 }
0x13c7   :  { %v1140_v35 = vpop.f32.mrf.mxu2  ;;  %v1160_v23 = vpop.f32.mrf.mxu3 }
0x13c8   :  { %v1141_v24 = vadd.f32 %v1140_v35, %v977_v59  ;;  %v1161_v25 = vadd.f32 %v1160_v23, %v978_v60 }
0x13c9   :  { %v1278_v4 = vpop.f32.mrf.mxu0  ;;  %v1298_v26 = vpop.f32.mrf.mxu1 }
0x13ca   :  { %v1279_v27 = vadd.f32 %v1278_v4, %v977_v59  ;;  %v1299_v28 = vadd.f32 %v1298_v26, %v978_v60  ;;  %v3023_v29 = vsel %vm36_vm1, %v1141_v24, %v1161_v25 }
0x13cc   :  { %v3027_v30 = vsel %vm36_vm1, %v1279_v27, %v1299_v28 }
0x13d2   :  { %v1232_v34 = vpop.f32.mrf.mxu2  ;;  %v1252_v36 = vpop.f32.mrf.mxu3 }
0x13d3   :  { %v1233_v38 = vadd.f32 %v1232_v34, %v977_v59  ;;  %v1253_v32 = vadd.f32 %v1252_v36, %v978_v60  ;;  %v1374_v51 = vpop.f32.mrf.mxu0  ;;  %v1394_v63 = vpop.f32.mrf.mxu1 }
0x13d4   :  { %v1398_v40 = vsel %vm36_vm1, %v1374_v51, %v1394_v63 }
0x13d5   :  { %v1399_v0 = vadd.f32 %v1398_v40, %v1025_v39  ;;  %v3035_v9 = vsel %vm36_vm1, %v1233_v38, %v1253_v32 }
0x13d7   :  { %v2163_v1 = vmul.f32 -1.442695, %v1399_v0 }
0x13d9   :  { %2248 = vpow2.f32 %v2163_v1 }
0x13df   :  { %v2249_v41 = vpop.eup %2248 }
0x13e0   :  { %v1403_v2 = vadd.f32 1.0, %v2249_v41 }
0x13e1   :  { %v1324_v11 = vpop.f32.mrf.mxu2  ;;  %v1344_v12 = vpop.f32.mrf.mxu3 }
0x13e2   :  { %2250 = vrcp.f32 %v1403_v2  ;;  %v1325_v7 = vadd.f32 %v1324_v11, %v977_v59  ;;  %v1345_v42 = vadd.f32 %v1344_v12, %v978_v60  ;;  %v1415_v49 = vand.u32 2147483648, %v1403_v2 }
0x13e3   :  { %v1413_v56 = vand.u32 2147483647, %v1403_v2  ;;  %vm1409_vm13 = vweird.f32 %v1403_v2 }
0x13e4   :  { %v3039_v37 = vsel %vm36_vm1, %v1325_v7, %v1345_v42  ;;  %v1416_v58 = vor.u32 1.1754944e-38, %v1415_v49 }
0x13e5   :  { %vm1414_vm15 = vcmp.eq.f32.partialorder %v1413_v56, 8.507059e+37 }
0x13e8   :  { %v2251_v13 = vpop.eup %2250 }
0x13e9   :  { %v1405_v43 = vmul.f32 %v2251_v13, %v1403_v2  ;;  %vm1410_vm7 = vweird.f32 %v2251_v13 }
0x13ea   :  { %vm1411_vm14 = vmor %vm1409_vm13, %vm1410_vm7 }
0x13eb   :  { %v1406_v46 = vsub.f32 1.0, %v1405_v43 }
0x13ed   :  { %v1407_v10 = vmul.f32 %v2251_v13, %v1406_v46 }
0x13ef   :  { %v1408_v57 = vadd.f32 %v2251_v13, %v1407_v10 }
0x13f1   :  { %v1412_v16 = vsel %vm1411_vm14, %v2251_v13, %v1408_v57 }
0x13f2   :  { %v1417_v61 = vsel %vm1414_vm15, %v1416_v58, %v1412_v16 }
0x13f3   :  { %v1419_v59 = vmul.f32 2.0, %v1417_v61  ;;  %v1421_v5 = vmul.f32 0.0, %v1417_v61 }
0x13f5   :  { %v2164_v60 = vadd.f32 -1.0, %v1419_v59 }
0x13f7   :  { %1423 = vrot.lane.b32.xlu1 %v2164_v60, %s2299_s3 }
0x1469   :  { %v1424_v18 = vpop.permute.xlu1 %1423 }
0x146a   :  { %v1426_v62 = vmul.f32 %v1424_v18, %v1417_v61 }
0x146c   :  { %1428 = vrot.lane.b32.xlu2 %v1426_v62, %s2300_s14 }
0x14c6   :  { %v1429_v8 = vpop.permute.xlu2 %1428 }
0x14c7   :  { %v1431_v14 = vadd.f32 %v1429_v8, %v1421_v5 }
0x14c9   :  { %2252 = vtanh.f32 %v1431_v14 }
0x14cf   :  { %v2253_v15 = vpop.eup %2252 }
0x14d0   :  { %1434 = vrot.lane.b32.xlu0 %v2253_v15, %s2299_s3 }
0x1542   :  { %v1435_v19 = vpop.permute.xlu0 %1434 }
0x1543   :  { %v1437_v20 = vmul.f32 %v1435_v19, %v1417_v61 }
0x1545   :  { %1439 = vrot.lane.b32.xlu1 %v1437_v20, %s2300_s14 }
0x15b7   :  { %v1440_v22 = vpop.permute.xlu1 %1439 }
0x15b8   :  { %2165 = vmatmul.msk.f32.vlgmr.msra.gmra.mxu0 %vm195_vm6, %v1440_v22  ;;  %2166 = vmatmul.msk.f32.vlgmr.msra.gmra.mxu1 %vm195_vm6, %v1440_v22 }
0x15b9   :  { %1799 = vmatpush.msra.mxu0 %v2903_v44  ;;  %1819 = vmatpush.msra.mxu1 %v2908_v45 }
0x15bb   :  { %1800 = vmatpush.msra.mxu0 %v2919_v47  ;;  %1820 = vmatpush.msra.mxu1 %v2924_v48 }
0x15bd   :  { %1801 = vmatpush.msra.mxu0 %v2933_v52  ;;  %1821 = vmatpush.msra.mxu1 %v2938_v53 }
0x15bf   :  { %1802 = vmatpush.msra.mxu0 %v2947_v54  ;;  %1822 = vmatpush.msra.mxu1 %v2952_v55 }
0x1635   :  { %v1460_v50 = vpop.f32.mrf.mxu0  ;;  %v1480_v35 = vpop.f32.mrf.mxu1 }
0x1636   :  { %v1484_v23 = vsel %vm36_vm1, %v1460_v50, %v1480_v35 }
0x1637   :  { %v1485_v24 = vadd.f32 %v1484_v23, %v3019_v6 }
0x1639   :  { %v2167_v25 = vmul.f32 -1.442695, %v1485_v24 }
0x163b   :  { %2254 = vpow2.f32 %v2167_v25 }
0x1641   :  { %v2255_v4 = vpop.eup %2254 }
0x1642   :  { %v1489_v26 = vadd.f32 1.0, %v2255_v4 }
0x1644   :  { %2256 = vrcp.f32 %v1489_v26  ;;  %v1501_v33 = vand.u32 2147483648, %v1489_v26  ;;  %v1499_v36 = vand.u32 2147483647, %v1489_v26  ;;  %vm1495_vm3 = vweird.f32 %v1489_v26 }
0x1646   :  { %v1502_v32 = vor.u32 1.1754944e-38, %v1501_v33  ;;  %vm1500_vm5 = vcmp.eq.f32.partialorder %v1499_v36, 8.507059e+37 }
0x164a   :  { %v2257_v27 = vpop.eup %2256 }
0x164b   :  { %v1491_v28 = vmul.f32 %v2257_v27, %v1489_v26  ;;  %vm1496_vm2 = vweird.f32 %v2257_v27 }
0x164c   :  { %vm1497_vm4 = vmor %vm1495_vm3, %vm1496_vm2 }
0x164d   :  { %v1492_v31 = vsub.f32 1.0, %v1491_v28 }
0x164f   :  { %v1493_v34 = vmul.f32 %v2257_v27, %v1492_v31 }
0x1651   :  { %v1494_v38 = vadd.f32 %v2257_v27, %v1493_v34 }
0x1653   :  { %v1498_v51 = vsel %vm1497_vm4, %v2257_v27, %v1494_v38 }
0x1654   :  { %v1503_v63 = vsel %vm1500_vm5, %v1502_v32, %v1498_v51 }
0x1655   :  { %v1505_v6 = vmul.f32 2.0, %v1503_v63  ;;  %v1507_v1 = vmul.f32 %v1503_v63, %v1431_v14 }
0x1657   :  { %v2168_v39 = vadd.f32 -1.0, %v1505_v6 }
0x1659   :  { %1509 = vrot.lane.b32.xlu2 %v2168_v39, %s2299_s3 }
0x16b3   :  { %v1510_v40 = vpop.permute.xlu2 %1509 }
0x16b4   :  { %v1512_v0 = vmul.f32 %v1510_v40, %v1503_v63 }
0x16b6   :  { %1514 = vrot.lane.b32.xlu0 %v1512_v0, %s2300_s14 }
0x1728   :  { %v1515_v41 = vpop.permute.xlu0 %1514 }
0x1729   :  { %v1517_v2 = vadd.f32 %v1515_v41, %v1507_v1 }
0x172b   :  { %2258 = vtanh.f32 %v1517_v2 }
0x1731   :  { %v2259_v11 = vpop.eup %2258 }
0x1732   :  { %1520 = vrot.lane.b32.xlu1 %v2259_v11, %s2299_s3 }
0x17a4   :  { %v1521_v12 = vpop.permute.xlu1 %1520 }
0x17a5   :  { %v1523_v7 = vmul.f32 %v1521_v12, %v1503_v63 }
0x17a7   :  { %1525 = vrot.lane.b32.xlu2 %v1523_v7, %s2300_s14 }
0x1801   :  { %v1526_v42 = vpop.permute.xlu2 %1525 }
0x1802   :  { %2169 = vmatmul.msk.f32.vlgmr.msrb.gmra.mxu2 %vm195_vm6, %v1526_v42  ;;  %2170 = vmatmul.msk.f32.vlgmr.msrb.gmra.mxu3 %vm195_vm6, %v1526_v42 }
0x1803   :  { %1885 = vmatpush.msrb.mxu2 %v2903_v44  ;;  %1905 = vmatpush.msrb.mxu3 %v2908_v45 }
0x1805   :  { %1886 = vmatpush.msrb.mxu2 %v2919_v47  ;;  %1906 = vmatpush.msrb.mxu3 %v2924_v48 }
0x1807   :  { %1887 = vmatpush.msrb.mxu2 %v2933_v52  ;;  %1907 = vmatpush.msrb.mxu3 %v2938_v53 }
0x1809   :  { %1888 = vmatpush.msrb.mxu2 %v2947_v54  ;;  %1908 = vmatpush.msrb.mxu3 %v2952_v55 }
0x1885   :  { %v1546_v13 = vpop.f32.mrf.mxu2  ;;  %v1566_v43 = vpop.f32.mrf.mxu3 }
0x1886   :  { %v1570_v46 = vsel %vm36_vm1, %v1546_v13, %v1566_v43 }
0x1887   :  { %v1571_v49 = vadd.f32 %v1570_v46, %v3011_v3 }
0x1889   :  { %v2171_v10 = vmul.f32 -1.442695, %v1571_v49 }
0x188b   :  { %2260 = vpow2.f32 %v2171_v10 }
0x1891   :  { %v2261_v56 = vpop.eup %2260 }
0x1892   :  { %v1575_v57 = vadd.f32 1.0, %v2261_v56 }
0x1894   :  { %2262 = vrcp.f32 %v1575_v57  ;;  %v1587_v59 = vand.u32 2147483648, %v1575_v57  ;;  %v1585_v18 = vand.u32 2147483647, %v1575_v57  ;;  %vm1581_vm8 = vweird.f32 %v1575_v57 }
0x1896   :  { %v1588_v5 = vor.u32 1.1754944e-38, %v1587_v59  ;;  %vm1586_vm10 = vcmp.eq.f32.partialorder %v1585_v18, 8.507059e+37 }
0x189a   :  { %v2263_v58 = vpop.eup %2262 }
0x189b   :  { %v1577_v16 = vmul.f32 %v2263_v58, %v1575_v57  ;;  %vm1582_vm0 = vweird.f32 %v2263_v58 }
0x189c   :  { %vm1583_vm9 = vmor %vm1581_vm8, %vm1582_vm0 }
0x189d   :  { %v1578_v61 = vsub.f32 1.0, %v1577_v16 }
0x189f   :  { %v1579_v60 = vmul.f32 %v2263_v58, %v1578_v61 }
0x18a1   :  { %v1580_v62 = vadd.f32 %v2263_v58, %v1579_v60 }
0x18a3   :  { %v1584_v8 = vsel %vm1583_vm9, %v2263_v58, %v1580_v62 }
0x18a4   :  { %v1589_v14 = vsel %vm1586_vm10, %v1588_v5, %v1584_v8 }
0x18a5   :  { %v1591_v3 = vmul.f32 2.0, %v1589_v14  ;;  %v1593_v22 = vmul.f32 %v1589_v14, %v1517_v2 }
0x18a7   :  { %v2172_v15 = vadd.f32 -1.0, %v1591_v3 }
0x18a9   :  { %1595 = vrot.lane.b32.xlu0 %v2172_v15, %s2299_s3 }
0x191b   :  { %v1596_v19 = vpop.permute.xlu0 %1595 }
0x191c   :  { %v1598_v20 = vmul.f32 %v1596_v19, %v1589_v14 }
0x191e   :  { %1600 = vrot.lane.b32.xlu1 %v1598_v20, %s2300_s14 }
0x1990   :  { %v1601_v50 = vpop.permute.xlu1 %1600 }
0x1991   :  { %v1603_v35 = vadd.f32 %v1601_v50, %v1593_v22 }
0x1993   :  { %2264 = vtanh.f32 %v1603_v35 }
0x1999   :  { %v2265_v23 = vpop.eup %2264 }
0x199a   :  { %1606 = vrot.lane.b32.xlu2 %v2265_v23, %s2299_s3 }
0x19f4   :  { %v1607_v24 = vpop.permute.xlu2 %1606 }
0x19f5   :  { %v1609_v25 = vmul.f32 %v1607_v24, %v1589_v14 }
0x19f7   :  { %1611 = vrot.lane.b32.xlu0 %v1609_v25, %s2300_s14 }
0x1a69   :  { %v1612_v4 = vpop.permute.xlu0 %1611 }
0x1a6a   :  { %2173 = vmatmul.msk.f32.vlgmr.msrb.gmra.mxu0 %vm195_vm6, %v1612_v4  ;;  %2174 = vmatmul.msk.f32.vlgmr.msrb.gmra.mxu1 %vm195_vm6, %v1612_v4 }
0x1a6b   :  { %1971 = vmatpush.msrb.mxu0 %v2903_v44  ;;  %1991 = vmatpush.msrb.mxu1 %v2908_v45 }
0x1a6d   :  { %1972 = vmatpush.msrb.mxu0 %v2919_v47  ;;  %1992 = vmatpush.msrb.mxu1 %v2924_v48 }
0x1a6f   :  { %1973 = vmatpush.msrb.mxu0 %v2933_v52  ;;  %1993 = vmatpush.msrb.mxu1 %v2938_v53 }
0x1a71   :  { %1974 = vmatpush.msrb.mxu0 %v2947_v54  ;;  %1994 = vmatpush.msrb.mxu1 %v2952_v55 }
0x1ae7   :  { %v1632_v26 = vpop.f32.mrf.mxu0  ;;  %v1652_v27 = vpop.f32.mrf.mxu1 }
0x1ae8   :  { %v1656_v28 = vsel %vm36_vm1, %v1632_v26, %v1652_v27 }
0x1ae9   :  { %v1657_v44 = vadd.f32 %v1656_v28, %v3023_v29 }
0x1aeb   :  { %v2175_v45 = vmul.f32 -1.442695, %v1657_v44 }
0x1aed   :  { %2266 = vpow2.f32 %v2175_v45 }
0x1af3   :  { %v2267_v47 = vpop.eup %2266 }
0x1af4   :  { %v1661_v31 = vadd.f32 1.0, %v2267_v47 }
0x1af6   :  { %2268 = vrcp.f32 %v1661_v31  ;;  %v1673_v53 = vand.u32 2147483648, %v1661_v31  ;;  %v1671_v54 = vand.u32 2147483647, %v1661_v31  ;;  %vm1667_vm7 = vweird.f32 %v1661_v31 }
0x1af8   :  { %v1674_v36 = vor.u32 1.1754944e-38, %v1673_v53  ;;  %vm1672_vm14 = vcmp.eq.f32.partialorder %v1671_v54, 8.507059e+37 }
0x1afc   :  { %v2269_v48 = vpop.eup %2268 }
0x1afd   :  { %v1663_v52 = vmul.f32 %v2269_v48, %v1661_v31  ;;  %vm1668_vm11 = vweird.f32 %v2269_v48 }
0x1afe   :  { %vm1669_vm13 = vmor %vm1667_vm7, %vm1668_vm11 }
0x1aff   :  { %v1664_v33 = vsub.f32 1.0, %v1663_v52 }
0x1b01   :  { %v1665_v34 = vmul.f32 %v2269_v48, %v1664_v33 }
0x1b03   :  { %v1666_v55 = vadd.f32 %v2269_v48, %v1665_v34 }
0x1b05   :  { %v1670_v38 = vsel %vm1669_vm13, %v2269_v48, %v1666_v55 }
0x1b06   :  { %v1675_v32 = vsel %vm1672_vm14, %v1674_v36, %v1670_v38 }
0x1b07   :  { %v1677_v29 = vmul.f32 2.0, %v1675_v32  ;;  %v1679_v39 = vmul.f32 %v1675_v32, %v1603_v35 }
0x1b09   :  { %v2176_v51 = vadd.f32 -1.0, %v1677_v29 }
0x1b0b   :  { %1681 = vrot.lane.b32.xlu1 %v2176_v51, %s2299_s3 }
0x1b7d   :  { %v1682_v63 = vpop.permute.xlu1 %1681 }
0x1b7e   :  { %v1684_v6 = vmul.f32 %v1682_v63, %v1675_v32 }
0x1b80   :  { %1686 = vrot.lane.b32.xlu2 %v1684_v6, %s2300_s14 }
0x1bda   :  { %v1687_v40 = vpop.permute.xlu2 %1686 }
0x1bdb   :  { %v1689_v0 = vadd.f32 %v1687_v40, %v1679_v39 }
0x1bdd   :  { %2270 = vtanh.f32 %v1689_v0 }
0x1be3   :  { %v2271_v1 = vpop.eup %2270 }
0x1be4   :  { %1692 = vrot.lane.b32.xlu0 %v2271_v1, %s2299_s3 }
0x1c56   :  { %v1693_v41 = vpop.permute.xlu0 %1692 }
0x1c57   :  { %v1695_v2 = vmul.f32 %v1693_v41, %v1675_v32 }
0x1c59   :  { %1697 = vrot.lane.b32.xlu1 %v1695_v2, %s2300_s14 }
0x1ccb   :  { %v1698_v11 = vpop.permute.xlu1 %1697 }
0x1ccc   :  { %2177 = vmatmul.msk.f32.vlgmr.msra.gmra.mxu2 %vm195_vm6, %v1698_v11  ;;  %2178 = vmatmul.msk.f32.vlgmr.msra.gmra.mxu3 %vm195_vm6, %v1698_v11 }
0x1d4f   :  { %v1718_v12 = vpop.f32.mrf.mxu2  ;;  %v1738_v7 = vpop.f32.mrf.mxu3 }
0x1d50   :  { %v1742_v42 = vsel %vm36_vm1, %v1718_v12, %v1738_v7 }
0x1d51   :  { %v1743_v13 = vadd.f32 %v1742_v42, %v3015_v17 }
0x1d53   :  { %v2179_v43 = vmul.f32 -1.442695, %v1743_v13 }
0x1d55   :  { %2272 = vpow2.f32 %v2179_v43 }
0x1d5b   :  { %v2273_v46 = vpop.eup %2272 }
0x1d5c   :  { %v1747_v49 = vadd.f32 1.0, %v2273_v46 }
0x1d5e   :  { %2274 = vrcp.f32 %v1747_v49  ;;  %v1759_v58 = vand.u32 2147483648, %v1747_v49  ;;  %v1757_v61 = vand.u32 2147483647, %v1747_v49  ;;  %vm1753_vm2 = vweird.f32 %v1747_v49 }
0x1d60   :  { %v1760_v60 = vor.u32 1.1754944e-38, %v1759_v58  ;;  %vm1758_vm4 = vcmp.eq.f32.partialorder %v1757_v61, 8.507059e+37 }
0x1d64   :  { %v2275_v10 = vpop.eup %2274 }
0x1d65   :  { %v1749_v56 = vmul.f32 %v2275_v10, %v1747_v49  ;;  %vm1754_vm15 = vweird.f32 %v2275_v10 }
0x1d66   :  { %vm1755_vm3 = vmor %vm1753_vm2, %vm1754_vm15 }
0x1d67   :  { %v1750_v57 = vsub.f32 1.0, %v1749_v56 }
0x1d69   :  { %v1751_v16 = vmul.f32 %v2275_v10, %v1750_v57 }
0x1d6b   :  { %v1752_v59 = vadd.f32 %v2275_v10, %v1751_v16 }
0x1d6d   :  { %v1756_v18 = vsel %vm1755_vm3, %v2275_v10, %v1752_v59 }
0x1d6e   :  { %v1761_v62 = vsel %vm1758_vm4, %v1760_v60, %v1756_v18 }
0x1d6f   :  { %v1763_v17 = vmul.f32 2.0, %v1761_v62  ;;  %v1765_v3 = vmul.f32 %v1761_v62, %v1689_v0 }
0x1d71   :  { %v2180_v5 = vadd.f32 -1.0, %v1763_v17 }
0x1d73   :  { %1767 = vrot.lane.b32.xlu2 %v2180_v5, %s2299_s3 }
0x1dcd   :  { %v1768_v8 = vpop.permute.xlu2 %1767 }
0x1dce   :  { %v1770_v14 = vmul.f32 %v1768_v8, %v1761_v62 }
0x1dd0   :  { %1772 = vrot.lane.b32.xlu0 %v1770_v14, %s2300_s14 }
0x1e42   :  { %v1773_v15 = vpop.permute.xlu0 %1772 }
0x1e43   :  { %v1775_v19 = vadd.f32 %v1773_v15, %v1765_v3 }
0x1e45   :  { %2276 = vtanh.f32 %v1775_v19 }
0x1e4b   :  { %v2277_v20 = vpop.eup %2276 }
0x1e4c   :  { %1778 = vrot.lane.b32.xlu1 %v2277_v20, %s2299_s3 }
0x1ebe   :  { %v1779_v22 = vpop.permute.xlu1 %1778 }
0x1ebf   :  { %v1781_v50 = vmul.f32 %v1779_v22, %v1761_v62 }
0x1ec1   :  { %1783 = vrot.lane.b32.xlu2 %v1781_v50, %s2300_s14 }
0x1f1b   :  { %v1784_v35 = vpop.permute.xlu2 %1783 }
0x1f1c   :  { %2181 = vmatmul.msk.f32.vlgmr.msra.gmra.mxu0 %vm195_vm6, %v1784_v35  ;;  %2182 = vmatmul.msk.f32.vlgmr.msra.gmra.mxu1 %vm195_vm6, %v1784_v35 }
0x1f99   :  { %v1804_v23 = vpop.f32.mrf.mxu0  ;;  %v1824_v24 = vpop.f32.mrf.mxu1 }
0x1f9a   :  { %v1828_v25 = vsel %vm36_vm1, %v1804_v23, %v1824_v24 }
0x1f9b   :  { %v1829_v4 = vadd.f32 %v1828_v25, %v3035_v9 }
0x1f9d   :  { %v2183_v26 = vmul.f32 -1.442695, %v1829_v4 }
0x1f9f   :  { %2278 = vpow2.f32 %v2183_v26 }
0x1fa5   :  { %v2279_v27 = vpop.eup %2278 }
0x1fa6   :  { %v1833_v28 = vadd.f32 1.0, %v2279_v27 }
0x1fa8   :  { %2280 = vrcp.f32 %v1833_v28  ;;  %v1845_v31 = vand.u32 2147483648, %v1833_v28  ;;  %v1843_v52 = vand.u32 2147483647, %v1833_v28  ;;  %vm1839_vm0 = vweird.f32 %v1833_v28 }
0x1faa   :  { %v1846_v53 = vor.u32 1.1754944e-38, %v1845_v31  ;;  %vm1844_vm9 = vcmp.eq.f32.partialorder %v1843_v52, 8.507059e+37 }
0x1fae   :  { %v2281_v44 = vpop.eup %2280 }
0x1faf   :  { %v1835_v45 = vmul.f32 %v2281_v44, %v1833_v28  ;;  %vm1840_vm5 = vweird.f32 %v2281_v44 }
0x1fb0   :  { %vm1841_vm8 = vmor %vm1839_vm0, %vm1840_vm5 }
0x1fb1   :  { %v1836_v47 = vsub.f32 1.0, %v1835_v45 }
0x1fb3   :  { %v1837_v48 = vmul.f32 %v2281_v44, %v1836_v47 }
0x1fb5   :  { %v1838_v33 = vadd.f32 %v2281_v44, %v1837_v48 }
0x1fb7   :  { %v1842_v34 = vsel %vm1841_vm8, %v2281_v44, %v1838_v33  ;;  %v2048_v33 = vld [vmem:[%s3169_s7 + $0x38] sm:$0xff] }
0x1fb8   :  { %v1847_v54 = vsel %vm1844_vm9, %v1846_v53, %v1842_v34  ;;  %v2047_v53 = vld [vmem:[%s3169_s7 + $0x30] sm:$0xff]  ;;  %2064 = vmatpush.msra.mxu2 %v2048_v33  ;;  %v2046_v34 = vld [vmem:[%s3169_s7 + $0x28] sm:$0xff] }
0x1fb9   :  { %v1849_v9 = vmul.f32 2.0, %v1847_v54  ;;  %v1851_v32 = vmul.f32 %v1847_v54, %v1775_v19 }
0x1fba   :  { %2065 = vmatpush.msra.mxu2 %v2047_v53 }
0x1fbb   :  { %v2184_v55 = vadd.f32 -1.0, %v1849_v9  ;;  %v2044_v9 = vld [vmem:[%s3169_s7 + $0x18] sm:$0xff] }
0x1fbc   :  { %2066 = vmatpush.msra.mxu2 %v2046_v34 }
0x1fbd   :  { %1853 = vrot.lane.b32.xlu0 %v2184_v55, %s2299_s3  ;;  %v2043_v55 = vld [vmem:[%s3169_s7 + $0x10] sm:$0xff] }
0x202f   :  { %v1854_v36 = vpop.permute.xlu0 %1853 }
0x2030   :  { %v1856_v38 = vmul.f32 %v1854_v36, %v1847_v54  ;;  %v2042_v36 = vld [vmem:[%s3169_s7 + $0x8] sm:$0xff] }
0x2032   :  { %1858 = vrot.lane.b32.xlu1 %v1856_v38, %s2300_s14 }
0x20a4   :  { %v1859_v29 = vpop.permute.xlu1 %1858 }
0x20a5   :  { %v1861_v51 = vadd.f32 %v1859_v29, %v1851_v32 }
0x20a7   :  { %2282 = vtanh.f32 %v1861_v51 }
0x20ad   :  { %v2283_v63 = vpop.eup %2282 }
0x20ae   :  { %1864 = vrot.lane.b32.xlu2 %v2283_v63, %s2299_s3  ;;  %v14_v63 = vstv %s3170_s8 }
0x20af   :  { %15 = vst [vmem:[#allocation4] sm:$0x1] %v14_v63 }
0x2108   :  { %v1865_v6 = vpop.permute.xlu2 %1864 }
0x2109   :  { %v1867_v39 = vmul.f32 %v1865_v6, %v1847_v54  ;;  %v2045_v54 = vld [vmem:[%s3169_s7 + $0x20] sm:$0xff] }
0x210a   :  { %2067 = vmatpush.msra.mxu2 %v2045_v54 }
0x210b   :  { %1869 = vrot.lane.b32.xlu0 %v1867_v39, %s2300_s14 }
0x210c   :  { %2068 = vmatpush.msra.mxu2 %v2044_v9 }
0x210e   :  { %2069 = vmatpush.msra.mxu2 %v2043_v55 }
0x2110   :  { %2070 = vmatpush.msra.mxu2 %v2042_v36 }
0x217d   :  { %v1870_v40 = vpop.permute.xlu0 %1869 }
0x217e   :  { %2185 = vmatmul.msk.f32.vlgmr.msrb.gmra.mxu2 %vm195_vm6, %v1870_v40  ;;  %2186 = vmatmul.msk.f32.vlgmr.msrb.gmra.mxu3 %vm195_vm6, %v1870_v40 }
0x2201   :  { %v1890_v0 = vpop.f32.mrf.mxu2  ;;  %v1910_v1 = vpop.f32.mrf.mxu3 }
0x2202   :  { %v1914_v41 = vsel %vm36_vm1, %v1890_v0, %v1910_v1  ;;  %v2199_v0 = vld [vmem:[#allocation4] ss:$0 sm:$0xff] }
0x2203   :  { %v1915_v2 = vadd.f32 %v1914_v41, %v3027_v30 }
0x2205   :  { %v2187_v11 = vmul.f32 -1.442695, %v1915_v2 }
0x2207   :  { %2284 = vpow2.f32 %v2187_v11 }
0x220d   :  { %v2285_v12 = vpop.eup %2284 }
0x220e   :  { %v1919_v7 = vadd.f32 1.0, %v2285_v12 }
0x2210   :  { %2286 = vrcp.f32 %v1919_v7  ;;  %v1931_v46 = vand.u32 2147483648, %v1919_v7  ;;  %v1929_v10 = vand.u32 2147483647, %v1919_v7  ;;  %vm1925_vm11 = vweird.f32 %v1919_v7 }
0x2212   :  { %v1932_v57 = vor.u32 1.1754944e-38, %v1931_v46  ;;  %vm1930_vm13 = vcmp.eq.f32.partialorder %v1929_v10, 8.507059e+37 }
0x2216   :  { %v2287_v42 = vpop.eup %2286 }
0x2217   :  { %v1921_v13 = vmul.f32 %v2287_v42, %v1919_v7  ;;  %vm1926_vm10 = vweird.f32 %v2287_v42 }
0x2218   :  { %vm1927_vm7 = vmor %vm1925_vm11, %vm1926_vm10 }
0x2219   :  { %v1922_v43 = vsub.f32 1.0, %v1921_v13 }
0x221b   :  { %v1923_v49 = vmul.f32 %v2287_v42, %v1922_v43 }
0x221d   :  { %v1924_v56 = vadd.f32 %v2287_v42, %v1923_v49 }
0x221f   :  { %v1928_v58 = vsel %vm1927_vm7, %v2287_v42, %v1924_v56 }
0x2220   :  { %v1933_v16 = vsel %vm1930_vm13, %v1932_v57, %v1928_v58 }
0x2221   :  { %v1935_v30 = vmul.f32 2.0, %v1933_v16  ;;  %v1937_v18 = vmul.f32 %v1933_v16, %v1861_v51  ;;  %v2041_v51 = vld [vmem:[%s3169_s7] sm:$0xff] }
0x2222   :  { %2071 = vmatpush.msra.mxu2 %v2041_v51 }
0x2223   :  { %v2188_v61 = vadd.f32 -1.0, %v1935_v30 }
0x2225   :  { %1939 = vrot.lane.b32.xlu1 %v2188_v61, %s2299_s3 }
0x2297   :  { %v1940_v59 = vpop.permute.xlu1 %1939 }
0x2298   :  { %v1942_v60 = vmul.f32 %v1940_v59, %v1933_v16 }
0x229a   :  { %1944 = vrot.lane.b32.xlu2 %v1942_v60, %s2300_s14 }
0x22f4   :  { %v1945_v62 = vpop.permute.xlu2 %1944 }
0x22f5   :  { %v1947_v17 = vadd.f32 %v1945_v62, %v1937_v18 }
0x22f7   :  { %2288 = vtanh.f32 %v1947_v17 }
0x22fd   :  { %v2289_v5 = vpop.eup %2288 }
0x22fe   :  { %1950 = vrot.lane.b32.xlu0 %v2289_v5, %s2299_s3 }
0x2370   :  { %v1951_v8 = vpop.permute.xlu0 %1950 }
0x2371   :  { %v1953_v14 = vmul.f32 %v1951_v8, %v1933_v16 }
0x2373   :  { %1955 = vrot.lane.b32.xlu1 %v1953_v14, %s2300_s14 }
0x23e5   :  { %v1956_v3 = vpop.permute.xlu1 %1955 }
0x23e6   :  { %2189 = vmatmul.msk.f32.vlgmr.msrb.gmra.mxu0 %vm195_vm6, %v1956_v3  ;;  %2190 = vmatmul.msk.f32.vlgmr.msrb.gmra.mxu1 %vm195_vm6, %v1956_v3 }
0x2463   :  { %v1976_v15 = vpop.f32.mrf.mxu0  ;;  %v1996_v19 = vpop.f32.mrf.mxu1 }
0x2464   :  { %v2000_v20 = vsel %vm36_vm1, %v1976_v15, %v1996_v19 }
0x2465   :  { %v2001_v22 = vadd.f32 %v2000_v20, %v3039_v37 }
0x2467   :  { %v2191_v50 = vmul.f32 -1.442695, %v2001_v22 }
0x2469   :  { %2290 = vpow2.f32 %v2191_v50 }
0x246f   :  { %v2291_v35 = vpop.eup %2290 }
0x2470   :  { %v2005_v23 = vadd.f32 1.0, %v2291_v35 }
0x2472   :  { %2292 = vrcp.f32 %v2005_v23  ;;  %v2017_v26 = vand.u32 2147483648, %v2005_v23  ;;  %v2015_v28 = vand.u32 2147483647, %v2005_v23  ;;  %vm2011_vm15 = vweird.f32 %v2005_v23 }
0x2474   :  { %v2018_v45 = vor.u32 1.1754944e-38, %v2017_v26  ;;  %vm2016_vm1 = vcmp.eq.f32.partialorder %v2015_v28, 8.507059e+37 }
0x2478   :  { %v2293_v24 = vpop.eup %2292 }
0x2479   :  { %v2007_v25 = vmul.f32 %v2293_v24, %v2005_v23  ;;  %vm2012_vm14 = vweird.f32 %v2293_v24 }
0x247a   :  { %vm2013_vm2 = vmor %vm2011_vm15, %vm2012_vm14 }
0x247b   :  { %v2008_v4 = vsub.f32 1.0, %v2007_v25 }
0x247d   :  { %v2009_v27 = vmul.f32 %v2293_v24, %v2008_v4 }
0x247f   :  { %v2010_v44 = vadd.f32 %v2293_v24, %v2009_v27 }
0x2481   :  { %v2014_v21 = vsel %vm2013_vm2, %v2293_v24, %v2010_v44 }
0x2482   :  { %v2019_v47 = vsel %vm2016_vm1, %v2018_v45, %v2014_v21 }
0x2483   :  { %v2021_v37 = vmul.f32 2.0, %v2019_v47  ;;  %v2023_v38 = vmul.f32 %v2019_v47, %v1947_v17 }
0x2485   :  { %v2192_v31 = vadd.f32 -1.0, %v2021_v37 }
0x2487   :  { %2025 = vrot.lane.b32.xlu2 %v2192_v31, %s2299_s3 }
0x24e1   :  { %v2026_v48 = vpop.permute.xlu2 %2025 }
0x24e2   :  { %v2028_v52 = vmul.f32 %v2026_v48, %v2019_v47 }
0x24e4   :  { %2030 = vrot.lane.b32.xlu0 %v2028_v52, %s2300_s14 }
0x2556   :  { %v2031_v32 = vpop.permute.xlu0 %2030 }
0x2557   :  { %v2033_v29 = vadd.f32 %v2031_v32, %v2023_v38 }
0x2559   :  { %2035 = vrot.lane.b32.xlu1 %v2033_v29, %s2301_s18  ;;  %v2038_v6 = vrot.slane %v2033_v29, 4 }
0x25cb   :  { %v2036_v39 = vpop.permute.xlu1 %2035 }
0x25cc   :  { %v2040_v40 = vsel %vm195_vm6, %v2036_v39, %v2038_v6 }
0x25cd   :  { %2193 = vmatmul.msk.f32.vlgmr.msra.gmra.mxu2 %vm981_vm12, %v2040_v40  ;;  %vm2095_vm12 = vcmask 3072  }
0x2650   :  { %v2073_v1 = vpop.f32.mrf.mxu2 }
0x2651   :  { %v2074_v41 = vadd.f32 %v2199_v0, %v2073_v1 }
0x2653   :  { %v2194_v2 = vmul.f32 -1.442695, %v2074_v41 }
0x2655   :  { %2294 = vpow2.f32 %v2194_v2 }
0x265b   :  { %v2295_v11 = vpop.eup %2294 }
0x265c   :  { %v2079_v12 = vadd.f32 1.0, %v2295_v11 }
0x265e   :  { %2296 = vrcp.f32 %v2079_v12  ;;  %v2091_v43 = vand.u32 2147483648, %v2079_v12  ;;  %v2089_v49 = vand.u32 2147483647, %v2079_v12  ;;  %vm2085_vm4 = vweird.f32 %v2079_v12 }
0x2660   :  { %v2092_v56 = vor.u32 1.1754944e-38, %v2091_v43  ;;  %vm2090_vm5 = vcmp.eq.f32.partialorder %v2089_v49, 8.507059e+37 }
0x2664   :  { %v2297_v7 = vpop.eup %2296 }
0x2665   :  { %v2081_v42 = vmul.f32 %v2297_v7, %v2079_v12  ;;  %vm2086_vm3 = vweird.f32 %v2297_v7 }
0x2666   :  { %vm2087_vm6 = vmor %vm2085_vm4, %vm2086_vm3 }
0x2667   :  { %v2082_v13 = vsub.f32 1.0, %v2081_v42 }
0x2669   :  { %v2083_v46 = vmul.f32 %v2297_v7, %v2082_v13 }
0x266b   :  { %v2084_v10 = vadd.f32 %v2297_v7, %v2083_v46 }
0x266d   :  { %v2088_v57 = vsel %vm2087_vm6, %v2297_v7, %v2084_v10 }
0x266e   :  { %v2093_v58 = vsel %vm2090_vm5, %v2092_v56, %v2088_v57 }
0x266f   :  { %2096 = vst.msk [vmem:[%s3171_s9] sm:$0xf] %vm2095_vm12, %v2093_v58 }

</bundles_post_ra>
